<compile_context>
chip_gen: v5e
topology: v5e:2x2
jax: 0.10.0
libtpu: 0.0.40
codegen_flags: <defaults>
</compile_context>

<pallas_src>
import functools

import jax
import jax.numpy as jnp
from jax.experimental import pallas as pl
from jax.experimental.pallas import tpu as pltpu


_WEIGHT_ORDER = ("w1", "b1", "w5", "b5", "w2", "b2", "w3", "b3", "w4", "b4")


def _round_up(n, m):
    return ((n + m - 1) // m) * m


def _device_kind():
    try:
        return jax.devices()[0].device_kind.lower()
    except Exception:
        return ""


def _num_tensorcores(kind):
    # Only v7x exposes 2 TensorCores per chip; everything else is 1.
    return 2 if "v7" in kind else 1


def _has_bf16_vpu(kind):
    # v6e / v7x have bf16 VALUs; v5e does not.
    return ("v6" in kind) or ("v7" in kind)


def _mlp_kernel(x_ref,
                w1_ref, b1_ref,
                w5_ref, b5_ref,
                w2_ref, b2_ref,
                w3_ref, b3_ref,
                w4_ref, b4_ref,
                o_ref, *, n_splits, bf16_relu):
    """Fused forward pass for one (batch_tile, input_dim) tile.

    All five matmuls run on the MXU in bf16 with f32 accumulation; bias adds
    and ReLUs run on the VPU.  All weights live whole in VMEM.  The tile is
    optionally processed as `n_splits` independent row-halves so the scheduler
    can overlap one half's matmul with the other half's epilogue.
    """
    tile = x_ref.shape[0]
    half = tile // n_splits

    def layer(h, w_ref, b_ref, relu):
        acc = jnp.dot(h, w_ref[...], preferred_element_type=jnp.float32)
        acc = acc + b_ref[...]              # (1, N) f32 bias broadcast
        if relu:
            if bf16_relu:
                acc = jnp.maximum(acc.astype(jnp.bfloat16), 0)
            else:
                acc = jnp.maximum(acc, 0.0).astype(jnp.bfloat16)
        return acc

    for s in range(n_splits):           # static unroll: independent chains
        lo = s * half
        h = x_ref[lo:lo + half, :].astype(jnp.bfloat16)   # x.float() -> bf16
        h = layer(h, w1_ref, b1_ref, relu=True)    # fc1 + ReLU
        h = layer(h, w5_ref, b5_ref, relu=True)    # fc5 + ReLU
        h = layer(h, w2_ref, b2_ref, relu=True)    # fc2 + ReLU
        h = layer(h, w3_ref, b3_ref, relu=True)    # fc3 + ReLU (128-lane pad)
        h = layer(h, w4_ref, b4_ref, relu=False)   # fc4 + Identity head (f32)
        o_ref[lo:lo + half, :] = h.astype(o_ref.dtype)


def _choose_batch_tile(batch, requested, num_cores):
    """Sublane(8)-aligned batch tile.

    One maximal tile on single-TC chips (v5e/v6e).  On v7x, split across the
    two TensorCores only when there is enough work that each half keeps a
    healthy M (>=128 rows).
    """
    rows = _round_up(batch, 8)
    tile = min(_round_up(max(requested, 8), 8), rows)
    if num_cores >= 2 and rows >= 256 and rows // tile < num_cores:
        half = _round_up(pl.cdiv(rows, num_cores), 8)
        if half >= 128:
            tile = half
    return tile


@functools.partial(jax.jit, static_argnames=("batch_tile",))
def regnn_forward(x, params, *, batch_tile=512):
    """RegnnModel forward pass via one fused Pallas kernel.

    x: (B, input_dim) array (any float dtype; cast like `x.float()` in-kernel).
    params: dict w1,b1,w5,b5,w2,b2,w3,b3,w4,b4; weights (in,out) f32,
            biases (1,out) f32.
    """
    B, input_dim = x.shape
    output_dim = params["w4"].shape[1]
    out_pad = _round_up(output_dim, 128)     # lane-dense output stores
    hid3 = params["w3"].shape[1]             # 64
    hid3_pad = _round_up(hid3, 128)          # 128: lane-dense tail activations

    kind = _device_kind()
    num_cores = _num_tensorcores(kind)
    bf16_relu = _has_bf16_vpu(kind)

    tile = _choose_batch_tile(B, batch_tile, num_cores)
    Bp = _round_up(B, tile)
    if Bp != B:
        x = jnp.pad(x, ((0, Bp - B), (0, 0)))
    grid = (Bp // tile,)

    # Intra-tile split: two independent chains when the tile is big enough.
    n_splits = 2 if (tile >= 256 and (tile // 2) % 8 == 0) else 1

    # bf16 weights (MXU-native), f32 biases (added to the f32 accumulator).
    # fc3 output / fc4 input padded to 128 lanes; fc4 output padded to out_pad.
    # ReLU keeps the fc3 pad columns at exactly 0 (zero weights + zero bias),
    # so fc4's padded K rows contribute nothing.
    kern_params = {}
    for name in ("w1", "w5", "w2"):
        kern_params[name] = params[name].astype(jnp.bfloat16)
    for name in ("b1", "b5", "b2"):
        kern_params[name] = params[name].astype(jnp.float32)
    kern_params["w3"] = jnp.pad(params["w3"].astype(jnp.bfloat16),
                                ((0, 0), (0, hid3_pad - hid3)))
    kern_params["b3"] = jnp.pad(params["b3"].astype(jnp.float32),
                                ((0, 0), (0, hid3_pad - hid3)))
    kern_params["w4"] = jnp.pad(params["w4"].astype(jnp.bfloat16),
                                ((0, hid3_pad - hid3),
                                 (0, out_pad - output_dim)))
    kern_params["b4"] = jnp.pad(params["b4"].astype(jnp.float32),
                                ((0, 0), (0, out_pad - output_dim)))
    weight_args = [kern_params[k] for k in _WEIGHT_ORDER]

    def full_spec(shape):
        # Whole array, same block every grid step -> DMA'd once, VMEM-resident.
        return pl.BlockSpec(shape, lambda i: (0, 0))

    in_specs = [pl.BlockSpec((tile, input_dim), lambda i: (i, 0))]
    in_specs += [full_spec(a.shape) for a in weight_args]

    # Advisory cost estimate for the XLA scheduler (uses padded dims).
    layer_dims = [(input_dim, 1024), (1024, 512), (512, 256),
                  (256, hid3_pad), (hid3_pad, out_pad)]
    flops = 2 * Bp * sum(m * n for m, n in layer_dims)
    bytes_accessed = (x.size * x.dtype.itemsize
                      + sum(a.size * a.dtype.itemsize for a in weight_args)
                      + Bp * out_pad * 4)

    kernel = functools.partial(_mlp_kernel, n_splits=n_splits,
                               bf16_relu=bf16_relu)

    out = pl.pallas_call(
        kernel,
        out_shape=jax.ShapeDtypeStruct((Bp, out_pad), jnp.float32),
        grid_spec=pltpu.PrefetchScalarGridSpec(
            num_scalar_prefetch=0,
            grid=grid,
            in_specs=in_specs,
            out_specs=pl.BlockSpec((tile, out_pad), lambda i: (i, 0)),
        ),
        compiler_params=pltpu.CompilerParams(
            dimension_semantics=("parallel",),
            vmem_limit_bytes=48 * 1024 * 1024,   # safe on v5e/v6e/v7x
        ),
        cost_estimate=pl.CostEstimate(
            flops=flops, transcendentals=0, bytes_accessed=bytes_accessed),
    )(x, *weight_args)

    return out[:B, :output_dim]


def init_regnn_params(key, input_dim, output_dim):
    """Deterministic init mimicking nn.Linear default U[-1/sqrt(fan_in), +1/sqrt(fan_in)].

    Weights stored as (in_features, out_features), biases as (1, out_features).
    """
    dims = [(input_dim, 1024), (1024, 512), (512, 256), (256, 64),
            (64, output_dim)]
    names = ["1", "5", "2", "3", "4"]  # fc1, fc5, fc2, fc3, fc4 (forward order)
    params = {}
    for name, (fan_in, fan_out) in zip(names, dims):
        key, kw, kb = jax.random.split(key, 3)
        bound = 1.0 / jnp.sqrt(jnp.float32(fan_in))
        params[f"w{name}"] = jax.random.uniform(
            kw, (fan_in, fan_out), jnp.float32, -bound, bound)
        params[f"b{name}"] = jax.random.uniform(
            kb, (1, fan_out), jnp.float32, -bound, bound)
    return params


def regnn_reference(x, params):
    """Pure-JAX f32 reference for correctness check."""
    h = x.astype(jnp.float32)
    h = jnp.maximum(h @ params["w1"] + params["b1"], 0.0)
    h = jnp.maximum(h @ params["w5"] + params["b5"], 0.0)
    h = jnp.maximum(h @ params["w2"] + params["b2"], 0.0)
    h = jnp.maximum(h @ params["w3"] + params["b3"], 0.0)
    return h @ params["w4"] + params["b4"]


if __name__ == "__main__":
    key = jax.random.PRNGKey(0)
    k_params, k_x = jax.random.split(key)

    batch = 24        # exercises non-128 batch and a single maximal tile
    input_dim = 32
    output_dim = 16

    params = init_regnn_params(k_params, input_dim, output_dim)
    x = jax.random.normal(k_x, (batch, input_dim), dtype=jnp.float32)

    out = regnn_forward(x, params)
    out = jax.block_until_ready(out)

    ref = regnn_reference(x, params)
    assert out.shape == (batch, output_dim), out.shape
    max_err = float(jnp.max(jnp.abs(out - ref)))
    # bf16 operands / f32 accumulation vs f32 reference.
    assert jnp.allclose(out, ref, atol=5e-2, rtol=5e-2), max_err

    print("KERNEL_OK")
</pallas_src>

<mosaic_0001>
module attributes {stable_mosaic.version = 11 : i64} {
  func.func @_mlp_kernel(%arg0: i32, %arg1: memref<24x32xf32, #tpu.memory_space<vmem>>, %arg2: memref<32x1024xbf16, #tpu.memory_space<vmem>>, %arg3: memref<1x1024xf32, #tpu.memory_space<vmem>>, %arg4: memref<1024x512xbf16, #tpu.memory_space<vmem>>, %arg5: memref<1x512xf32, #tpu.memory_space<vmem>>, %arg6: memref<512x256xbf16, #tpu.memory_space<vmem>>, %arg7: memref<1x256xf32, #tpu.memory_space<vmem>>, %arg8: memref<256x128xbf16, #tpu.memory_space<vmem>>, %arg9: memref<1x128xf32, #tpu.memory_space<vmem>>, %arg10: memref<128x128xbf16, #tpu.memory_space<vmem>>, %arg11: memref<1x128xf32, #tpu.memory_space<vmem>>, %arg12: memref<24x128xf32, #tpu.memory_space<vmem>>) attributes {dimension_semantics = [#tpu.dimension_semantics<parallel>], iteration_bounds = array<i64: 1>, scalar_prefetch = 0 : i64, scratch_operands = 0 : i64, tpu.core_type = #tpu.core_type<tc>, window_params = [{transform_indices = @transform_0, window_bounds = array<i64: 24, 32>}, {pipeline_mode = #tpu.pipeline_mode<synchronous>, transform_indices = @transform_1, window_bounds = array<i64: 32, 1024>}, {pipeline_mode = #tpu.pipeline_mode<synchronous>, transform_indices = @transform_2, window_bounds = array<i64: 1, 1024>}, {pipeline_mode = #tpu.pipeline_mode<synchronous>, transform_indices = @transform_3, window_bounds = array<i64: 1024, 512>}, {pipeline_mode = #tpu.pipeline_mode<synchronous>, transform_indices = @transform_4, window_bounds = array<i64: 1, 512>}, {pipeline_mode = #tpu.pipeline_mode<synchronous>, transform_indices = @transform_5, window_bounds = array<i64: 512, 256>}, {pipeline_mode = #tpu.pipeline_mode<synchronous>, transform_indices = @transform_6, window_bounds = array<i64: 1, 256>}, {pipeline_mode = #tpu.pipeline_mode<synchronous>, transform_indices = @transform_7, window_bounds = array<i64: 256, 128>}, {pipeline_mode = #tpu.pipeline_mode<synchronous>, transform_indices = @transform_8, window_bounds = array<i64: 1, 128>}, {pipeline_mode = #tpu.pipeline_mode<synchronous>, transform_indices = @transform_9, window_bounds = array<i64: 128, 128>}, {pipeline_mode = #tpu.pipeline_mode<synchronous>, transform_indices = @transform_10, window_bounds = array<i64: 1, 128>}, {transform_indices = @transform_11, window_bounds = array<i64: 24, 128>}]} {
    %c0 = arith.constant 0 : index
    %c0_0 = arith.constant 0 : index
    %0 = vector.load %arg1[%c0, %c0_0] : memref<24x32xf32, #tpu.memory_space<vmem>>, vector<24x32xf32>
    %1 = arith.truncf %0 : vector<24x32xf32> to vector<24x32xbf16>
    %c0_1 = arith.constant 0 : index
    %c0_2 = arith.constant 0 : index
    %2 = vector.load %arg2[%c0_1, %c0_2] : memref<32x1024xbf16, #tpu.memory_space<vmem>>, vector<32x1024xbf16>
    %cst = arith.constant dense<0.000000e+00> : vector<24x1024xf32>
    %3 = tpu.matmul %1, %2, %cst {dimension_numbers = #tpu.dot_dimension_numbers<[1], [0], [0], [1], [0, 0, 1, 1], [], []>} : vector<24x32xbf16>, vector<32x1024xbf16>, vector<24x1024xf32> -> vector<24x1024xf32>
    %c0_3 = arith.constant 0 : index
    %c0_4 = arith.constant 0 : index
    %4 = vector.load %arg3[%c0_3, %c0_4] : memref<1x1024xf32, #tpu.memory_space<vmem>>, vector<1x1024xf32>
    %5 = vector.broadcast %4 : vector<1x1024xf32> to vector<24x1024xf32>
    %6 = arith.addf %3, %5 : vector<24x1024xf32>
    %cst_5 = arith.constant 0.000000e+00 : f32
    %7 = vector.broadcast %cst_5 : f32 to vector<24x1024xf32>
    %8 = arith.maximumf %6, %7 : vector<24x1024xf32>
    %9 = arith.truncf %8 : vector<24x1024xf32> to vector<24x1024xbf16>
    %c0_6 = arith.constant 0 : index
    %c0_7 = arith.constant 0 : index
    %10 = vector.load %arg4[%c0_6, %c0_7] : memref<1024x512xbf16, #tpu.memory_space<vmem>>, vector<1024x512xbf16>
    %cst_8 = arith.constant dense<0.000000e+00> : vector<24x512xf32>
    %11 = tpu.matmul %9, %10, %cst_8 {dimension_numbers = #tpu.dot_dimension_numbers<[1], [0], [0], [1], [0, 0, 1, 1], [], []>} : vector<24x1024xbf16>, vector<1024x512xbf16>, vector<24x512xf32> -> vector<24x512xf32>
    %c0_9 = arith.constant 0 : index
    %c0_10 = arith.constant 0 : index
    %12 = vector.load %arg5[%c0_9, %c0_10] : memref<1x512xf32, #tpu.memory_space<vmem>>, vector<1x512xf32>
    %13 = vector.broadcast %12 : vector<1x512xf32> to vector<24x512xf32>
    %14 = arith.addf %11, %13 : vector<24x512xf32>
    %cst_11 = arith.constant 0.000000e+00 : f32
    %15 = vector.broadcast %cst_11 : f32 to vector<24x512xf32>
    %16 = arith.maximumf %14, %15 : vector<24x512xf32>
    %17 = arith.truncf %16 : vector<24x512xf32> to vector<24x512xbf16>
    %c0_12 = arith.constant 0 : index
    %c0_13 = arith.constant 0 : index
    %18 = vector.load %arg6[%c0_12, %c0_13] : memref<512x256xbf16, #tpu.memory_space<vmem>>, vector<512x256xbf16>
    %cst_14 = arith.constant dense<0.000000e+00> : vector<24x256xf32>
    %19 = tpu.matmul %17, %18, %cst_14 {dimension_numbers = #tpu.dot_dimension_numbers<[1], [0], [0], [1], [0, 0, 1, 1], [], []>} : vector<24x512xbf16>, vector<512x256xbf16>, vector<24x256xf32> -> vector<24x256xf32>
    %c0_15 = arith.constant 0 : index
    %c0_16 = arith.constant 0 : index
    %20 = vector.load %arg7[%c0_15, %c0_16] : memref<1x256xf32, #tpu.memory_space<vmem>>, vector<1x256xf32>
    %21 = vector.broadcast %20 : vector<1x256xf32> to vector<24x256xf32>
    %22 = arith.addf %19, %21 : vector<24x256xf32>
    %cst_17 = arith.constant 0.000000e+00 : f32
    %23 = vector.broadcast %cst_17 : f32 to vector<24x256xf32>
    %24 = arith.maximumf %22, %23 : vector<24x256xf32>
    %25 = arith.truncf %24 : vector<24x256xf32> to vector<24x256xbf16>
    %c0_18 = arith.constant 0 : index
    %c0_19 = arith.constant 0 : index
    %26 = vector.load %arg8[%c0_18, %c0_19] : memref<256x128xbf16, #tpu.memory_space<vmem>>, vector<256x128xbf16>
    %cst_20 = arith.constant dense<0.000000e+00> : vector<24x128xf32>
    %27 = tpu.matmul %25, %26, %cst_20 {dimension_numbers = #tpu.dot_dimension_numbers<[1], [0], [0], [1], [0, 0, 1, 1], [], []>} : vector<24x256xbf16>, vector<256x128xbf16>, vector<24x128xf32> -> vector<24x128xf32>
    %c0_21 = arith.constant 0 : index
    %c0_22 = arith.constant 0 : index
    %28 = vector.load %arg9[%c0_21, %c0_22] : memref<1x128xf32, #tpu.memory_space<vmem>>, vector<1x128xf32>
    %29 = vector.broadcast %28 : vector<1x128xf32> to vector<24x128xf32>
    %30 = arith.addf %27, %29 : vector<24x128xf32>
    %cst_23 = arith.constant 0.000000e+00 : f32
    %31 = vector.broadcast %cst_23 : f32 to vector<24x128xf32>
    %32 = arith.maximumf %30, %31 : vector<24x128xf32>
    %33 = arith.truncf %32 : vector<24x128xf32> to vector<24x128xbf16>
    %c0_24 = arith.constant 0 : index
    %c0_25 = arith.constant 0 : index
    %34 = vector.load %arg10[%c0_24, %c0_25] : memref<128x128xbf16, #tpu.memory_space<vmem>>, vector<128x128xbf16>
    %cst_26 = arith.constant dense<0.000000e+00> : vector<24x128xf32>
    %35 = tpu.matmul %33, %34, %cst_26 {dimension_numbers = #tpu.dot_dimension_numbers<[1], [0], [0], [1], [0, 0, 1, 1], [], []>} : vector<24x128xbf16>, vector<128x128xbf16>, vector<24x128xf32> -> vector<24x128xf32>
    %c0_27 = arith.constant 0 : index
    %c0_28 = arith.constant 0 : index
    %36 = vector.load %arg11[%c0_27, %c0_28] : memref<1x128xf32, #tpu.memory_space<vmem>>, vector<1x128xf32>
    %37 = vector.broadcast %36 : vector<1x128xf32> to vector<24x128xf32>
    %38 = arith.addf %35, %37 : vector<24x128xf32>
    %c0_29 = arith.constant 0 : index
    %c0_30 = arith.constant 0 : index
    %39 = vector.load %arg12[%c0_29, %c0_30] : memref<24x128xf32, #tpu.memory_space<vmem>>, vector<24x128xf32>
    tpu.vector_store %arg12[%c0_29, %c0_30], %38 {strides = array<i32>} : memref<24x128xf32, #tpu.memory_space<vmem>>, vector<24x128xf32>,
    return
  }
  func.func @transform_0(%arg0: i32) -> (i32, i32) {
    %c0_i32 = arith.constant 0 : i32
    %c0_i32_0 = arith.constant 0 : i32
    return %arg0, %c0_i32 : i32, i32
  }
  func.func @transform_1(%arg0: i32) -> (i32, i32) {
    %c0_i32 = arith.constant 0 : i32
    %c0_i32_0 = arith.constant 0 : i32
    %c0_i32_1 = arith.constant 0 : i32
    return %c0_i32, %c0_i32_0 : i32, i32
  }
  func.func @transform_2(%arg0: i32) -> (i32, i32) {
    %c0_i32 = arith.constant 0 : i32
    %c0_i32_0 = arith.constant 0 : i32
    %c0_i32_1 = arith.constant 0 : i32
    return %c0_i32, %c0_i32_0 : i32, i32
  }
  func.func @transform_3(%arg0: i32) -> (i32, i32) {
    %c0_i32 = arith.constant 0 : i32
    %c0_i32_0 = arith.constant 0 : i32
    %c0_i32_1 = arith.constant 0 : i32
    return %c0_i32, %c0_i32_0 : i32, i32
  }
  func.func @transform_4(%arg0: i32) -> (i32, i32) {
    %c0_i32 = arith.constant 0 : i32
    %c0_i32_0 = arith.constant 0 : i32
    %c0_i32_1 = arith.constant 0 : i32
    return %c0_i32, %c0_i32_0 : i32, i32
  }
  func.func @transform_5(%arg0: i32) -> (i32, i32) {
    %c0_i32 = arith.constant 0 : i32
    %c0_i32_0 = arith.constant 0 : i32
    %c0_i32_1 = arith.constant 0 : i32
    return %c0_i32, %c0_i32_0 : i32, i32
  }
  func.func @transform_6(%arg0: i32) -> (i32, i32) {
    %c0_i32 = arith.constant 0 : i32
    %c0_i32_0 = arith.constant 0 : i32
    %c0_i32_1 = arith.constant 0 : i32
    return %c0_i32, %c0_i32_0 : i32, i32
  }
  func.func @transform_7(%arg0: i32) -> (i32, i32) {
    %c0_i32 = arith.constant 0 : i32
    %c0_i32_0 = arith.constant 0 : i32
    %c0_i32_1 = arith.constant 0 : i32
    return %c0_i32, %c0_i32_0 : i32, i32
  }
  func.func @transform_8(%arg0: i32) -> (i32, i32) {
    %c0_i32 = arith.constant 0 : i32
    %c0_i32_0 = arith.constant 0 : i32
    %c0_i32_1 = arith.constant 0 : i32
    return %c0_i32, %c0_i32_0 : i32, i32
  }
  func.func @transform_9(%arg0: i32) -> (i32, i32) {
    %c0_i32 = arith.constant 0 : i32
    %c0_i32_0 = arith.constant 0 : i32
    %c0_i32_1 = arith.constant 0 : i32
    return %c0_i32, %c0_i32_0 : i32, i32
  }
  func.func @transform_10(%arg0: i32) -> (i32, i32) {
    %c0_i32 = arith.constant 0 : i32
    %c0_i32_0 = arith.constant 0 : i32
    %c0_i32_1 = arith.constant 0 : i32
    return %c0_i32, %c0_i32_0 : i32, i32
  }
  func.func @transform_11(%arg0: i32) -> (i32, i32) {
    %c0_i32 = arith.constant 0 : i32
    %c0_i32_0 = arith.constant 0 : i32
    return %arg0, %c0_i32 : i32, i32
  }
}

</mosaic_0001>

<bundles_post_ra>
// kernel: regnn_forward.1
= control target key start
LH: loop header
LB: loop body
LE: loop exit
PB: predicated region body
PF: predicated region fallthrough
CT: control target
= control target key end

     0   :  { %vm158_vm0 = vcmask 261120   ;;  %s7689_s1 = inlined_call_operand.vmem [shape: bf16[32,1024], index: 1, kind: input, shape index: {}]   ;;  %s7690_s0 = inlined_call_operand.vmem [shape: f32[24,32], index: 0, kind: input, shape index: {}]   ;;  %s7691_s3 = inlined_call_operand.vmem [shape: bf16[1024,512], index: 3, kind: input, shape index: {}]   ;;  %s7692_s2 = inlined_call_operand.vmem [shape: f32[1,1024], index: 2, kind: input, shape index: {}]   ;;  %s7693_s4 = inlined_call_operand.vmem [shape: f32[1,512], index: 4, kind: input, shape index: {}]   ;;  %s7694_s5 = inlined_call_operand.vmem [shape: bf16[512,256], index: 5, kind: input, shape index: {}]   ;;  %s7695_s6 = inlined_call_operand.vmem [shape: f32[1,256], index: 6, kind: input, shape index: {}]   ;;  %s7696_s8 = inlined_call_operand.vmem [shape: f32[1,128], index: 8, kind: input, shape index: {}]   ;;  %s7697_s7 = inlined_call_operand.vmem [shape: bf16[256,128], index: 7, kind: input, shape index: {}]   ;;  %s7698_s10 = inlined_call_operand.vmem [shape: f32[1,128], index: 10, kind: input, shape index: {}]   ;;  %s7699_s9 = inlined_call_operand.vmem [shape: bf16[128,128], index: 9, kind: input, shape index: {}]   ;;  %s7700_s11 = inlined_call_operand.vmem [shape: f32[24,128], index: 11, kind: output, shape index: {}]  }
   0x1   :  { %v3335_v0 = vld [vmem:[%s7689_s1 + $0x40] sm:$0xf]  ;;  %v4765_v2 = vld [vmem:[%s7689_s1 + $0x44] sm:$0xf]  ;;  %v3343_v5 = vld [vmem:[%s7689_s1 + $0x48] sm:$0xf] }
   0x2   :  { %v4769_v1 = vld [vmem:[%s7689_s1 + $0x5c] sm:$0xf0]  ;;  %v3337_v4 = vld [vmem:[%s7689_s1 + $0x60] sm:$0xf0]  ;;  %v4770_v6 = vld [vmem:[%s7689_s1 + $0x64] sm:$0xf0] }
   0x3   :  { %v3336_v3 = vor.u32 %v4769_v1, %v3335_v0  ;;  %v3340_v7 = vor.u32 %v4765_v2, %v3337_v4  ;;  %v3344_v8 = vor.u32 %v4770_v6, %v3343_v5  ;;  %v3303_v9 = vld [vmem:[%s7689_s1] sm:$0xf]  ;;  %v4757_v11 = vld [vmem:[%s7689_s1 + $0x4] sm:$0xf]  ;;  %v3311_v14 = vld [vmem:[%s7689_s1 + $0x8] sm:$0xf] }
   0x4   :  { %v4761_v10 = vld [vmem:[%s7689_s1 + $0x1c] sm:$0xf0]  ;;  %v3305_v13 = vld [vmem:[%s7689_s1 + $0x20] sm:$0xf0]  ;;  %v4762_v15 = vld [vmem:[%s7689_s1 + $0x24] sm:$0xf0] }
   0x5   :  { %171 = vmatpush.bf16.msra.mxu0 %v3336_v3  ;;  %5117 = vmatpush.bf16.msra.mxu3 %v3336_v3  ;;  %v3304_v12 = vor.u32 %v4761_v10, %v3303_v9  ;;  %v3308_v16 = vor.u32 %v4757_v11, %v3305_v13  ;;  %v3312_v17 = vor.u32 %v4762_v15, %v3311_v14  ;;  %v39_v18 = vld [vmem:[%s7690_s0] sm:$0xff]  ;;  %v40_v19 = vld [vmem:[%s7690_s0 + $0x8] sm:$0xff]  ;;  %v41_v20 = vld [vmem:[%s7690_s0 + $0x10] sm:$0xff] }
   0x6   :  { %189 = vmatpush.bf16.msra.mxu1 %v3340_v7  ;;  %207 = vmatpush.bf16.msra.mxu2 %v3344_v8  ;;  %v4766_v21 = vld [vmem:[%s7689_s1 + $0x4c] sm:$0xf]  ;;  %v5236_v24 = vpack.c.bf16 %v40_v19, %v39_v18  ;;  %v5238_v25 = vpack.c.bf16 %v41_v20, %v41_v20  ;;  %v3359_v28 = vld [vmem:[%s7689_s1 + $0x58] sm:$0xf]  ;;  %v4768_v31 = vld [vmem:[%s7689_s1 + $0x5c] sm:$0xf] }
   0x7   :  { %v3345_v22 = vld [vmem:[%s7689_s1 + $0x68] sm:$0xf0]  ;;  %v4772_v29 = vld [vmem:[%s7689_s1 + $0x74] sm:$0xf0]  ;;  %v3361_v32 = vld [vmem:[%s7689_s1 + $0x78] sm:$0xf0] }
   0x8   :  { %v4758_v23 = vld [vmem:[%s7689_s1 + $0xc] sm:$0xf]  ;;  %v3348_v26 = vor.u32 %v4766_v21, %v3345_v22  ;;  %v3360_v30 = vor.u32 %v4772_v29, %v3359_v28  ;;  %v4767_v33 = vld [vmem:[%s7689_s1 + $0x54] sm:$0xf]  ;;  %v3351_v35 = vld [vmem:[%s7689_s1 + $0x50] sm:$0xf]  ;;  %v3364_v43 = vor.u32 %v4768_v31, %v3361_v32 }
   0x9   :  { %v3313_v27 = vld [vmem:[%s7689_s1 + $0x28] sm:$0xf0]  ;;  %172 = vmatpush.bf16.msra.mxu0 %v3304_v12  ;;  %5118 = vmatpush.bf16.msra.mxu3 %v3304_v12  ;;  %v3353_v34 = vld [vmem:[%s7689_s1 + $0x70] sm:$0xf0]  ;;  %v4771_v36 = vld [vmem:[%s7689_s1 + $0x6c] sm:$0xf0] }
   0xa   :  { %190 = vmatpush.bf16.msra.mxu1 %v3308_v16  ;;  %208 = vmatpush.bf16.msra.mxu2 %v3312_v17  ;;  %v3316_v37 = vor.u32 %v4758_v23, %v3313_v27  ;;  %v3356_v38 = vor.u32 %v4767_v33, %v3353_v34  ;;  %v3352_v39 = vor.u32 %v4771_v36, %v3351_v35  ;;  %v3319_v40 = vld [vmem:[%s7689_s1 + $0x10] sm:$0xf]  ;;  %v4759_v42 = vld [vmem:[%s7689_s1 + $0x14] sm:$0xf]  ;;  %v3327_v45 = vld [vmem:[%s7689_s1 + $0x18] sm:$0xf] }
   0xb   :  { %v4763_v41 = vld [vmem:[%s7689_s1 + $0x2c] sm:$0xf0]  ;;  %v3321_v44 = vld [vmem:[%s7689_s1 + $0x30] sm:$0xf0]  ;;  %v4764_v46 = vld [vmem:[%s7689_s1 + $0x34] sm:$0xf0] }
   0xc   :  { %3365 = vmatmul.msk.bf16.vlgmr.msra.gmra.mxu0 %vm158_vm0, %v5236_v24  ;;  %3366 = vmatmul.msk.bf16.vlgmr.msra.gmra.mxu3 %vm158_vm0, %v5238_v25  ;;  %v3328_v47 = vor.u32 %v4764_v46, %v3327_v45  ;;  %v4760_v48 = vld [vmem:[%s7689_s1 + $0x1c] sm:$0xf]  ;;  %v3320_v50 = vor.u32 %v4763_v41, %v3319_v40  ;;  %v3324_v51 = vor.u32 %v4759_v42, %v3321_v44  ;;  %v3495_v53 = vld [vmem:[%s7691_s3 + $0xe0] sm:$0xf]  ;;  %v4803_v54 = vld [vmem:[%s7691_s3 + $0xec] sm:$0xf0] }
   0xd   :  { %225 = vmatpush.bf16.msrb.mxu3 %v3348_v26  ;;  %3367 = vmatmul.msk.bf16.vlgmr.msra.gmra.mxu1 %vm158_vm0, %v5236_v24  ;;  %v3329_v49 = vld [vmem:[%s7689_s1 + $0x38] sm:$0xf0]  ;;  %v3623_v55 = vld [vmem:[%s7691_s3 + $0x1e0] sm:$0xf]  ;;  %v3496_v56 = vor.u32 %v4803_v54, %v3495_v53  ;;  %v4835_v57 = vld [vmem:[%s7691_s3 + $0x1ec] sm:$0xf0] }
   0xe   :  { %279 = vmatpush.bf16.msrb.mxu2 %v3360_v30  ;;  %261 = vmatpush.bf16.msrb.mxu1 %v3356_v38  ;;  %v3332_v52 = vor.u32 %v4760_v48, %v3329_v49  ;;  %v3479_v58 = vld [vmem:[%s7691_s3 + $0xc0] sm:$0xf]  ;;  %v4799_v59 = vld [vmem:[%s7691_s3 + $0xcc] sm:$0xf0]  ;;  %v3624_v60 = vor.u32 %v4835_v57, %v3623_v55 }
   0xf   :  { %3369 = vmatmul.msk.bf16.vlgmr.msra.gmra.mxu2 %vm158_vm0, %v5236_v24  ;;  %243 = vmatpush.bf16.msrb.mxu0 %v3352_v39  ;;  %v3607_v61 = vld [vmem:[%s7691_s3 + $0x1c0] sm:$0xf]  ;;  %v4831_v62 = vld [vmem:[%s7691_s3 + $0x1cc] sm:$0xf0]  ;;  %v3480_v0 = vor.u32 %v4799_v59, %v3479_v58 }
  0x10   :  { %v3751_v63 = vld [vmem:[%s7691_s3 + $0x2e0] sm:$0xf]  ;;  %v4867_v1 = vld [vmem:[%s7691_s3 + $0x2ec] sm:$0xf0]  ;;  %v3608_v2 = vor.u32 %v4831_v62, %v3607_v61 }
  0x11   :  { %226 = vmatpush.bf16.msrb.mxu3 %v3316_v37  ;;  %v3752_v3 = vor.u32 %v4867_v1, %v3751_v63  ;;  %v3463_v4 = vld [vmem:[%s7691_s3 + $0xa0] sm:$0xf]  ;;  %v4795_v5 = vld [vmem:[%s7691_s3 + $0xac] sm:$0xf0] }
  0x12   :  { %280 = vmatpush.bf16.msrb.mxu2 %v3328_v47  ;;  %262 = vmatpush.bf16.msrb.mxu1 %v3324_v51  ;;  %v3735_v6 = vld [vmem:[%s7691_s3 + $0x2c0] sm:$0xf]  ;;  %v4827_v8 = vld [vmem:[%s7691_s3 + $0x1ac] sm:$0xf0]  ;;  %v3464_v11 = vor.u32 %v4795_v5, %v3463_v4 }
  0x13   :  { %244 = vmatpush.bf16.msrb.mxu0 %v3320_v50  ;;  %v3591_v7 = vld [vmem:[%s7691_s3 + $0x1a0] sm:$0xf]  ;;  %v4863_v9 = vld [vmem:[%s7691_s3 + $0x2cc] sm:$0xf0] }
  0x14   :  { %v3736_v10 = vor.u32 %v4863_v9, %v3735_v6  ;;  %v3719_v12 = vld [vmem:[%s7691_s3 + $0x2a0] sm:$0xf]  ;;  %v4859_v13 = vld [vmem:[%s7691_s3 + $0x2ac] sm:$0xf0]  ;;  %v3592_v14 = vor.u32 %v4827_v8, %v3591_v7 }
  0x15   :  { %297 = vmatpush.bf16.msra.mxu3 %v3364_v43  ;;  %v3447_v15 = vld [vmem:[%s7691_s3 + $0x80] sm:$0xf]  ;;  %v4791_v16 = vld [vmem:[%s7691_s3 + $0x8c] sm:$0xf0]  ;;  %v3720_v19 = vor.u32 %v4859_v13, %v3719_v12 }
  0x16   :  { %1913 = vmatpush.bf16.msra.mxu1 %v3624_v60  ;;  %1931 = vmatpush.bf16.msra.mxu2 %v3752_v3  ;;  %v3575_v17 = vld [vmem:[%s7691_s3 + $0x180] sm:$0xf]  ;;  %v4823_v18 = vld [vmem:[%s7691_s3 + $0x18c] sm:$0xf0]  ;;  %v3448_v20 = vor.u32 %v4791_v16, %v3447_v15 }
  0x17   :  { %1895 = vmatpush.bf16.msra.mxu0 %v3496_v56  ;;  %v3576_v21 = vor.u32 %v4823_v18, %v3575_v17  ;;  %v3431_v22 = vld [vmem:[%s7691_s3 + $0x60] sm:$0xf]  ;;  %v4787_v23 = vld [vmem:[%s7691_s3 + $0x6c] sm:$0xf0] }
  0x18   :  { %v3432_v26 = vor.u32 %v4787_v23, %v3431_v22  ;;  %v4819_v27 = vld [vmem:[%s7691_s3 + $0x16c] sm:$0xf0]  ;;  %v3415_v31 = vld [vmem:[%s7691_s3 + $0x40] sm:$0xf] }
  0x19   :  { %298 = vmatpush.bf16.msra.mxu3 %v3332_v52  ;;  %v4855_v29 = vld [vmem:[%s7691_s3 + $0x28c] sm:$0xf0]  ;;  %v3543_v33 = vld [vmem:[%s7691_s3 + $0x140] sm:$0xf] }
  0x1a   :  { %1914 = vmatpush.bf16.msra.mxu1 %v3608_v2  ;;  %1932 = vmatpush.bf16.msra.mxu2 %v3736_v10  ;;  %v4783_v32 = vld [vmem:[%s7691_s3 + $0x4c] sm:$0xf0]  ;;  %v3879_v37 = vld [vmem:[%s7691_s3 + $0x3e0] sm:$0xf] }
  0x1b   :  { %1896 = vmatpush.bf16.msra.mxu0 %v3480_v0  ;;  %v3416_v34 = vor.u32 %v4783_v32, %v3415_v31  ;;  %v4815_v35 = vld [vmem:[%s7691_s3 + $0x14c] sm:$0xf0]  ;;  %v3687_v39 = vld [vmem:[%s7691_s3 + $0x260] sm:$0xf] }
  0x1c   :  { %3371 = vmatmul.msk.bf16.vlgmr.msrb.gmra.mxu3 %vm158_vm0, %v5236_v24  ;;  %3373 = vmatmul.msk.bf16.vlgmr.msrb.gmra.mxu0 %vm158_vm0, %v5236_v24  ;;  %v3544_v36 = vor.u32 %v4815_v35, %v3543_v33  ;;  %v4899_v38 = vld [vmem:[%s7691_s3 + $0x3ec] sm:$0xf0]  ;;  %v3399_v43 = vld [vmem:[%s7691_s3 + $0x20] sm:$0xf] }
  0x1d   :  { %3368 = vmatmul.msk.bf16.gmra.mxu1 %vm158_vm0, %v5238_v25  ;;  %v3880_v40 = vor.u32 %v4899_v38, %v3879_v37  ;;  %v4851_v41 = vld [vmem:[%s7691_s3 + $0x26c] sm:$0xf0]  ;;  %v3527_v45 = vld [vmem:[%s7691_s3 + $0x120] sm:$0xf] }
  0x1e   :  { %1915 = vmatpush.bf16.msra.mxu1 %v3592_v14  ;;  %1933 = vmatpush.bf16.msra.mxu2 %v3720_v19  ;;  %v3688_v42 = vor.u32 %v4851_v41, %v3687_v39  ;;  %v4779_v44 = vld [vmem:[%s7691_s3 + $0x2c] sm:$0xf0]  ;;  %v3863_v49 = vld [vmem:[%s7691_s3 + $0x3c0] sm:$0xf] }
  0x1f   :  { %3370 = vmatmul.msk.bf16.gmra.mxu2 %vm158_vm0, %v5238_v25  ;;  %1897 = vmatpush.bf16.msra.mxu0 %v3464_v11  ;;  %v3400_v46 = vor.u32 %v4779_v44, %v3399_v43  ;;  %v4811_v47 = vld [vmem:[%s7691_s3 + $0x12c] sm:$0xf0]  ;;  %v3671_v51 = vld [vmem:[%s7691_s3 + $0x240] sm:$0xf] }
  0x20   :  { %1949 = vmatpush.bf16.msrb.mxu3 %v3880_v40  ;;  %v3528_v48 = vor.u32 %v4811_v47, %v3527_v45  ;;  %v4895_v50 = vld [vmem:[%s7691_s3 + $0x3cc] sm:$0xf0]  ;;  %v3383_v55 = vld [vmem:[%s7691_s3] sm:$0xf] }
  0x21   :  { %v3864_v52 = vor.u32 %v4895_v50, %v3863_v49  ;;  %v4847_v53 = vld [vmem:[%s7691_s3 + $0x24c] sm:$0xf0]  ;;  %v3511_v57 = vld [vmem:[%s7691_s3 + $0x100] sm:$0xf] }
  0x22   :  { %1916 = vmatpush.bf16.msra.mxu1 %v3576_v21  ;;  %v3672_v54 = vor.u32 %v4847_v53, %v3671_v51  ;;  %v4775_v56 = vld [vmem:[%s7691_s3 + $0xc] sm:$0xf0]  ;;  %v3847_v61 = vld [vmem:[%s7691_s3 + $0x3a0] sm:$0xf] }
  0x23   :  { %1898 = vmatpush.bf16.msra.mxu0 %v3448_v20  ;;  %v3384_v58 = vor.u32 %v4775_v56, %v3383_v55  ;;  %v4807_v59 = vld [vmem:[%s7691_s3 + $0x10c] sm:$0xf0]  ;;  %v3655_v63 = vld [vmem:[%s7691_s3 + $0x220] sm:$0xf] }
  0x24   :  { %1950 = vmatpush.bf16.msrb.mxu3 %v3864_v52  ;;  %v3512_v60 = vor.u32 %v4807_v59, %v3511_v57  ;;  %v4891_v62 = vld [vmem:[%s7691_s3 + $0x3ac] sm:$0xf0]  ;;  %v4007_v3 = vld [vmem:[%s7691_s3 + $0x4e0] sm:$0xf] }
  0x25   :  { %v3848_v0 = vor.u32 %v4891_v62, %v3847_v61  ;;  %v4843_v1 = vld [vmem:[%s7691_s3 + $0x22c] sm:$0xf0]  ;;  %v4135_v5 = vld [vmem:[%s7691_s3 + $0x5e0] sm:$0xf] }
  0x26   :  { %v3656_v2 = vor.u32 %v4843_v1, %v3655_v63  ;;  %v4931_v4 = vld [vmem:[%s7691_s3 + $0x4ec] sm:$0xf0]  ;;  %v3831_v9 = vld [vmem:[%s7691_s3 + $0x380] sm:$0xf] }
  0x27   :  { %1899 = vmatpush.bf16.msra.mxu0 %v3432_v26  ;;  %v4008_v6 = vor.u32 %v4931_v4, %v4007_v3  ;;  %v4963_v7 = vld [vmem:[%s7691_s3 + $0x5ec] sm:$0xf0]  ;;  %v3639_v11 = vld [vmem:[%s7691_s3 + $0x200] sm:$0xf] }
  0x28   :  { %1951 = vmatpush.bf16.msrb.mxu3 %v3848_v0  ;;  %v4136_v8 = vor.u32 %v4963_v7, %v4135_v5  ;;  %v4887_v10 = vld [vmem:[%s7691_s3 + $0x38c] sm:$0xf0]  ;;  %v3991_v15 = vld [vmem:[%s7691_s3 + $0x4c0] sm:$0xf] }
  0x29   :  { %v3832_v12 = vor.u32 %v4887_v10, %v3831_v9  ;;  %v4839_v13 = vld [vmem:[%s7691_s3 + $0x20c] sm:$0xf0]  ;;  %v4119_v17 = vld [vmem:[%s7691_s3 + $0x5c0] sm:$0xf] }
  0x2a   :  { %v3640_v14 = vor.u32 %v4839_v13, %v3639_v11  ;;  %v4927_v16 = vld [vmem:[%s7691_s3 + $0x4cc] sm:$0xf0]  ;;  %v3815_v21 = vld [vmem:[%s7691_s3 + $0x360] sm:$0xf] }
  0x2b   :  { %1900 = vmatpush.bf16.msra.mxu0 %v3416_v34  ;;  %v3992_v18 = vor.u32 %v4927_v16, %v3991_v15  ;;  %v4959_v19 = vld [vmem:[%s7691_s3 + $0x5cc] sm:$0xf0]  ;;  %v4263_v23 = vld [vmem:[%s7691_s3 + $0x6e0] sm:$0xf] }
  0x2c   :  { %3372 = vmatmul.msk.bf16.gmra.mxu3 %vm158_vm0, %v5238_v25  ;;  %3374 = vmatmul.msk.bf16.gmra.mxu0 %vm158_vm0, %v5238_v25  ;;  %v4120_v20 = vor.u32 %v4959_v19, %v4119_v17  ;;  %v4883_v22 = vld [vmem:[%s7691_s3 + $0x36c] sm:$0xf0]  ;;  %v3799_v33 = vld [vmem:[%s7691_s3 + $0x340] sm:$0xf] }
  0x2d   :  { %3375 = vmatmul.msk.bf16.vlgmr.msrb.gmra.mxu1 %vm158_vm0, %v5236_v24  ;;  %1952 = vmatpush.bf16.msrb.mxu3 %v3832_v12  ;;  %v4995_v26 = vld [vmem:[%s7691_s3 + $0x6ec] sm:$0xf0]  ;;  %v4247_v35 = vld [vmem:[%s7691_s3 + $0x6c0] sm:$0xf] }
  0x2e   :  { %v4955_v31 = vld [vmem:[%s7691_s3 + $0x5ac] sm:$0xf0]  ;;  %v3959_v39 = vld [vmem:[%s7691_s3 + $0x480] sm:$0xf] }
  0x2f   :  { %3377 = vmatmul.msk.bf16.vlgmr.msrb.gmra.mxu2 %vm158_vm0, %v5236_v24  ;;  %1901 = vmatpush.bf16.msra.mxu0 %v3400_v46  ;;  %v4879_v34 = vld [vmem:[%s7691_s3 + $0x34c] sm:$0xf0]  ;;  %v4087_v41 = vld [vmem:[%s7691_s3 + $0x580] sm:$0xf] }
  0x30   :  { %v4991_v37 = vld [vmem:[%s7691_s3 + $0x6cc] sm:$0xf0]  ;;  %v3783_v45 = vld [vmem:[%s7691_s3 + $0x320] sm:$0xf] }
  0x31   :  { %v4248_v38 = vor.u32 %v4991_v37, %v4247_v35  ;;  %v4919_v40 = vld [vmem:[%s7691_s3 + $0x48c] sm:$0xf0]  ;;  %v4231_v47 = vld [vmem:[%s7691_s3 + $0x6a0] sm:$0xf] }
  0x32   :  { %v4951_v43 = vld [vmem:[%s7691_s3 + $0x58c] sm:$0xf0]  ;;  %v3943_v51 = vld [vmem:[%s7691_s3 + $0x460] sm:$0xf] }
  0x33   :  { %1902 = vmatpush.bf16.msra.mxu0 %v3384_v58  ;;  %v4088_v44 = vor.u32 %v4951_v43, %v4087_v41  ;;  %v4875_v46 = vld [vmem:[%s7691_s3 + $0x32c] sm:$0xf0]  ;;  %v4071_v53 = vld [vmem:[%s7691_s3 + $0x560] sm:$0xf] }
  0x34   :  { %v4987_v49 = vld [vmem:[%s7691_s3 + $0x6ac] sm:$0xf0]  ;;  %v3767_v59 = vld [vmem:[%s7691_s3 + $0x300] sm:$0xf] }
  0x35   :  { %v4232_v50 = vor.u32 %v4987_v49, %v4231_v47  ;;  %v4915_v52 = vld [vmem:[%s7691_s3 + $0x46c] sm:$0xf0]  ;;  %v4215_v61 = vld [vmem:[%s7691_s3 + $0x680] sm:$0xf] }
  0x36   :  { %v3944_v55 = vor.u32 %v4915_v52, %v3943_v51  ;;  %v4947_v56 = vld [vmem:[%s7691_s3 + $0x56c] sm:$0xf0]  ;;  %v3927_v3 = vld [vmem:[%s7691_s3 + $0x440] sm:$0xf] }
  0x37   :  { %1967 = vmatpush.bf16.msrb.mxu0 %v4008_v6  ;;  %v4072_v58 = vor.u32 %v4947_v56, %v4071_v53  ;;  %v4983_v1 = vld [vmem:[%s7691_s3 + $0x68c] sm:$0xf0]  ;;  %v4055_v5 = vld [vmem:[%s7691_s3 + $0x540] sm:$0xf] }
  0x38   :  { %v4911_v4 = vld [vmem:[%s7691_s3 + $0x44c] sm:$0xf0]  ;;  %v4391_v10 = vld [vmem:[%s7691_s3 + $0x7e0] sm:$0xf] }
  0x39   :  { %v3928_v7 = vor.u32 %v4911_v4, %v3927_v3  ;;  %v5027_v11 = vld [vmem:[%s7691_s3 + $0x7ec] sm:$0xf0]  ;;  %v3911_v19 = vld [vmem:[%s7691_s3 + $0x420] sm:$0xf] }
  0x3a   :  { %v4392_v13 = vor.u32 %v5027_v11, %v4391_v10  ;;  %v4979_v15 = vld [vmem:[%s7691_s3 + $0x66c] sm:$0xf0]  ;;  %v4167_v52 = vld [vmem:[%s7691_s3 + $0x620] sm:$0xf] }
  0x3b   :  { %1968 = vmatpush.bf16.msrb.mxu0 %v3992_v18  ;;  %v4975_v35 = vld [vmem:[%s7691_s3 + $0x64c] sm:$0xf0] }
  0x3c   :  { %3379 = vmatmul.msk.bf16.vlgmr.msra.gmra.mxu3 %vm158_vm0, %v5236_v24  ;;  %v3559_v24 = vld [vmem:[%s7691_s3 + $0x160] sm:$0xf]  ;;  %v5019_v49 = vld [vmem:[%s7691_s3 + $0x7ac] sm:$0xf0] }
  0x3d   :  { %3376 = vmatmul.msk.bf16.gmra.mxu1 %vm158_vm0, %v5238_v25  ;;  %v3560_v28 = vor.u32 %v4819_v27, %v3559_v24  ;;  %v3816_v24 = vor.u32 %v4883_v22, %v3815_v21  ;;  %v4264_v27 = vor.u32 %v4995_v26, %v4263_v23  ;;  %v4039_v21 = vld [vmem:[%s7691_s3 + $0x520] sm:$0xf]  ;;  %v4939_v26 = vld [vmem:[%s7691_s3 + $0x52c] sm:$0xf0] }
  0x3e   :  { %v4971_v53 = vld [vmem:[%s7691_s3 + $0x62c] sm:$0xf0] }
  0x3f   :  { %3378 = vmatmul.msk.bf16.gmra.mxu2 %vm158_vm0, %v5238_v25  ;;  %1917 = vmatpush.bf16.msra.mxu1 %v3560_v28  ;;  %v3975_v28 = vld [vmem:[%s7691_s3 + $0x4a0] sm:$0xf]  ;;  %v4967_v11 = vld [vmem:[%s7691_s3 + $0x60c] sm:$0xf0] }
  0x40   :  { %1953 = vmatpush.bf16.msrb.mxu3 %v3816_v24 }
  0x43   :  { %1918 = vmatpush.bf16.msra.mxu1 %v3544_v36  ;;  %v3800_v36 = vor.u32 %v4879_v34, %v3799_v33 }
  0x45   :  { %1954 = vmatpush.bf16.msrb.mxu3 %v3800_v36 }
  0x47   :  { %1919 = vmatpush.bf16.msra.mxu1 %v3528_v48  ;;  %v3784_v48 = vor.u32 %v4875_v46, %v3783_v45  ;;  %v4935_v45 = vld [vmem:[%s7691_s3 + $0x50c] sm:$0xf0] }
  0x49   :  { %1955 = vmatpush.bf16.msrb.mxu3 %v3784_v48  ;;  %v4359_v48 = vld [vmem:[%s7691_s3 + $0x7a0] sm:$0xf] }
  0x4a   :  { %v4360_v51 = vor.u32 %v5019_v49, %v4359_v48  ;;  %v4821_v49 = vld [vmem:[%s7691_s3 + $0x184] sm:$0xf] }
  0x4b   :  { %1920 = vmatpush.bf16.msra.mxu1 %v3512_v60  ;;  %v4871_v60 = vld [vmem:[%s7691_s3 + $0x30c] sm:$0xf0] }
  0x4c   :  { %3380 = vmatmul.msk.bf16.gmra.mxu3 %vm158_vm0, %v5238_v25  ;;  %v3703_v25 = vld [vmem:[%s7691_s3 + $0x280] sm:$0xf]  ;;  %v3768_v0 = vor.u32 %v4871_v60, %v3767_v59  ;;  %v3497_v59 = vld [vmem:[%s7691_s3 + $0xf0] sm:$0xf0]  ;;  %v4833_v60 = vld [vmem:[%s7691_s3 + $0x1e4] sm:$0xf] }
  0x4d   :  { %v3704_v30 = vor.u32 %v4855_v29, %v3703_v25  ;;  %v4923_v25 = vld [vmem:[%s7691_s3 + $0x4ac] sm:$0xf0] }
  0x4e   :  { %v3976_v29 = vor.u32 %v4923_v25, %v3975_v28  ;;  %1956 = vmatpush.bf16.msrb.mxu3 %v3768_v0  ;;  %v4040_v28 = vor.u32 %v4939_v26, %v4039_v21  ;;  %v4375_v25 = vld [vmem:[%s7691_s3 + $0x7c0] sm:$0xf]  ;;  %v3609_v21 = vld [vmem:[%s7691_s3 + $0x1d0] sm:$0xf0]  ;;  %v4865_v26 = vld [vmem:[%s7691_s3 + $0x2e4] sm:$0xf] }
  0x4f   :  { %1934 = vmatpush.bf16.msra.mxu2 %v3704_v30  ;;  %1985 = vmatpush.bf16.msrb.mxu1 %v4136_v8  ;;  %v4103_v30 = vld [vmem:[%s7691_s3 + $0x5a0] sm:$0xf]  ;;  %v4943_v8 = vld [vmem:[%s7691_s3 + $0x54c] sm:$0xf0] }
  0x50   :  { %v4104_v32 = vor.u32 %v4955_v31, %v4103_v30  ;;  %1969 = vmatpush.bf16.msrb.mxu0 %v3976_v29  ;;  %v4056_v9 = vor.u32 %v4943_v8, %v4055_v5  ;;  %v5023_v29 = vld [vmem:[%s7691_s3 + $0x7cc] sm:$0xf0]  ;;  %v4183_v30 = vld [vmem:[%s7691_s3 + $0x640] sm:$0xf] }
  0x51   :  { %v4376_v34 = vor.u32 %v5023_v29, %v4375_v25  ;;  %v4343_v5 = vld [vmem:[%s7691_s3 + $0x780] sm:$0xf]  ;;  %v4793_v29 = vld [vmem:[%s7691_s3 + $0xa4] sm:$0xf] }
  0x52   :  { %2021 = vmatpush.bf16.msra.mxu3 %v4392_v13  ;;  %v4151_v8 = vld [vmem:[%s7691_s3 + $0x600] sm:$0xf] }
  0x53   :  { %1935 = vmatpush.bf16.msra.mxu2 %v3688_v42  ;;  %1986 = vmatpush.bf16.msrb.mxu1 %v4120_v20  ;;  %v3960_v42 = vor.u32 %v4919_v40, %v3959_v39  ;;  %v4907_v20 = vld [vmem:[%s7691_s3 + $0x42c] sm:$0xf0]  ;;  %v3895_v39 = vld [vmem:[%s7691_s3 + $0x400] sm:$0xf]  ;;  %v4152_v13 = vor.u32 %v4967_v11, %v4151_v8  ;;  %v4817_v8 = vld [vmem:[%s7691_s3 + $0x164] sm:$0xf] }
  0x54   :  { %v3912_v24 = vor.u32 %v4907_v20, %v3911_v19  ;;  %v4903_v40 = vld [vmem:[%s7691_s3 + $0x40c] sm:$0xf0]  ;;  %v4829_v20 = vld [vmem:[%s7691_s3 + $0x1c4] sm:$0xf] }
  0x55   :  { %1970 = vmatpush.bf16.msrb.mxu0 %v3960_v42  ;;  %v3896_v43 = vor.u32 %v4903_v40, %v3895_v39  ;;  %v4311_v39 = vld [vmem:[%s7691_s3 + $0x740] sm:$0xf]  ;;  %v5007_v40 = vld [vmem:[%s7691_s3 + $0x74c] sm:$0xf0] }
  0x56   :  { %2022 = vmatpush.bf16.msra.mxu3 %v4376_v34 }
  0x57   :  { %1936 = vmatpush.bf16.msra.mxu2 %v3672_v54  ;;  %1987 = vmatpush.bf16.msrb.mxu1 %v4104_v32  ;;  %v5587_v54 = vld [vmem:[%s7692_s2] sm:$0xff] }
  0x58   :  { %v5602_v62 = vperm.slane %v5587_v54, 1  ;;  %v5617_v6 = vperm.slane %v5587_v54, 0  ;;  %v5648_v22 = vperm.slane %v5587_v54, 2  ;;  %v5826_v11 = vperm.slane %v5587_v54, 4 }
  0x59   :  { %1971 = vmatpush.bf16.msrb.mxu0 %v3944_v55 }
  0x5a   :  { %2023 = vmatpush.bf16.msra.mxu3 %v4360_v51 }
  0x5b   :  { %1937 = vmatpush.bf16.msra.mxu2 %v3656_v2  ;;  %1988 = vmatpush.bf16.msrb.mxu1 %v4088_v44  ;;  %v4216_v2 = vor.u32 %v4983_v1, %v4215_v61  ;;  %v4023_v44 = vld [vmem:[%s7691_s3 + $0x500] sm:$0xf]  ;;  %v3625_v1 = vld [vmem:[%s7691_s3 + $0x1f0] sm:$0xf0] }
  0x5c   :  { %v4024_v47 = vor.u32 %v4935_v45, %v4023_v44  ;;  %v3628_v4 = vor.u32 %v4833_v60, %v3625_v1  ;;  %v4312_v45 = vor.u32 %v5007_v40, %v4311_v39  ;;  %v4857_v60 = vld [vmem:[%s7691_s3 + $0x2a4] sm:$0xf]  ;;  %v3689_v39 = vld [vmem:[%s7691_s3 + $0x270] sm:$0xf0] }
  0x5d   :  { %1972 = vmatpush.bf16.msrb.mxu0 %v3928_v7  ;;  %v5015_v7 = vld [vmem:[%s7691_s3 + $0x78c] sm:$0xf0] }
  0x5e   :  { %v4344_v10 = vor.u32 %v5015_v7, %v4343_v5  ;;  %v4785_v5 = vld [vmem:[%s7691_s3 + $0x64] sm:$0xf]  ;;  %v3433_v7 = vld [vmem:[%s7691_s3 + $0x70] sm:$0xf0] }
  0x5f   :  { %1938 = vmatpush.bf16.msra.mxu2 %v3640_v14  ;;  %1989 = vmatpush.bf16.msrb.mxu1 %v4072_v58  ;;  %v4199_v14 = vld [vmem:[%s7691_s3 + $0x660] sm:$0xf]  ;;  %v4801_v58 = vld [vmem:[%s7691_s3 + $0xe4] sm:$0xf] }
  0x60   :  { %v4200_v18 = vor.u32 %v4979_v15, %v4199_v14  ;;  %v3500_v0 = vor.u32 %v4801_v58, %v3497_v59  ;;  %v4797_v14 = vld [vmem:[%s7691_s3 + $0xc4] sm:$0xf]  ;;  %v3481_v15 = vld [vmem:[%s7691_s3 + $0xd0] sm:$0xf0]  ;;  %2024 = vmatpush.bf16.msra.mxu3 %v4344_v10  ;;  %v5003_v59 = vld [vmem:[%s7691_s3 + $0x72c] sm:$0xf0] }
  0x61   :  { %1973 = vmatpush.bf16.msrb.mxu0 %v3912_v24  ;;  %v3484_v19 = vor.u32 %v4797_v14, %v3481_v15  ;;  %v3612_v24 = vor.u32 %v4829_v20, %v3609_v21 }
  0x63   :  { %2003 = vmatpush.bf16.msrb.mxu2 %v4264_v27  ;;  %1990 = vmatpush.bf16.msrb.mxu1 %v4056_v9 }
  0x65   :  { %1974 = vmatpush.bf16.msrb.mxu0 %v3896_v43  ;;  %v5780_v43 = vperm.slane %v5587_v54, 3 }
  0x67   :  { %2004 = vmatpush.bf16.msrb.mxu2 %v4248_v38  ;;  %1991 = vmatpush.bf16.msrb.mxu1 %v4040_v28  ;;  %v4184_v38 = vor.u32 %v4975_v35, %v4183_v30  ;;  %v3465_v30 = vld [vmem:[%s7691_s3 + $0xb0] sm:$0xf0]  ;;  %v4825_v35 = vld [vmem:[%s7691_s3 + $0x1a4] sm:$0xf] }
  0x68   :  { %v3468_v34 = vor.u32 %v4793_v29, %v3465_v30  ;;  %v4813_v29 = vld [vmem:[%s7691_s3 + $0x144] sm:$0xf] }
  0x6b   :  { %2005 = vmatpush.bf16.msrb.mxu2 %v4232_v50  ;;  %1992 = vmatpush.bf16.msrb.mxu1 %v4024_v47  ;;  %v4789_v47 = vld [vmem:[%s7691_s3 + $0x84] sm:$0xf] }
  0x6f   :  { %2006 = vmatpush.bf16.msrb.mxu2 %v4216_v2 }
  0x73   :  { %2007 = vmatpush.bf16.msrb.mxu2 %v4200_v18 }
  0x77   :  { %2008 = vmatpush.bf16.msrb.mxu2 %v4184_v38 }
  0x89   :  { %v174_v57 = vpop.f32.mrf.mxu0 }
  0x8a   :  { %v192_v63 = vpop.f32.mrf.mxu1  ;;  %v175_v12 = vadd.f32 %v174_v57, %v5617_v6  ;;  %v4168_v57 = vor.u32 %v4971_v53, %v4167_v52  ;;  %v3577_v52 = vld [vmem:[%s7691_s3 + $0x190] sm:$0xf0]  ;;  %v4295_v53 = vld [vmem:[%s7691_s3 + $0x720] sm:$0xf] }
  0x8b   :  { %v193_v16 = vadd.f32 %v192_v63, %v5602_v62  ;;  %v3580_v58 = vor.u32 %v4821_v49, %v3577_v52  ;;  %v4296_v1 = vor.u32 %v5003_v59, %v4295_v53  ;;  %v3529_v52 = vld [vmem:[%s7691_s3 + $0x130] sm:$0xf0] }
  0x8c   :  { %v309_v31 = vmax.f32 %v175_v12, 0.0  ;;  %2009 = vmatpush.bf16.msrb.mxu2 %v4168_v57  ;;  %v3865_v59 = vld [vmem:[%s7691_s3 + $0x3d0] sm:$0xf0] }
  0x8d   :  { %v310_v36 = vmax.f32 %v193_v16, 0.0 }
  0x8f   :  { %v5636_v17 = vpop.f32.mrf.mxu3 }
  0x90   :  { %v180_v16 = vadd.f32 %v5636_v17, %v5617_v6  ;;  %2010 = vmatpush.bf16.msrb.mxu2 %v4152_v13  ;;  %v3561_v13 = vld [vmem:[%s7691_s3 + $0x170] sm:$0xf0] }
  0x91   :  { %v176_v27 = vpop.f32.mrf.mxu0  ;;  %v3564_v15 = vor.u32 %v4817_v8, %v3561_v13  ;;  %v3385_v8 = vld [vmem:[%s7691_s3 + $0x10] sm:$0xf0] }
  0x92   :  { %v210_v23 = vpop.f32.mrf.mxu2  ;;  %v177_v32 = vadd.f32 %v176_v27, %v5617_v6  ;;  %v194_v33 = vpop.f32.mrf.mxu1  ;;  %v4327_v6 = vld [vmem:[%s7691_s3 + $0x760] sm:$0xf]  ;;  %v3753_v27 = vld [vmem:[%s7691_s3 + $0x2f0] sm:$0xf0] }
  0x93   :  { %v195_v37 = vadd.f32 %v194_v33, %v5602_v62  ;;  %v211_v41 = vadd.f32 %v210_v23, %v5648_v22  ;;  %v3756_v25 = vor.u32 %v4865_v26, %v3753_v27 }
  0x94   :  { %v317_v42 = vmax.f32 %v177_v32, 0.0 }
  0x95   :  { %v318_v46 = vmax.f32 %v195_v37, 0.0  ;;  %v311_v61 = vmax.f32 %v211_v41, 0.0  ;;  %v4861_v41 = vld [vmem:[%s7691_s3 + $0x2c4] sm:$0xf] }
  0x96   :  { %v5686_v50 = vpack.c.bf16 %v317_v42, %v309_v31  ;;  %v325_v31 = vmax.f32 %v180_v16, 0.0  ;;  %v4279_v16 = vld [vmem:[%s7691_s3 + $0x700] sm:$0xf] }
  0x97   :  { %v5694_v55 = vpack.c.bf16 %v318_v46, %v310_v36  ;;  %v181_v56 = vpop.f32.mrf.mxu3  ;;  %v3593_v36 = vld [vmem:[%s7691_s3 + $0x1b0] sm:$0xf0] }
  0x98   :  { %1903 = vmatmul.bf16.vlgmr.msra.gmra.mxu0 %v5686_v50  ;;  %v3596_v38 = vor.u32 %v4825_v35, %v3593_v36  ;;  %v3737_v46 = vld [vmem:[%s7691_s3 + $0x2d0] sm:$0xf0]  ;;  %v5800_v56 = vpack.c.bf16 %v325_v31, %v325_v31  ;;  %v4897_v36 = vld [vmem:[%s7691_s3 + $0x3e4] sm:$0xf] }
  0x99   :  { %1921 = vmatmul.bf16.vlgmr.msra.gmra.mxu1 %v5694_v55  ;;  %v5711_v3 = vpop.f32.mrf.mxu0  ;;  %2039 = vmatpush.bf16.msra.mxu0 %v3500_v0  ;;  %v3740_v48 = vor.u32 %v4861_v41, %v3737_v46  ;;  %v4809_v46 = vld [vmem:[%s7691_s3 + $0x124] sm:$0xf] }
  0x9a   :  { %v212_v63 = vpop.f32.mrf.mxu2  ;;  %v197_v9 = vpop.f32.mrf.mxu1  ;;  %2057 = vmatpush.bf16.msra.mxu1 %v3628_v4  ;;  %v247_v31 = vadd.f32 %v5711_v3, %v5826_v11  ;;  %v3532_v53 = vor.u32 %v4809_v46, %v3529_v52  ;;  %v4925_v46 = vld [vmem:[%s7691_s3 + $0x4c4] sm:$0xf]  ;;  %v4121_v52 = vld [vmem:[%s7691_s3 + $0x5d0] sm:$0xf0] }
  0x9b   :  { %v213_v2 = vadd.f32 %v212_v63, %v5648_v22  ;;  %v198_v18 = vadd.f32 %v197_v9, %v5602_v62  ;;  %v5011_v62 = vld [vmem:[%s7691_s3 + $0x76c] sm:$0xf0] }
  0x9c   :  { %v4328_v17 = vor.u32 %v5011_v62, %v4327_v6 }
  0x9d   :  { %v319_v12 = vmax.f32 %v213_v2, 0.0  ;;  %2040 = vmatpush.bf16.msra.mxu0 %v3484_v19  ;;  %v326_v32 = vmax.f32 %v198_v18, 0.0  ;;  %v4999_v18 = vld [vmem:[%s7691_s3 + $0x70c] sm:$0xf0]  ;;  %v4853_v19 = vld [vmem:[%s7691_s3 + $0x284] sm:$0xf] }
  0x9e   :  { %2058 = vmatpush.bf16.msra.mxu1 %v3612_v24  ;;  %2025 = vmatpush.bf16.msra.mxu3 %v4328_v17  ;;  %v5844_v24 = vperm.slane %v5587_v54, 5  ;;  %v4280_v62 = vor.u32 %v4999_v18, %v4279_v16  ;;  %v3705_v17 = vld [vmem:[%s7691_s3 + $0x290] sm:$0xf0]  ;;  %v4889_v18 = vld [vmem:[%s7691_s3 + $0x3a4] sm:$0xf] }
  0x9f   :  { %v5740_v23 = vpack.c.bf16 %v319_v12, %v311_v61  ;;  %v228_v28 = vpop.f32.mrf.mxu3  ;;  %v5802_v57 = vpack.c.bf16 %v326_v32, %v326_v32  ;;  %v3721_v61 = vld [vmem:[%s7691_s3 + $0x2b0] sm:$0xf0]  ;;  %v3436_v12 = vor.u32 %v4785_v5, %v3433_v7  ;;  %v3708_v27 = vor.u32 %v4853_v19, %v3705_v17  ;;  %v4773_v7 = vld [vmem:[%s7691_s3 + $0x4] sm:$0xf] }
  0xa0   :  { %v229_v0 = vadd.f32 %v228_v28, %v5780_v43  ;;  %v3724_v2 = vor.u32 %v4857_v60, %v3721_v61  ;;  %v4781_v28 = vld [vmem:[%s7691_s3 + $0x44] sm:$0xf]  ;;  %v3388_v13 = vor.u32 %v4773_v7, %v3385_v8  ;;  %v3513_v16 = vld [vmem:[%s7691_s3 + $0x110] sm:$0xf0] }
  0xa1   :  { %1939 = vmatmul.bf16.vlgmr.msra.gmra.mxu2 %v5740_v23  ;;  %v5767_v37 = vpop.f32.mrf.mxu0  ;;  %2041 = vmatpush.bf16.msra.mxu0 %v3468_v34  ;;  %v3545_v34 = vld [vmem:[%s7691_s3 + $0x150] sm:$0xf0]  ;;  %v4845_v60 = vld [vmem:[%s7691_s3 + $0x244] sm:$0xf] }
  0xa2   :  { %v215_v33 = vpop.f32.mrf.mxu2  ;;  %2075 = vmatpush.bf16.msra.mxu2 %v3756_v25  ;;  %v199_v44 = vpop.f32.mrf.mxu1  ;;  %2059 = vmatpush.bf16.msra.mxu1 %v3596_v38  ;;  %v312_v20 = vmax.f32 %v229_v0, 0.0  ;;  %v3417_v25 = vld [vmem:[%s7691_s3 + $0x50] sm:$0xf0]  ;;  %v249_v32 = vadd.f32 %v5767_v37, %v5826_v11  ;;  %v3548_v35 = vor.u32 %v4813_v29, %v3545_v34  ;;  %v4849_v37 = vld [vmem:[%s7691_s3 + $0x264] sm:$0xf] }
  0xa3   :  { %v216_v42 = vadd.f32 %v215_v33, %v5648_v22  ;;  %v3449_v22 = vld [vmem:[%s7691_s3 + $0x90] sm:$0xf0]  ;;  %2026 = vmatpush.bf16.msra.mxu3 %v4312_v45  ;;  %v3420_v33 = vor.u32 %v4781_v28, %v3417_v25  ;;  %v4777_v44 = vld [vmem:[%s7691_s3 + $0x24] sm:$0xf] }
  0xa4   :  { %v3452_v51 = vor.u32 %v4789_v47, %v3449_v22  ;;  %v3881_v38 = vld [vmem:[%s7691_s3 + $0x3f0] sm:$0xf0]  ;;  %v313_v47 = vmax.f32 %v247_v31, 0.0  ;;  %v321_v49 = vmax.f32 %v249_v32, 0.0  ;;  %v4929_v25 = vld [vmem:[%s7691_s3 + $0x4e4] sm:$0xf] }
  0xa5   :  { %v327_v63 = vmax.f32 %v216_v42, 0.0  ;;  %v3884_v3 = vor.u32 %v4897_v36, %v3881_v38  ;;  %v3692_v42 = vor.u32 %v4849_v37, %v3689_v39  ;;  %v3401_v45 = vld [vmem:[%s7691_s3 + $0x30] sm:$0xf0]  ;;  %v4961_v31 = vld [vmem:[%s7691_s3 + $0x5e4] sm:$0xf] }
  0xa6   :  { %2076 = vmatpush.bf16.msra.mxu2 %v3740_v48  ;;  %2042 = vmatpush.bf16.msra.mxu0 %v3452_v51  ;;  %v5894_v48 = vperm.slane %v5587_v54, 6  ;;  %v3404_v51 = vor.u32 %v4777_v44, %v3401_v45  ;;  %v4009_v29 = vld [vmem:[%s7691_s3 + $0x4f0] sm:$0xf0]  ;;  %v4885_v37 = vld [vmem:[%s7691_s3 + $0x384] sm:$0xf] }
  0xa7   :  { %v230_v4 = vpop.f32.mrf.mxu3  ;;  %2060 = vmatpush.bf16.msra.mxu1 %v3580_v58  ;;  %2027 = vmatpush.bf16.msra.mxu3 %v4296_v1  ;;  %v5849_v26 = vpack.c.bf16 %v327_v63, %v327_v63  ;;  %v4893_v58 = vld [vmem:[%s7691_s3 + $0x3c4] sm:$0xf]  ;;  %v3673_v1 = vld [vmem:[%s7691_s3 + $0x250] sm:$0xf0] }
  0xa8   :  { %v231_v10 = vadd.f32 %v230_v4, %v5780_v43  ;;  %1908 = vmatmul.bf16.gmra.mxu0 %v5800_v56  ;;  %v3868_v0 = vor.u32 %v4893_v58, %v3865_v59  ;;  %v3676_v5 = vor.u32 %v4845_v60, %v3673_v1  ;;  %v4137_v36 = vld [vmem:[%s7691_s3 + $0x5f0] sm:$0xf0]  ;;  %v4993_v1 = vld [vmem:[%s7691_s3 + $0x6e4] sm:$0xf] }
  0xa9   :  { %1926 = vmatmul.bf16.gmra.mxu1 %v5802_v57  ;;  %v5832_v14 = vpop.f32.mrf.mxu0  ;;  %v3833_v39 = vld [vmem:[%s7691_s3 + $0x390] sm:$0xf0]  ;;  %v4921_v7 = vld [vmem:[%s7691_s3 + $0x4a4] sm:$0xf] }
  0xaa   :  { %v217_v9 = vpop.f32.mrf.mxu2  ;;  %2077 = vmatpush.bf16.msra.mxu2 %v3724_v2  ;;  %v320_v21 = vmax.f32 %v231_v10, 0.0  ;;  %v264_v6 = vpop.f32.mrf.mxu1  ;;  %2043 = vmatpush.bf16.msra.mxu0 %v3436_v12  ;;  %v5920_v12 = vpack.c.bf16 %v321_v49, %v313_v47  ;;  %v3836_v44 = vor.u32 %v4885_v37, %v3833_v39  ;;  %v3641_v45 = vld [vmem:[%s7691_s3 + $0x210] sm:$0xf0] }
  0xab   :  { %2061 = vmatpush.bf16.msra.mxu1 %v3564_v15  ;;  %2028 = vmatpush.bf16.msra.mxu3 %v4280_v62  ;;  %v265_v40 = vadd.f32 %v264_v6, %v5844_v24  ;;  %v4805_v15 = vld [vmem:[%s7691_s3 + $0x104] sm:$0xf]  ;;  %v3657_v62 = vld [vmem:[%s7691_s3 + $0x230] sm:$0xf0] }
  0xac   :  { %v5860_v30 = vpack.c.bf16 %v320_v21, %v312_v20  ;;  %v3849_v20 = vld [vmem:[%s7691_s3 + $0x3b0] sm:$0xf0]  ;;  %v4841_v21 = vld [vmem:[%s7691_s3 + $0x224] sm:$0xf] }
  0xad   :  { %v314_v2 = vmax.f32 %v265_v40, 0.0  ;;  %v3852_v6 = vor.u32 %v4889_v18, %v3849_v20  ;;  %v3660_v28 = vor.u32 %v4841_v21, %v3657_v62  ;;  %v4837_v40 = vld [vmem:[%s7691_s3 + $0x204] sm:$0xf]  ;;  %v3993_v47 = vld [vmem:[%s7691_s3 + $0x4d0] sm:$0xf0]  ;;  %v6030_v62 = vperm.slane %v5587_v54, 7 }
  0xae   :  { %2078 = vmatpush.bf16.msra.mxu2 %v3708_v27  ;;  %1957 = vmatmul.bf16.vlgmr.msrb.gmra.mxu3 %v5860_v30  ;;  %v3817_v60 = vld [vmem:[%s7691_s3 + $0x370] sm:$0xf0]  ;;  %v4989_v20 = vld [vmem:[%s7691_s3 + $0x6c4] sm:$0xf] }
  0xaf   :  { %2044 = vmatpush.bf16.msra.mxu0 %v3420_v33  ;;  %v233_v41 = vpop.f32.mrf.mxu3  ;;  %2062 = vmatpush.bf16.msra.mxu1 %v3548_v35  ;;  %v4012_v35 = vor.u32 %v4929_v25, %v4009_v29  ;;  %v3977_v8 = vld [vmem:[%s7691_s3 + $0x4b0] sm:$0xf0] }
  0xb0   :  { %2093 = vmatpush.bf16.msrb.mxu3 %v3884_v3  ;;  %v234_v9 = vadd.f32 %v233_v41, %v5780_v43  ;;  %v3516_v43 = vor.u32 %v4805_v15, %v3513_v16  ;;  %v4140_v3 = vor.u32 %v4961_v31, %v4137_v36  ;;  %v252_v41 = vadd.f32 %v5832_v14, %v5826_v11  ;;  %v4105_v15 = vld [vmem:[%s7691_s3 + $0x5b0] sm:$0xf0]  ;;  %v4877_v16 = vld [vmem:[%s7691_s3 + $0x344] sm:$0xf] }
  0xb1   :  { %1944 = vmatmul.bf16.gmra.mxu2 %v5849_v26  ;;  %v253_v61 = vpop.f32.mrf.mxu0  ;;  %v3644_v11 = vor.u32 %v4837_v40, %v3641_v45  ;;  %v3996_v14 = vor.u32 %v4925_v46, %v3993_v47  ;;  %v3801_v18 = vld [vmem:[%s7691_s3 + $0x350] sm:$0xf0]  ;;  %v4949_v31 = vld [vmem:[%s7691_s3 + $0x584] sm:$0xf] }
  0xb2   :  { %v282_v22 = vpop.f32.mrf.mxu2  ;;  %2079 = vmatpush.bf16.msra.mxu2 %v3692_v42  ;;  %v266_v63 = vpop.f32.mrf.mxu1  ;;  %v328_v32 = vmax.f32 %v234_v9, 0.0  ;;  %v329_v61 = vmax.f32 %v252_v41, 0.0  ;;  %v4953_v9 = vld [vmem:[%s7691_s3 + $0x5a4] sm:$0xf]  ;;  %v4249_v21 = vld [vmem:[%s7691_s3 + $0x6d0] sm:$0xf0] }
  0xb3   :  { %2045 = vmatpush.bf16.msra.mxu0 %v3404_v51  ;;  %v267_v4 = vadd.f32 %v266_v63, %v5844_v24  ;;  %2063 = vmatpush.bf16.msra.mxu1 %v3532_v53  ;;  %v283_v10 = vadd.f32 %v282_v22, %v5894_v48  ;;  %v4957_v51 = vld [vmem:[%s7691_s3 + $0x5c4] sm:$0xf]  ;;  %v4252_v25 = vor.u32 %v4989_v20, %v4249_v21  ;;  %v3961_v29 = vld [vmem:[%s7691_s3 + $0x490] sm:$0xf0] }
  0xb4   :  { %2094 = vmatpush.bf16.msrb.mxu3 %v3868_v0  ;;  %v5984_v53 = vpack.c.bf16 %v328_v32, %v328_v32  ;;  %v4124_v58 = vor.u32 %v4957_v51, %v4121_v52  ;;  %v4089_v54 = vld [vmem:[%s7691_s3 + $0x590] sm:$0xf0]  ;;  %v4985_v36 = vld [vmem:[%s7691_s3 + $0x6a4] sm:$0xf] }
  0xb5   :  { %v322_v19 = vmax.f32 %v267_v4, 0.0  ;;  %v315_v33 = vmax.f32 %v283_v10, 0.0  ;;  %v3945_v45 = vld [vmem:[%s7691_s3 + $0x470] sm:$0xf0]  ;;  %v4945_v46 = vld [vmem:[%s7691_s3 + $0x564] sm:$0xf] }
  0xb6   :  { %2080 = vmatpush.bf16.msra.mxu2 %v3676_v5  ;;  %v4869_v51 = vld [vmem:[%s7691_s3 + $0x304] sm:$0xf]  ;;  %v3769_v52 = vld [vmem:[%s7691_s3 + $0x310] sm:$0xf0] }
  0xb7   :  { %2046 = vmatpush.bf16.msra.mxu0 %v3388_v13  ;;  %v5940_v17 = vpack.c.bf16 %v322_v19, %v314_v2  ;;  %v235_v27 = vpop.f32.mrf.mxu3  ;;  %2064 = vmatpush.bf16.msra.mxu1 %v3516_v43  ;;  %v4265_v2 = vld [vmem:[%s7691_s3 + $0x6f0] sm:$0xf0]  ;;  %v3980_v13 = vor.u32 %v4921_v7, %v3977_v8  ;;  %v4108_v19 = vor.u32 %v4953_v9, %v4105_v15  ;;  %v4905_v21 = vld [vmem:[%s7691_s3 + $0x424] sm:$0xf] }
  0xb8   :  { %1975 = vmatmul.bf16.vlgmr.msrb.gmra.mxu0 %v5920_v12  ;;  %2095 = vmatpush.bf16.msrb.mxu3 %v3852_v6  ;;  %v4268_v5 = vor.u32 %v4993_v1, %v4265_v2  ;;  %v3804_v43 = vor.u32 %v4877_v16, %v3801_v18  ;;  %v4917_v6 = vld [vmem:[%s7691_s3 + $0x484] sm:$0xf]  ;;  %v4057_v7 = vld [vmem:[%s7691_s3 + $0x550] sm:$0xf0] }
  0xb9   :  { %1993 = vmatmul.bf16.vlgmr.msrb.gmra.mxu1 %v5940_v17  ;;  %v3964_v32 = vor.u32 %v4917_v6, %v3961_v29  ;;  %v4393_v15 = vld [vmem:[%s7691_s3 + $0x7f0] sm:$0xf0]  ;;  %v4977_v16 = vld [vmem:[%s7691_s3 + $0x664] sm:$0xf] }
  0xba   :  { %v284_v34 = vpop.f32.mrf.mxu2  ;;  %2081 = vmatpush.bf16.msra.mxu2 %v3660_v28  ;;  %v269_v42 = vpop.f32.mrf.mxu1  ;;  %v3913_v6 = vld [vmem:[%s7691_s3 + $0x430] sm:$0xf0]  ;;  %v5021_v29 = vld [vmem:[%s7691_s3 + $0x7c4] sm:$0xf] }
  0xbb   :  { %v285_v38 = vadd.f32 %v284_v34, %v5894_v48  ;;  %2111 = vmatpush.bf16.msrb.mxu0 %v4012_v35  ;;  %v270_v49 = vadd.f32 %v269_v42, %v5844_v24  ;;  %2129 = vmatpush.bf16.msrb.mxu1 %v4140_v3  ;;  %v4881_v24 = vld [vmem:[%s7691_s3 + $0x364] sm:$0xf]  ;;  %v4092_v34 = vor.u32 %v4949_v31, %v4089_v54  ;;  %v3785_v35 = vld [vmem:[%s7691_s3 + $0x330] sm:$0xf0] }
  0xbc   :  { %2096 = vmatpush.bf16.msrb.mxu3 %v3836_v44  ;;  %v3820_v0 = vor.u32 %v4881_v24, %v3817_v60  ;;  %v4913_v44 = vld [vmem:[%s7691_s3 + $0x464] sm:$0xf]  ;;  %v4377_v31 = vld [vmem:[%s7691_s3 + $0x7d0] sm:$0xf0] }
  0xbd   :  { %v323_v22 = vmax.f32 %v285_v38, 0.0  ;;  %v330_v63 = vmax.f32 %v270_v49, 0.0  ;;  %v4233_v38 = vld [vmem:[%s7691_s3 + $0x6b0] sm:$0xf0]  ;;  %v3948_v49 = vor.u32 %v4913_v44, %v3945_v45  ;;  %v4380_v54 = vor.u32 %v5021_v29, %v4377_v31  ;;  %v3599_v29 = vld [vmem:[%s7691_s3 + $0x1a8] sm:$0xf] }
  0xbe   :  { %2082 = vmatpush.bf16.msra.mxu2 %v3644_v11  ;;  %1962 = vmatmul.bf16.gmra.mxu3 %v5984_v53  ;;  %v4236_v39 = vor.u32 %v4985_v36, %v4233_v38  ;;  %v4073_v11 = vld [vmem:[%s7691_s3 + $0x570] sm:$0xf0] }
  0xbf   :  { %v5986_v59 = vpack.c.bf16 %v323_v22, %v315_v33  ;;  %2112 = vmatpush.bf16.msrb.mxu0 %v3996_v14  ;;  %v300_v4 = vpop.f32.mrf.mxu3  ;;  %2130 = vmatpush.bf16.msrb.mxu1 %v4124_v58  ;;  %v6045_v33 = vpack.c.bf16 %v329_v61, %v329_v61  ;;  %v6056_v3 = vpack.c.bf16 %v330_v63, %v330_v63  ;;  %v4981_v58 = vld [vmem:[%s7691_s3 + $0x684] sm:$0xf]  ;;  %v4217_v63 = vld [vmem:[%s7691_s3 + $0x690] sm:$0xf0] }
  0xc0   :  { %2097 = vmatpush.bf16.msrb.mxu3 %v3820_v0  ;;  %v301_v40 = vadd.f32 %v300_v4, %v6030_v62  ;;  %v4076_v14 = vor.u32 %v4945_v46, %v4073_v11  ;;  %v3772_v61 = vor.u32 %v4869_v51, %v3769_v52  ;;  %v4909_v0 = vld [vmem:[%s7691_s3 + $0x444] sm:$0xf]  ;;  %v4220_v2 = vor.u32 %v4981_v58, %v4217_v63  ;;  %v3929_v4 = vld [vmem:[%s7691_s3 + $0x450] sm:$0xf0]  ;;  %v4804_v51 = vld [vmem:[%s7691_s3 + $0xf4] sm:$0xf0] }
  0xc1   :  { %2011 = vmatmul.bf16.vlgmr.msrb.gmra.mxu2 %v5986_v59  ;;  %v3932_v9 = vor.u32 %v4909_v0, %v3929_v4  ;;  %v4969_v46 = vld [vmem:[%s7691_s3 + $0x624] sm:$0xf]  ;;  %v3631_v52 = vld [vmem:[%s7691_s3 + $0x1e8] sm:$0xf]  ;;  %v4345_v63 = vld [vmem:[%s7691_s3 + $0x790] sm:$0xf0] }
  0xc2   :  { %v287_v10 = vpop.f32.mrf.mxu2  ;;  %2147 = vmatpush.bf16.msrb.mxu2 %v4268_v5  ;;  %v271_v28 = vpop.f32.mrf.mxu1  ;;  %v316_v24 = vmax.f32 %v301_v40, 0.0  ;;  %v4941_v5 = vld [vmem:[%s7691_s3 + $0x544] sm:$0xf] }
  0xc3   :  { %v288_v27 = vadd.f32 %v287_v10, %v5894_v48  ;;  %2113 = vmatpush.bf16.msrb.mxu0 %v3980_v13  ;;  %2131 = vmatpush.bf16.msrb.mxu1 %v4108_v19  ;;  %v4873_v48 = vld [vmem:[%s7691_s3 + $0x324] sm:$0xf]  ;;  %v4060_v10 = vor.u32 %v4941_v5, %v4057_v7  ;;  %v4201_v19 = vld [vmem:[%s7691_s3 + $0x670] sm:$0xf0]  ;;  %v3916_v28 = vor.u32 %v4905_v21, %v3913_v6  ;;  %v3487_v7 = vld [vmem:[%s7691_s3 + $0xc8] sm:$0xf] }
  0xc4   :  { %2098 = vmatpush.bf16.msrb.mxu3 %v3804_v43  ;;  %v3788_v37 = vor.u32 %v4873_v48, %v3785_v35  ;;  %v5025_v13 = vld [vmem:[%s7691_s3 + $0x7e4] sm:$0xf]  ;;  %v4204_v20 = vor.u32 %v4977_v16, %v4201_v19  ;;  %v4153_v5 = vld [vmem:[%s7691_s3 + $0x610] sm:$0xf0]  ;;  %v4832_v16 = vld [vmem:[%s7691_s3 + $0x1d4] sm:$0xf0] }
  0xc5   :  { %v331_v41 = vmax.f32 %v288_v27, 0.0  ;;  %v4396_v18 = vor.u32 %v5025_v13, %v4393_v15  ;;  %v4937_v27 = vld [vmem:[%s7691_s3 + $0x524] sm:$0xf]  ;;  %v3615_v15 = vld [vmem:[%s7691_s3 + $0x1c8] sm:$0xf] }
  0xc6   :  { %2148 = vmatpush.bf16.msrb.mxu2 %v4252_v25  ;;  %v4041_v25 = vld [vmem:[%s7691_s3 + $0x530] sm:$0xf0]  ;;  %v4973_v48 = vld [vmem:[%s7691_s3 + $0x644] sm:$0xf]  ;;  %v4868_v6 = vld [vmem:[%s7691_s3 + $0x2f4] sm:$0xf0] }
  0xc7   :  { %2114 = vmatpush.bf16.msrb.mxu0 %v3964_v32  ;;  %v302_v42 = vpop.f32.mrf.mxu3  ;;  %2132 = vmatpush.bf16.msrb.mxu1 %v4092_v34  ;;  %v6089_v1 = vpack.c.bf16 %v331_v41, %v331_v41  ;;  %v4044_v32 = vor.u32 %v4937_v27, %v4041_v25  ;;  %v4185_v34 = vld [vmem:[%s7691_s3 + $0x650] sm:$0xf0]  ;;  %v4901_v35 = vld [vmem:[%s7691_s3 + $0x404] sm:$0xf]  ;;  %v4796_v25 = vld [vmem:[%s7691_s3 + $0xb4] sm:$0xf0] }
  0xc8   :  { %v303_v47 = vadd.f32 %v302_v42, %v6030_v62  ;;  %1980 = vmatmul.bf16.gmra.mxu0 %v6045_v33  ;;  %2099 = vmatpush.bf16.msrb.mxu3 %v3788_v37  ;;  %v4188_v38 = vor.u32 %v4973_v48, %v4185_v34  ;;  %v3897_v37 = vld [vmem:[%s7691_s3 + $0x410] sm:$0xf0]  ;;  %v4965_v0 = vld [vmem:[%s7691_s3 + $0x604] sm:$0xf] }
  0xc9   :  { %1998 = vmatmul.bf16.gmra.mxu1 %v6056_v3  ;;  %v3900_v40 = vor.u32 %v4901_v35, %v3897_v37  ;;  %v4025_v41 = vld [vmem:[%s7691_s3 + $0x510] sm:$0xf0]  ;;  %v5009_v19 = vld [vmem:[%s7691_s3 + $0x764] sm:$0xf]  ;;  %v3455_v37 = vld [vmem:[%s7691_s3 + $0x88] sm:$0xf] }
  0xca   :  { %v289_v22 = vpop.f32.mrf.mxu2  ;;  %2149 = vmatpush.bf16.msrb.mxu2 %v4236_v39  ;;  %v324_v60 = vmax.f32 %v303_v47, 0.0  ;;  %v4933_v39 = vld [vmem:[%s7691_s3 + $0x504] sm:$0xf]  ;;  %v4361_v42 = vld [vmem:[%s7691_s3 + $0x7b0] sm:$0xf0] }
  0xcb   :  { %2115 = vmatpush.bf16.msrb.mxu0 %v3948_v49  ;;  %2133 = vmatpush.bf16.msrb.mxu1 %v4076_v14  ;;  %v4028_v44 = vor.u32 %v4933_v39, %v4025_v41  ;;  %v4169_v47 = vld [vmem:[%s7691_s3 + $0x630] sm:$0xf0]  ;;  %v3503_v14 = vld [vmem:[%s7691_s3 + $0xe8] sm:$0xf] }
  0xcc   :  { %v6100_v8 = vpack.c.bf16 %v324_v60, %v316_v24  ;;  %2100 = vmatpush.bf16.msrb.mxu3 %v3772_v61  ;;  %v4172_v22 = vor.u32 %v4969_v46, %v4169_v47  ;;  %v3504_v58 = vor.u32 %v4804_v51, %v3503_v14  ;;  %v4836_v24 = vld [vmem:[%s7691_s3 + $0x1f4] sm:$0xf0]  ;;  %v5013_v61 = vld [vmem:[%s7691_s3 + $0x784] sm:$0xf]  ;;  %v4313_v48 = vld [vmem:[%s7691_s3 + $0x750] sm:$0xf0] }
  0xcd   :  { %v3632_v60 = vor.u32 %v4836_v24, %v3631_v52  ;;  %v4348_v4 = vor.u32 %v5013_v61, %v4345_v63  ;;  %v3583_v41 = vld [vmem:[%s7691_s3 + $0x188] sm:$0xf]  ;;  %v4297_v46 = vld [vmem:[%s7691_s3 + $0x730] sm:$0xf0]  ;;  %v4788_v51 = vld [vmem:[%s7691_s3 + $0x74] sm:$0xf0] }
  0xce   :  { %2150 = vmatpush.bf16.msrb.mxu2 %v4220_v2  ;;  %2029 = vmatmul.bf16.vlgmr.msra.gmra.mxu3 %v6100_v8  ;;  %v3727_v47 = vld [vmem:[%s7691_s3 + $0x2a8] sm:$0xf]  ;;  %v4820_v24 = vld [vmem:[%s7691_s3 + $0x174] sm:$0xf0]  ;;  %v4997_v61 = vld [vmem:[%s7691_s3 + $0x704] sm:$0xf] }
  0xcf   :  { %2116 = vmatpush.bf16.msrb.mxu0 %v3932_v9  ;;  %v305_v43 = vpop.f32.mrf.mxu3  ;;  %2134 = vmatpush.bf16.msrb.mxu1 %v4060_v10  ;;  %v4800_v9 = vld [vmem:[%s7691_s3 + $0xd4] sm:$0xf0]  ;;  %v4156_v10 = vor.u32 %v4965_v0, %v4153_v5  ;;  %v3439_v14 = vld [vmem:[%s7691_s3 + $0x68] sm:$0xf]  ;;  %v4281_v63 = vld [vmem:[%s7691_s3 + $0x710] sm:$0xf0] }
  0xd0   :  { %2165 = vmatpush.bf16.msra.mxu3 %v4396_v18  ;;  %v306_v36 = vadd.f32 %v305_v43, %v6030_v62  ;;  %v5017_v62 = vld [vmem:[%s7691_s3 + $0x7a4] sm:$0xf]  ;;  %v3488_v13 = vor.u32 %v4800_v9, %v3487_v7  ;;  %v3616_v18 = vor.u32 %v4832_v16, %v3615_v15  ;;  %v4329_v43 = vld [vmem:[%s7691_s3 + $0x770] sm:$0xf0]  ;;  %v3567_v52 = vld [vmem:[%s7691_s3 + $0x168] sm:$0xf] }
  0xd1   :  { %2016 = vmatmul.bf16.gmra.mxu2 %v6089_v1  ;;  %v4364_v45 = vor.u32 %v5017_v62, %v4361_v42  ;;  %v4332_v21 = vor.u32 %v5009_v19, %v4329_v43  ;;  %v4824_v62 = vld [vmem:[%s7691_s3 + $0x194] sm:$0xf0]  ;;  %v3711_v0 = vld [vmem:[%s7691_s3 + $0x288] sm:$0xf] }
  0xd2   :  { %2151 = vmatpush.bf16.msrb.mxu2 %v4204_v20  ;;  %v332_v49 = vmax.f32 %v306_v36, 0.0  ;;  %v3759_v20 = vld [vmem:[%s7691_s3 + $0x2e8] sm:$0xf]  ;;  %v4856_v5 = vld [vmem:[%s7691_s3 + $0x294] sm:$0xf0] }
  0xd3   :  { %2117 = vmatpush.bf16.msrb.mxu0 %v3916_v28  ;;  %2135 = vmatpush.bf16.msrb.mxu1 %v4044_v32  ;;  %v3760_v27 = vor.u32 %v4868_v6, %v3759_v20  ;;  %v3471_v28 = vld [vmem:[%s7691_s3 + $0xa8] sm:$0xf]  ;;  %v4828_v32 = vld [vmem:[%s7691_s3 + $0x1b4] sm:$0xf0] }
  0xd4   :  { %2166 = vmatpush.bf16.msra.mxu3 %v4380_v54  ;;  %v6188_v2 = vpack.c.bf16 %v332_v49, %v332_v49  ;;  %v3472_v31 = vor.u32 %v4796_v25, %v3471_v28  ;;  %v5005_v54 = vld [vmem:[%s7691_s3 + $0x744] sm:$0xf]  ;;  %v3600_v34 = vor.u32 %v4828_v32, %v3599_v29  ;;  %v3743_v36 = vld [vmem:[%s7691_s3 + $0x2c8] sm:$0xf]  ;;  %v4860_v49 = vld [vmem:[%s7691_s3 + $0x2b4] sm:$0xf0] }
  0xd5   :  { %v4316_v35 = vor.u32 %v5005_v54, %v4313_v48  ;;  %v3423_v7 = vld [vmem:[%s7691_s3 + $0x48] sm:$0xf]  ;;  %v4784_v9 = vld [vmem:[%s7691_s3 + $0x54] sm:$0xf0] }
  0xd6   :  { %2152 = vmatpush.bf16.msrb.mxu2 %v4188_v38  ;;  %v4864_v38 = vld [vmem:[%s7691_s3 + $0x2d4] sm:$0xf0]  ;;  %v3551_v15 = vld [vmem:[%s7691_s3 + $0x148] sm:$0xf] }
  0xd7   :  { %2118 = vmatpush.bf16.msrb.mxu0 %v3900_v40  ;;  %v307_v11 = vpop.f32.mrf.mxu3  ;;  %2136 = vmatpush.bf16.msrb.mxu1 %v4028_v44  ;;  %v3744_v39 = vor.u32 %v4864_v38, %v3743_v36  ;;  %v4792_v40 = vld [vmem:[%s7691_s3 + $0x94] sm:$0xf0]  ;;  %v3584_v44 = vor.u32 %v4824_v62, %v3583_v41  ;;  %v3887_v19 = vld [vmem:[%s7691_s3 + $0x3e8] sm:$0xf] }
  0xd8   :  { %2047 = vmatmul.bf16.vlgmr.msra.gmra.mxu0 %v5686_v50  ;;  %2167 = vmatpush.bf16.msra.mxu3 %v4364_v45  ;;  %v3456_v42 = vor.u32 %v4792_v40, %v3455_v37  ;;  %v5001_v45 = vld [vmem:[%s7691_s3 + $0x724] sm:$0xf]  ;;  %v3728_v11 = vor.u32 %v4860_v49, %v3727_v47  ;;  %v4816_v16 = vld [vmem:[%s7691_s3 + $0x154] sm:$0xf0]  ;;  %v3695_v20 = vld [vmem:[%s7691_s3 + $0x268] sm:$0xf] }
  0xd9   :  { %2065 = vmatmul.bf16.vlgmr.msra.gmra.mxu1 %v5694_v55  ;;  %v4900_v43 = vld [vmem:[%s7691_s3 + $0x3f4] sm:$0xf0]  ;;  %v3407_v28 = vld [vmem:[%s7691_s3 + $0x28] sm:$0xf] }
  0xda   :  { %2153 = vmatpush.bf16.msrb.mxu2 %v4172_v22  ;;  %v4300_v22 = vor.u32 %v5001_v45, %v4297_v46  ;;  %v4852_v6 = vld [vmem:[%s7691_s3 + $0x274] sm:$0xf0]  ;;  %v3535_v29 = vld [vmem:[%s7691_s3 + $0x128] sm:$0xf] }
  0xdb   :  { %2183 = vmatpush.bf16.msra.mxu0 %v3504_v58  ;;  %2201 = vmatpush.bf16.msra.mxu1 %v3632_v60  ;;  %v3440_v58 = vor.u32 %v4788_v51, %v3439_v14  ;;  %v3568_v60 = vor.u32 %v4820_v24, %v3567_v52  ;;  %v4780_v25 = vld [vmem:[%s7691_s3 + $0x34] sm:$0xf0]  ;;  %v3871_v54 = vld [vmem:[%s7691_s3 + $0x3c8] sm:$0xf] }
  0xdc   :  { %2168 = vmatpush.bf16.msra.mxu3 %v4348_v4  ;;  %v4284_v4 = vor.u32 %v4997_v61, %v4281_v63  ;;  %v4812_v32 = vld [vmem:[%s7691_s3 + $0x134] sm:$0xf0]  ;;  %v3679_v36 = vld [vmem:[%s7691_s3 + $0x248] sm:$0xf] }
  0xdd   :  { %v4896_v48 = vld [vmem:[%s7691_s3 + $0x3d4] sm:$0xf0]  ;;  %v3519_v41 = vld [vmem:[%s7691_s3 + $0x108] sm:$0xf] }
  0xde   :  { %2154 = vmatpush.bf16.msrb.mxu2 %v4156_v10  ;;  %2034 = vmatmul.bf16.gmra.mxu3 %v6188_v2  ;;  %v3712_v10 = vor.u32 %v4856_v5, %v3711_v0  ;;  %v4848_v38 = vld [vmem:[%s7691_s3 + $0x254] sm:$0xf0]  ;;  %v3855_v45 = vld [vmem:[%s7691_s3 + $0x3a8] sm:$0xf] }
  0xdf   :  { %2184 = vmatpush.bf16.msra.mxu0 %v3488_v13  ;;  %2202 = vmatpush.bf16.msra.mxu1 %v3616_v18  ;;  %v3424_v13 = vor.u32 %v4784_v9, %v3423_v7  ;;  %v3552_v18 = vor.u32 %v4816_v16, %v3551_v15  ;;  %v3680_v37 = vor.u32 %v4848_v38, %v3679_v36  ;;  %v4776_v40 = vld [vmem:[%s7691_s3 + $0x14] sm:$0xf0]  ;;  %v3663_v47 = vld [vmem:[%s7691_s3 + $0x228] sm:$0xf] }
  0xe0   :  { %2169 = vmatpush.bf16.msra.mxu3 %v4332_v21  ;;  %v3888_v21 = vor.u32 %v4900_v43, %v3887_v19  ;;  %v4892_v46 = vld [vmem:[%s7691_s3 + $0x3b4] sm:$0xf0]  ;;  %v4015_v14 = vld [vmem:[%s7691_s3 + $0x4e8] sm:$0xf] }
  0xe1   :  { %2083 = vmatmul.bf16.vlgmr.msra.gmra.mxu2 %v5740_v23  ;;  %v4844_v49 = vld [vmem:[%s7691_s3 + $0x234] sm:$0xf0]  ;;  %v4143_v52 = vld [vmem:[%s7691_s3 + $0x5e8] sm:$0xf] }
  0xe2   :  { %2219 = vmatpush.bf16.msra.mxu2 %v3760_v27  ;;  %v3696_v27 = vor.u32 %v4852_v6, %v3695_v20  ;;  %v4932_v51 = vld [vmem:[%s7691_s3 + $0x4f4] sm:$0xf0]  ;;  %v3839_v61 = vld [vmem:[%s7691_s3 + $0x388] sm:$0xf] }
  0xe3   :  { %2185 = vmatpush.bf16.msra.mxu0 %v3472_v31  ;;  %2203 = vmatpush.bf16.msra.mxu1 %v3600_v34  ;;  %v3408_v31 = vor.u32 %v4780_v25, %v3407_v28  ;;  %v3536_v34 = vor.u32 %v4812_v32, %v3535_v29  ;;  %v4964_v24 = vld [vmem:[%s7691_s3 + $0x5f4] sm:$0xf0]  ;;  %v3647_v0 = vld [vmem:[%s7691_s3 + $0x208] sm:$0xf] }
  0xe4   :  { %2170 = vmatpush.bf16.msra.mxu3 %v4316_v35  ;;  %v3872_v35 = vor.u32 %v4896_v48, %v3871_v54  ;;  %v4888_v63 = vld [vmem:[%s7691_s3 + $0x394] sm:$0xf0]  ;;  %v3999_v9 = vld [vmem:[%s7691_s3 + $0x4c8] sm:$0xf] }
  0xe5   :  { %v4840_v5 = vld [vmem:[%s7691_s3 + $0x214] sm:$0xf0]  ;;  %v3823_v19 = vld [vmem:[%s7691_s3 + $0x368] sm:$0xf] }
  0xe6   :  { %2220 = vmatpush.bf16.msra.mxu2 %v3744_v39  ;;  %v3391_v39 = vld [vmem:[%s7691_s3 + $0x8] sm:$0xf]  ;;  %v3648_v7 = vor.u32 %v4840_v5, %v3647_v0  ;;  %v4960_v16 = vld [vmem:[%s7691_s3 + $0x5d4] sm:$0xf0] }
  0xe7   :  { %2186 = vmatpush.bf16.msra.mxu0 %v3456_v42  ;;  %2204 = vmatpush.bf16.msra.mxu1 %v3584_v44  ;;  %v3392_v62 = vor.u32 %v4776_v40, %v3391_v39  ;;  %v4808_v42 = vld [vmem:[%s7691_s3 + $0x114] sm:$0xf0]  ;;  %v4271_v20 = vld [vmem:[%s7691_s3 + $0x6e8] sm:$0xf] }
  0xe8   :  { %2052 = vmatmul.bf16.gmra.mxu0 %v5800_v56  ;;  %2171 = vmatpush.bf16.msra.mxu3 %v4300_v22  ;;  %v3520_v44 = vor.u32 %v4808_v42, %v3519_v41  ;;  %v3856_v22 = vor.u32 %v4892_v46, %v3855_v45  ;;  %v4884_v43 = vld [vmem:[%s7691_s3 + $0x374] sm:$0xf0]  ;;  %v3983_v28 = vld [vmem:[%s7691_s3 + $0x4a8] sm:$0xf] }
  0xe9   :  { %2070 = vmatmul.bf16.gmra.mxu1 %v5802_v57  ;;  %v4996_v6 = vld [vmem:[%s7691_s3 + $0x6f4] sm:$0xf0]  ;;  %v4111_v29 = vld [vmem:[%s7691_s3 + $0x5a8] sm:$0xf] }
  0xea   :  { %2221 = vmatpush.bf16.msra.mxu2 %v3728_v11  ;;  %v3664_v11 = vor.u32 %v4844_v49, %v3663_v47  ;;  %v4924_v25 = vld [vmem:[%s7691_s3 + $0x4b4] sm:$0xf0]  ;;  %v3807_v48 = vld [vmem:[%s7691_s3 + $0x348] sm:$0xf] }
  0xeb   :  { %2187 = vmatpush.bf16.msra.mxu0 %v3440_v58  ;;  %2205 = vmatpush.bf16.msra.mxu1 %v3568_v60  ;;  %v4016_v58 = vor.u32 %v4932_v51, %v4015_v14  ;;  %v4144_v60 = vor.u32 %v4964_v24, %v4143_v52  ;;  %v4956_v32 = vld [vmem:[%s7691_s3 + $0x5b4] sm:$0xf0]  ;;  %v3967_v39 = vld [vmem:[%s7691_s3 + $0x488] sm:$0xf] }
  0xec   :  { %2172 = vmatpush.bf16.msra.mxu3 %v4284_v4  ;;  %v3840_v4 = vor.u32 %v4888_v63, %v3839_v61  ;;  %v4112_v54 = vor.u32 %v4956_v32, %v4111_v29  ;;  %v4992_v38 = vld [vmem:[%s7691_s3 + $0x6d4] sm:$0xf0]  ;;  %v4095_v41 = vld [vmem:[%s7691_s3 + $0x588] sm:$0xf] }
  0xed   :  { %v4920_v40 = vld [vmem:[%s7691_s3 + $0x494] sm:$0xf0]  ;;  %v3791_v45 = vld [vmem:[%s7691_s3 + $0x328] sm:$0xf] }
  0xee   :  { %2222 = vmatpush.bf16.msra.mxu2 %v3712_v10  ;;  %2101 = vmatmul.bf16.vlgmr.msrb.gmra.mxu3 %v5860_v30  ;;  %v4928_v10 = vld [vmem:[%s7691_s3 + $0x4d4] sm:$0xf0]  ;;  %v4239_v47 = vld [vmem:[%s7691_s3 + $0x6a8] sm:$0xf] }
  0xef   :  { %2188 = vmatpush.bf16.msra.mxu0 %v3424_v13  ;;  %2206 = vmatpush.bf16.msra.mxu1 %v3552_v18  ;;  %v4127_v13 = vld [vmem:[%s7691_s3 + $0x5c8] sm:$0xf]  ;;  %v4000_v15 = vor.u32 %v4928_v10, %v3999_v9  ;;  %v4952_v42 = vld [vmem:[%s7691_s3 + $0x594] sm:$0xf0] }
  0xf0   :  { %2237 = vmatpush.bf16.msrb.mxu3 %v3888_v21  ;;  %v4128_v18 = vor.u32 %v4960_v16, %v4127_v13  ;;  %v3824_v21 = vor.u32 %v4884_v43, %v3823_v19  ;;  %v4876_v46 = vld [vmem:[%s7691_s3 + $0x334] sm:$0xf0]  ;;  %v3951_v14 = vld [vmem:[%s7691_s3 + $0x468] sm:$0xf] }
  0xf1   :  { %2088 = vmatmul.bf16.gmra.mxu2 %v5849_v26  ;;  %v4988_v49 = vld [vmem:[%s7691_s3 + $0x6b4] sm:$0xf0]  ;;  %v4079_v52 = vld [vmem:[%s7691_s3 + $0x568] sm:$0xf] }
  0xf2   :  { %2223 = vmatpush.bf16.msra.mxu2 %v3696_v27  ;;  %v4272_v27 = vor.u32 %v4996_v6, %v4271_v20  ;;  %v4916_v51 = vld [vmem:[%s7691_s3 + $0x474] sm:$0xf0]  ;;  %v3775_v61 = vld [vmem:[%s7691_s3 + $0x308] sm:$0xf] }
  0xf3   :  { %2189 = vmatpush.bf16.msra.mxu0 %v3408_v31  ;;  %2207 = vmatpush.bf16.msra.mxu1 %v3536_v34  ;;  %v3984_v31 = vor.u32 %v4924_v25, %v3983_v28  ;;  %v4880_v34 = vld [vmem:[%s7691_s3 + $0x354] sm:$0xf0]  ;;  %v4223_v0 = vld [vmem:[%s7691_s3 + $0x688] sm:$0xf] }
  0xf4   :  { %2238 = vmatpush.bf16.msrb.mxu3 %v3872_v35  ;;  %v4255_v35 = vld [vmem:[%s7691_s3 + $0x6c8] sm:$0xf]  ;;  %v3808_v36 = vor.u32 %v4880_v34, %v3807_v48  ;;  %v4948_v24 = vld [vmem:[%s7691_s3 + $0x574] sm:$0xf0] }
  0xf5   :  { %v4872_v63 = vld [vmem:[%s7691_s3 + $0x314] sm:$0xf0]  ;;  %v3935_v9 = vld [vmem:[%s7691_s3 + $0x448] sm:$0xf] }
  0xf6   :  { %2224 = vmatpush.bf16.msra.mxu2 %v3680_v37  ;;  %v4256_v37 = vor.u32 %v4992_v38, %v4255_v35  ;;  %v4984_v5 = vld [vmem:[%s7691_s3 + $0x694] sm:$0xf0]  ;;  %v4063_v13 = vld [vmem:[%s7691_s3 + $0x548] sm:$0xf] }
  0xf7   :  { %2190 = vmatpush.bf16.msra.mxu0 %v3392_v62  ;;  %2208 = vmatpush.bf16.msra.mxu1 %v3520_v44  ;;  %v3968_v62 = vor.u32 %v4920_v40, %v3967_v39  ;;  %v4096_v44 = vor.u32 %v4952_v42, %v4095_v41  ;;  %v4912_v10 = vld [vmem:[%s7691_s3 + $0x454] sm:$0xf0]  ;;  %v4399_v19 = vld [vmem:[%s7691_s3 + $0x7e8] sm:$0xf] }
  0xf8   :  { %2119 = vmatmul.bf16.vlgmr.msrb.gmra.mxu0 %v5920_v12  ;;  %2239 = vmatpush.bf16.msrb.mxu3 %v3856_v22  ;;  %v3792_v22 = vor.u32 %v4876_v46, %v3791_v45  ;;  %v4944_v16 = vld [vmem:[%s7691_s3 + $0x554] sm:$0xf0]  ;;  %v4207_v20 = vld [vmem:[%s7691_s3 + $0x668] sm:$0xf] }
  0xf9   :  { %2137 = vmatmul.bf16.vlgmr.msrb.gmra.mxu1 %v5940_v17  ;;  %v5028_v43 = vld [vmem:[%s7691_s3 + $0x7f4] sm:$0xf0]  ;;  %v3919_v25 = vld [vmem:[%s7691_s3 + $0x428] sm:$0xf] }
  0xfa   :  { %2225 = vmatpush.bf16.msra.mxu2 %v3664_v11  ;;  %v4240_v11 = vor.u32 %v4988_v49, %v4239_v47  ;;  %v4400_v6 = vor.u32 %v5028_v43, %v4399_v19  ;;  %v4908_v29 = vld [vmem:[%s7691_s3 + $0x434] sm:$0xf0]  ;;  %v4383_v34 = vld [vmem:[%s7691_s3 + $0x7c8] sm:$0xf]  ;;  %v4798_v19 = vld [vmem:[%s7691_s3 + $0xcc] sm:$0xf] }
  0xfb   :  { %2255 = vmatpush.bf16.msrb.mxu0 %v4016_v58  ;;  %2273 = vmatpush.bf16.msrb.mxu1 %v4144_v60  ;;  %v3952_v58 = vor.u32 %v4916_v51, %v3951_v14  ;;  %v4080_v60 = vor.u32 %v4948_v24, %v4079_v52  ;;  %v3920_v32 = vor.u32 %v4908_v29, %v3919_v25  ;;  %v5024_v35 = vld [vmem:[%s7691_s3 + $0x7d4] sm:$0xf0]  ;;  %v3903_v41 = vld [vmem:[%s7691_s3 + $0x408] sm:$0xf]  ;;  %v3489_v43 = vld [vmem:[%s7691_s3 + $0xd8] sm:$0xf0] }
  0xfc   :  { %2240 = vmatpush.bf16.msrb.mxu3 %v3840_v4  ;;  %v3776_v4 = vor.u32 %v4872_v63, %v3775_v61  ;;  %v4976_v39 = vld [vmem:[%s7691_s3 + $0x654] sm:$0xf0]  ;;  %v4031_v42 = vld [vmem:[%s7691_s3 + $0x508] sm:$0xf]  ;;  %v3505_v61 = vld [vmem:[%s7691_s3 + $0xf8] sm:$0xf0] }
  0xfd   :  { %v4936_v45 = vld [vmem:[%s7691_s3 + $0x514] sm:$0xf0]  ;;  %v4834_v63 = vld [vmem:[%s7691_s3 + $0x1ec] sm:$0xf]  ;;  %v4335_v29 = vld [vmem:[%s7691_s3 + $0x768] sm:$0xf] }
  0xfe   :  { %2226 = vmatpush.bf16.msra.mxu2 %v3648_v7  ;;  %2106 = vmatmul.bf16.gmra.mxu3 %v5984_v53  ;;  %v4224_v7 = vor.u32 %v4984_v5, %v4223_v0  ;;  %v4032_v47 = vor.u32 %v4936_v45, %v4031_v42  ;;  %v5020_v49 = vld [vmem:[%s7691_s3 + $0x7b4] sm:$0xf0]  ;;  %v3633_v5 = vld [vmem:[%s7691_s3 + $0x1f8] sm:$0xf0]  ;;  %v4319_v45 = vld [vmem:[%s7691_s3 + $0x748] sm:$0xf] }
  0xff   :  { %2256 = vmatpush.bf16.msrb.mxu0 %v4000_v15  ;;  %2274 = vmatpush.bf16.msrb.mxu1 %v4128_v18  ;;  %v3936_v15 = vor.u32 %v4912_v10, %v3935_v9  ;;  %v4064_v18 = vor.u32 %v4944_v16, %v4063_v13  ;;  %v4351_v9 = vld [vmem:[%s7691_s3 + $0x788] sm:$0xf]  ;;  %v5016_v10 = vld [vmem:[%s7691_s3 + $0x794] sm:$0xf0]  ;;  %v3601_v42 = vld [vmem:[%s7691_s3 + $0x1b8] sm:$0xf0] }
 0x100   :  { %2241 = vmatpush.bf16.msrb.mxu3 %v3824_v21  ;;  %v6518_v21 = vld [vmem:[%s7693_s4] sm:$0xf]  ;;  %v4159_v13 = vld [vmem:[%s7691_s3 + $0x608] sm:$0xf]  ;;  %v4968_v16 = vld [vmem:[%s7691_s3 + $0x614] sm:$0xf0] }
 0x101   :  { %2155 = vmatmul.bf16.vlgmr.msrb.gmra.mxu2 %v5986_v59  ;;  %v6546_v38 = vperm.slane %v6518_v21, 0 }
 0x102   :  { %2291 = vmatpush.bf16.msrb.mxu2 %v4272_v27  ;;  %v4980_v27 = vld [vmem:[%s7691_s3 + $0x674] sm:$0xf0] }
 0x103   :  { %2257 = vmatpush.bf16.msrb.mxu0 %v3984_v31  ;;  %2275 = vmatpush.bf16.msrb.mxu1 %v4112_v54  ;;  %v4208_v28 = vor.u32 %v4980_v27, %v4207_v20  ;;  %v4047_v31 = vld [vmem:[%s7691_s3 + $0x528] sm:$0xf]  ;;  %v4940_v54 = vld [vmem:[%s7691_s3 + $0x534] sm:$0xf0]  ;;  %v4830_v20 = vld [vmem:[%s7691_s3 + $0x1cc] sm:$0xf] }
 0x104   :  { %2242 = vmatpush.bf16.msrb.mxu3 %v3808_v36  ;;  %v4048_v48 = vor.u32 %v4940_v54, %v4047_v31  ;;  %v4191_v36 = vld [vmem:[%s7691_s3 + $0x648] sm:$0xf]  ;;  %v3617_v27 = vld [vmem:[%s7691_s3 + $0x1d8] sm:$0xf0]  ;;  %v5012_v31 = vld [vmem:[%s7691_s3 + $0x774] sm:$0xf0] }
 0x105   :  { %v4192_v40 = vor.u32 %v4976_v39, %v4191_v36  ;;  %v3620_v25 = vor.u32 %v4830_v20, %v3617_v27  ;;  %v3473_v39 = vld [vmem:[%s7691_s3 + $0xb8] sm:$0xf0] }
 0x106   :  { %2292 = vmatpush.bf16.msrb.mxu2 %v4256_v37  ;;  %v4384_v37 = vor.u32 %v5024_v35, %v4383_v34  ;;  %v4336_v34 = vor.u32 %v5012_v31, %v4335_v29  ;;  %v3761_v35 = vld [vmem:[%s7691_s3 + $0x2f8] sm:$0xf0]  ;;  %v4854_v29 = vld [vmem:[%s7691_s3 + $0x28c] sm:$0xf] }
 0x107   :  { %2258 = vmatpush.bf16.msrb.mxu0 %v3968_v62  ;;  %2276 = vmatpush.bf16.msrb.mxu1 %v4096_v44  ;;  %v4904_v62 = vld [vmem:[%s7691_s3 + $0x414] sm:$0xf0] }
 0x108   :  { %2124 = vmatmul.bf16.gmra.mxu0 %v6045_v33  ;;  %2243 = vmatpush.bf16.msrb.mxu3 %v3792_v22  ;;  %v3904_v44 = vor.u32 %v4904_v62, %v3903_v41  ;;  %v4367_v22 = vld [vmem:[%s7691_s3 + $0x7a8] sm:$0xf] }
 0x109   :  { %2142 = vmatmul.bf16.gmra.mxu1 %v6056_v3  ;;  %v4368_v52 = vor.u32 %v5020_v49, %v4367_v22 }
 0x10a   :  { %2293 = vmatpush.bf16.msrb.mxu2 %v4240_v11  ;;  %v4175_v11 = vld [vmem:[%s7691_s3 + $0x628] sm:$0xf] }
 0x10b   :  { %2259 = vmatpush.bf16.msrb.mxu0 %v3952_v58  ;;  %2277 = vmatpush.bf16.msrb.mxu1 %v4080_v60  ;;  %v4972_v58 = vld [vmem:[%s7691_s3 + $0x634] sm:$0xf0]  ;;  %v4802_v60 = vld [vmem:[%s7691_s3 + $0xec] sm:$0xf] }
 0x10c   :  { %2244 = vmatpush.bf16.msrb.mxu3 %v3776_v4  ;;  %v4176_v24 = vor.u32 %v4972_v58, %v4175_v11  ;;  %v3508_v4 = vor.u32 %v4802_v60, %v3505_v61  ;;  %v3745_v11 = vld [vmem:[%s7691_s3 + $0x2d8] sm:$0xf0] }
 0x10d   :  { %v3457_v58 = vld [vmem:[%s7691_s3 + $0x98] sm:$0xf0] }
 0x10e   :  { %2294 = vmatpush.bf16.msrb.mxu2 %v4224_v7  ;;  %2173 = vmatmul.bf16.vlgmr.msra.gmra.mxu3 %v6100_v8  ;;  %v3636_v7 = vor.u32 %v4834_v63, %v3633_v5  ;;  %v3585_v61 = vld [vmem:[%s7691_s3 + $0x198] sm:$0xf0]  ;;  %v5004_v5 = vld [vmem:[%s7691_s3 + $0x734] sm:$0xf0] }
 0x10f   :  { %2260 = vmatpush.bf16.msrb.mxu0 %v3936_v15  ;;  %2278 = vmatpush.bf16.msrb.mxu1 %v4064_v18  ;;  %v4352_v15 = vor.u32 %v5016_v10, %v4351_v9  ;;  %v4160_v18 = vor.u32 %v4968_v16, %v4159_v13 }
 0x110   :  { %2309 = vmatpush.bf16.msra.mxu3 %v4400_v6  ;;  %v3492_v6 = vor.u32 %v4798_v19, %v3489_v43  ;;  %v3441_v19 = vld [vmem:[%s7691_s3 + $0x78] sm:$0xf0] }
 0x111   :  { %2160 = vmatmul.bf16.gmra.mxu2 %v6089_v1 }
 0x112   :  { %2295 = vmatpush.bf16.msrb.mxu2 %v4208_v28 }
 0x113   :  { %2261 = vmatpush.bf16.msrb.mxu0 %v3920_v32  ;;  %2279 = vmatpush.bf16.msrb.mxu1 %v4048_v48  ;;  %v4866_v32 = vld [vmem:[%s7691_s3 + $0x2ec] sm:$0xf] }
 0x114   :  { %2310 = vmatpush.bf16.msra.mxu3 %v4384_v37  ;;  %v3764_v36 = vor.u32 %v4866_v32, %v3761_v35  ;;  %v4794_v37 = vld [vmem:[%s7691_s3 + $0xac] sm:$0xf] }
 0x115   :  { %v1904_v46 = vpop.f32.mrf.mxu0  ;;  %v3476_v62 = vor.u32 %v4794_v37, %v3473_v39  ;;  %v4782_v35 = vld [vmem:[%s7691_s3 + $0x4c] sm:$0xf] }
 0x116   :  { %2296 = vmatpush.bf16.msrb.mxu2 %v4192_v40  ;;  %v1905_v14 = vadd.f32 %v1904_v46, %v6546_v38  ;;  %v1922_v51 = vpop.f32.mrf.mxu1  ;;  %v4826_v40 = vld [vmem:[%s7691_s3 + $0x1ac] sm:$0xf]  ;;  %v5008_v46 = vld [vmem:[%s7691_s3 + $0x754] sm:$0xf0] }
 0x117   :  { %2262 = vmatpush.bf16.msrb.mxu0 %v3904_v44  ;;  %2280 = vmatpush.bf16.msrb.mxu1 %v4032_v47  ;;  %v3604_v44 = vor.u32 %v4826_v40, %v3601_v42  ;;  %v4862_v47 = vld [vmem:[%s7691_s3 + $0x2cc] sm:$0xf]  ;;  %v4320_v49 = vor.u32 %v5008_v46, %v4319_v45  ;;  %v3553_v40 = vld [vmem:[%s7691_s3 + $0x158] sm:$0xf0] }
 0x118   :  { %v1923_v0 = vadd.f32 %v1922_v51, %v1905_v14  ;;  %2191 = vmatmul.bf16.vlgmr.msra.gmra.mxu0 %v5686_v50  ;;  %2311 = vmatpush.bf16.msra.mxu3 %v4368_v52  ;;  %v3748_v51 = vor.u32 %v4862_v47, %v3745_v11  ;;  %v4790_v52 = vld [vmem:[%s7691_s3 + $0x8c] sm:$0xf] }
 0x119   :  { %2209 = vmatmul.bf16.vlgmr.msra.gmra.mxu1 %v5694_v55  ;;  %v3460_v60 = vor.u32 %v4790_v52, %v3457_v58  ;;  %v4814_v37 = vld [vmem:[%s7691_s3 + $0x14c] sm:$0xf] }
 0x11a   :  { %2297 = vmatpush.bf16.msrb.mxu2 %v4176_v24  ;;  %v4822_v24 = vld [vmem:[%s7691_s3 + $0x18c] sm:$0xf] }
 0x11b   :  { %2327 = vmatpush.bf16.msra.mxu0 %v3508_v4  ;;  %2345 = vmatpush.bf16.msra.mxu1 %v3636_v7  ;;  %v4303_v4 = vld [vmem:[%s7691_s3 + $0x728] sm:$0xf]  ;;  %v4858_v7 = vld [vmem:[%s7691_s3 + $0x2ac] sm:$0xf] }
 0x11c   :  { %2312 = vmatpush.bf16.msra.mxu3 %v4352_v15  ;;  %v4304_v13 = vor.u32 %v5004_v5, %v4303_v4  ;;  %v3729_v15 = vld [vmem:[%s7691_s3 + $0x2b8] sm:$0xf0]  ;;  %v4898_v42 = vld [vmem:[%s7691_s3 + $0x3ec] sm:$0xf] }
 0x11d   :  { %v1906_v28 = vpop.f32.mrf.mxu0  ;;  %v3732_v16 = vor.u32 %v4858_v7, %v3729_v15  ;;  %v4850_v45 = vld [vmem:[%s7691_s3 + $0x26c] sm:$0xf] }
 0x11e   :  { %2298 = vmatpush.bf16.msrb.mxu2 %v4160_v18  ;;  %v1907_v54 = vadd.f32 %v1906_v28, %v6546_v38  ;;  %v1924_v48 = vpop.f32.mrf.mxu1  ;;  %2178 = vmatmul.bf16.gmra.mxu3 %v6188_v2  ;;  %v4786_v18 = vld [vmem:[%s7691_s3 + $0x6c] sm:$0xf]  ;;  %v4287_v28 = vld [vmem:[%s7691_s3 + $0x708] sm:$0xf] }
 0x11f   :  { %2328 = vmatpush.bf16.msra.mxu0 %v3492_v6  ;;  %2346 = vmatpush.bf16.msra.mxu1 %v3620_v25  ;;  %v3444_v20 = vor.u32 %v4786_v18, %v3441_v19  ;;  %v3569_v6 = vld [vmem:[%s7691_s3 + $0x178] sm:$0xf0]  ;;  %v5000_v25 = vld [vmem:[%s7691_s3 + $0x714] sm:$0xf0]  ;;  %v4778_v11 = vld [vmem:[%s7691_s3 + $0x2c] sm:$0xf] }
 0x120   :  { %v1925_v41 = vadd.f32 %v1924_v48, %v1907_v54  ;;  %2313 = vmatpush.bf16.msra.mxu3 %v4336_v34  ;;  %v4288_v32 = vor.u32 %v5000_v25, %v4287_v28  ;;  %v3713_v54 = vld [vmem:[%s7691_s3 + $0x298] sm:$0xf0]  ;;  %v4810_v52 = vld [vmem:[%s7691_s3 + $0x12c] sm:$0xf] }
 0x121   :  { %2227 = vmatmul.bf16.vlgmr.msra.gmra.mxu2 %v5740_v23  ;;  %v3716_v34 = vor.u32 %v4854_v29, %v3713_v54  ;;  %v4846_v4 = vld [vmem:[%s7691_s3 + $0x24c] sm:$0xf]  ;;  %v3393_v18 = vld [vmem:[%s7691_s3 + $0x18] sm:$0xf0] }
 0x122   :  { %2363 = vmatpush.bf16.msra.mxu2 %v3764_v36  ;;  %v3425_v36 = vld [vmem:[%s7691_s3 + $0x58] sm:$0xf0]  ;;  %v4842_v28 = vld [vmem:[%s7691_s3 + $0x22c] sm:$0xf] }
 0x123   :  { %2329 = vmatpush.bf16.msra.mxu0 %v3476_v62  ;;  %2347 = vmatpush.bf16.msra.mxu1 %v3604_v44  ;;  %v3428_v39 = vor.u32 %v4782_v35, %v3425_v36  ;;  %v3556_v62 = vor.u32 %v4814_v37, %v3553_v40  ;;  %v3889_v44 = vld [vmem:[%s7691_s3 + $0x3f8] sm:$0xf0]  ;;  %v4962_v36 = vld [vmem:[%s7691_s3 + $0x5ec] sm:$0xf] }
 0x124   :  { %v1940_v22 = vpop.f32.mrf.mxu2  ;;  %2314 = vmatpush.bf16.msra.mxu3 %v4320_v49  ;;  %v3892_v47 = vor.u32 %v4898_v42, %v3889_v44  ;;  %v4017_v35 = vld [vmem:[%s7691_s3 + $0x4f8] sm:$0xf0]  ;;  %v4886_v42 = vld [vmem:[%s7691_s3 + $0x38c] sm:$0xf] }
 0x125   :  { %v6653_v14 = vadd.f32 %v1940_v22, %v1923_v0  ;;  %v1909_v63 = vpop.f32.mrf.mxu0  ;;  %v3588_v0 = vor.u32 %v4822_v24, %v3585_v61  ;;  %v3697_v22 = vld [vmem:[%s7691_s3 + $0x278] sm:$0xf0] }
 0x126   :  { %2364 = vmatpush.bf16.msra.mxu2 %v3748_v51  ;;  %v1910_v9 = vadd.f32 %v1909_v63, %v6546_v38  ;;  %v1927_v10 = vpop.f32.mrf.mxu1  ;;  %v4818_v38 = vld [vmem:[%s7691_s3 + $0x16c] sm:$0xf]  ;;  %v3700_v49 = vor.u32 %v4850_v45, %v3697_v22  ;;  %v3409_v51 = vld [vmem:[%s7691_s3 + $0x38] sm:$0xf0] }
 0x127   :  { %2330 = vmatpush.bf16.msra.mxu0 %v3460_v60  ;;  %2348 = vmatpush.bf16.msra.mxu1 %v3588_v0  ;;  %v3572_v27 = vor.u32 %v4818_v38, %v3569_v6  ;;  %v3412_v58 = vor.u32 %v4778_v11, %v3409_v51  ;;  %v3537_v24 = vld [vmem:[%s7691_s3 + $0x138] sm:$0xf0]  ;;  %v4894_v63 = vld [vmem:[%s7691_s3 + $0x3cc] sm:$0xf] }
 0x128   :  { %v1928_v43 = vadd.f32 %v1927_v10, %v1910_v9  ;;  %2196 = vmatmul.bf16.gmra.mxu0 %v5800_v56  ;;  %2315 = vmatpush.bf16.msra.mxu3 %v4304_v13  ;;  %v3540_v61 = vor.u32 %v4810_v52, %v3537_v24  ;;  %v3873_v0 = vld [vmem:[%s7691_s3 + $0x3d8] sm:$0xf0]  ;;  %v4890_v6 = vld [vmem:[%s7691_s3 + $0x3ac] sm:$0xf] }
 0x129   :  { %2214 = vmatmul.bf16.gmra.mxu1 %v5802_v57  ;;  %v3876_v9 = vor.u32 %v4894_v63, %v3873_v0  ;;  %v3681_v10 = vld [vmem:[%s7691_s3 + $0x258] sm:$0xf0]  ;;  %v4838_v45 = vld [vmem:[%s7691_s3 + $0x20c] sm:$0xf] }
 0x12a   :  { %2365 = vmatpush.bf16.msra.mxu2 %v3732_v16  ;;  %v3684_v15 = vor.u32 %v4846_v4, %v3681_v10  ;;  %v4774_v16 = vld [vmem:[%s7691_s3 + $0xc] sm:$0xf]  ;;  %v3521_v38 = vld [vmem:[%s7691_s3 + $0x118] sm:$0xf0] }
 0x12b   :  { %2331 = vmatpush.bf16.msra.mxu0 %v3444_v20  ;;  %2349 = vmatpush.bf16.msra.mxu1 %v3572_v27  ;;  %v3396_v19 = vor.u32 %v4774_v16, %v3393_v18  ;;  %v3857_v27 = vld [vmem:[%s7691_s3 + $0x3b8] sm:$0xf0]  ;;  %v4926_v51 = vld [vmem:[%s7691_s3 + $0x4cc] sm:$0xf] }
 0x12c   :  { %v1942_v31 = vpop.f32.mrf.mxu2  ;;  %2316 = vmatpush.bf16.msra.mxu3 %v4288_v32  ;;  %v3665_v32 = vld [vmem:[%s7691_s3 + $0x238] sm:$0xf0]  ;;  %v4882_v63 = vld [vmem:[%s7691_s3 + $0x36c] sm:$0xf] }
 0x12d   :  { %v6706_v48 = vadd.f32 %v1942_v31, %v1925_v41  ;;  %v1911_v41 = vpop.f32.mrf.mxu0  ;;  %v3860_v31 = vor.u32 %v4890_v6, %v3857_v27  ;;  %v3668_v54 = vor.u32 %v4842_v28, %v3665_v32  ;;  %v4145_v40 = vld [vmem:[%s7691_s3 + $0x5f8] sm:$0xf0]  ;;  %v4994_v4 = vld [vmem:[%s7691_s3 + $0x6ec] sm:$0xf] }
 0x12e   :  { %2366 = vmatpush.bf16.msra.mxu2 %v3716_v34  ;;  %v1929_v46 = vpop.f32.mrf.mxu1  ;;  %2245 = vmatmul.bf16.vlgmr.msrb.gmra.mxu3 %v5860_v30  ;;  %v4930_v34 = vld [vmem:[%s7691_s3 + $0x4ec] sm:$0xf]  ;;  %v3841_v44 = vld [vmem:[%s7691_s3 + $0x398] sm:$0xf0] }
 0x12f   :  { %2332 = vmatpush.bf16.msra.mxu0 %v3428_v39  ;;  %2350 = vmatpush.bf16.msra.mxu1 %v3556_v62  ;;  %v4020_v39 = vor.u32 %v4930_v34, %v4017_v35  ;;  %v4148_v62 = vor.u32 %v4962_v36, %v4145_v40  ;;  %v3844_v22 = vor.u32 %v4886_v42, %v3841_v44  ;;  %v4001_v52 = vld [vmem:[%s7691_s3 + $0x4d8] sm:$0xf0]  ;;  %v4922_v16 = vld [vmem:[%s7691_s3 + $0x4ac] sm:$0xf] }
 0x130   :  { %2381 = vmatpush.bf16.msrb.mxu3 %v3892_v47  ;;  %v4129_v24 = vld [vmem:[%s7691_s3 + $0x5d8] sm:$0xf0]  ;;  %v4878_v27 = vld [vmem:[%s7691_s3 + $0x34c] sm:$0xf] }
 0x131   :  { %2232 = vmatmul.bf16.gmra.mxu2 %v5849_v26  ;;  %v1958_v60 = vpop.f32.mrf.mxu3  ;;  %v3825_v0 = vld [vmem:[%s7691_s3 + $0x378] sm:$0xf0]  ;;  %v4918_v36 = vld [vmem:[%s7691_s3 + $0x48c] sm:$0xf] }
 0x132   :  { %2367 = vmatpush.bf16.msra.mxu2 %v3700_v49  ;;  %v1959_v7 = vadd.f32 %v1958_v60, %v6653_v14  ;;  %v4806_v14 = vld [vmem:[%s7691_s3 + $0x10c] sm:$0xf]  ;;  %v3649_v49 = vld [vmem:[%s7691_s3 + $0x218] sm:$0xf0] }
 0x133   :  { %2333 = vmatpush.bf16.msra.mxu0 %v3412_v58  ;;  %2351 = vmatpush.bf16.msra.mxu1 %v3540_v61  ;;  %v3524_v20 = vor.u32 %v4806_v14, %v3521_v38  ;;  %v3652_v11 = vor.u32 %v4838_v45, %v3649_v49  ;;  %v4004_v58 = vor.u32 %v4926_v51, %v4001_v52  ;;  %v4273_v10 = vld [vmem:[%s7691_s3 + $0x6f8] sm:$0xf0]  ;;  %v4954_v14 = vld [vmem:[%s7691_s3 + $0x5ac] sm:$0xf] }
 0x134   :  { %v1945_v5 = vpop.f32.mrf.mxu2  ;;  %2382 = vmatpush.bf16.msrb.mxu3 %v3876_v9  ;;  %v3828_v9 = vor.u32 %v4882_v63, %v3825_v0  ;;  %v3985_v18 = vld [vmem:[%s7691_s3 + $0x4b8] sm:$0xf0]  ;;  %v4874_v42 = vld [vmem:[%s7691_s3 + $0x32c] sm:$0xf] }
 0x135   :  { %v6759_v13 = vadd.f32 %v1945_v5, %v1928_v43  ;;  %v1976_v43 = vpop.f32.mrf.mxu0  ;;  %v3988_v38 = vor.u32 %v4922_v16, %v3985_v18  ;;  %v3809_v28 = vld [vmem:[%s7691_s3 + $0x358] sm:$0xf0]  ;;  %v4986_v45 = vld [vmem:[%s7691_s3 + $0x6ac] sm:$0xf] }
 0x136   :  { %2368 = vmatpush.bf16.msra.mxu2 %v3684_v15  ;;  %v1977_v25 = vadd.f32 %v1976_v43, %v1959_v7  ;;  %v1994_v29 = vpop.f32.mrf.mxu1  ;;  %v4276_v15 = vor.u32 %v4994_v4, %v4273_v10  ;;  %v4113_v43 = vld [vmem:[%s7691_s3 + $0x5b8] sm:$0xf0]  ;;  %v3812_v32 = vor.u32 %v4878_v27, %v3809_v28  ;;  %v4914_v51 = vld [vmem:[%s7691_s3 + $0x46c] sm:$0xf] }
 0x137   :  { %2334 = vmatpush.bf16.msra.mxu0 %v3396_v19  ;;  %2352 = vmatpush.bf16.msra.mxu1 %v3524_v20  ;;  %v4116_v6 = vor.u32 %v4954_v14, %v4113_v43  ;;  %v3793_v44 = vld [vmem:[%s7691_s3 + $0x338] sm:$0xf0]  ;;  %v4870_v0 = vld [vmem:[%s7691_s3 + $0x30c] sm:$0xf] }
 0x138   :  { %v1995_v37 = vadd.f32 %v1994_v29, %v1977_v25  ;;  %2263 = vmatmul.bf16.vlgmr.msrb.gmra.mxu0 %v5920_v12  ;;  %2383 = vmatpush.bf16.msrb.mxu3 %v3860_v31  ;;  %v4990_v25 = vld [vmem:[%s7691_s3 + $0x6cc] sm:$0xf]  ;;  %v4241_v49 = vld [vmem:[%s7691_s3 + $0x6b8] sm:$0xf0] }
 0x139   :  { %2281 = vmatmul.bf16.vlgmr.msrb.gmra.mxu1 %v5940_v17  ;;  %v1960_v41 = vpop.f32.mrf.mxu3  ;;  %v3953_v52 = vld [vmem:[%s7691_s3 + $0x478] sm:$0xf0]  ;;  %v4910_v18 = vld [vmem:[%s7691_s3 + $0x44c] sm:$0xf] }
 0x13a   :  { %2369 = vmatpush.bf16.msra.mxu2 %v3668_v54  ;;  %v1961_v47 = vadd.f32 %v1960_v41, %v6706_v48  ;;  %v4958_v48 = vld [vmem:[%s7691_s3 + $0x5cc] sm:$0xf]  ;;  %v4257_v54 = vld [vmem:[%s7691_s3 + $0x6d8] sm:$0xf0] }
 0x13b   :  { %2399 = vmatpush.bf16.msrb.mxu0 %v4020_v39  ;;  %2417 = vmatpush.bf16.msrb.mxu1 %v4148_v62  ;;  %v4132_v61 = vor.u32 %v4958_v48, %v4129_v24  ;;  %v4260_v35 = vor.u32 %v4990_v25, %v4257_v54  ;;  %v3969_v39 = vld [vmem:[%s7691_s3 + $0x498] sm:$0xf0]  ;;  %v4946_v48 = vld [vmem:[%s7691_s3 + $0x56c] sm:$0xf]  ;;  %v3956_v24 = vor.u32 %v4914_v51, %v3953_v52 }
 0x13c   :  { %v1947_v46 = vpop.f32.mrf.mxu2  ;;  %2384 = vmatpush.bf16.msrb.mxu3 %v3844_v22  ;;  %v3972_v40 = vor.u32 %v4918_v36, %v3969_v39  ;;  %v3796_v22 = vor.u32 %v4874_v42, %v3793_v44  ;;  %v3777_v4 = vld [vmem:[%s7691_s3 + $0x318] sm:$0xf0]  ;;  %v5026_v27 = vld [vmem:[%s7691_s3 + $0x7ec] sm:$0xf] }
 0x13d   :  { %v1978_v60 = vpop.f32.mrf.mxu0  ;;  %v4225_v10 = vld [vmem:[%s7691_s3 + $0x698] sm:$0xf0]  ;;  %v4978_v25 = vld [vmem:[%s7691_s3 + $0x66c] sm:$0xf] }
 0x13e   :  { %2370 = vmatpush.bf16.msra.mxu2 %v3652_v11  ;;  %v1979_v5 = vadd.f32 %v1978_v60, %v1961_v47  ;;  %v1996_v7 = vpop.f32.mrf.mxu1  ;;  %2250 = vmatmul.bf16.gmra.mxu3 %v5984_v53  ;;  %v4244_v11 = vor.u32 %v4986_v45, %v4241_v49  ;;  %v4081_v60 = vld [vmem:[%s7691_s3 + $0x578] sm:$0xf0]  ;;  %v4938_v39 = vld [vmem:[%s7691_s3 + $0x52c] sm:$0xf] }
 0x13f   :  { %2400 = vmatpush.bf16.msrb.mxu0 %v4004_v58  ;;  %2418 = vmatpush.bf16.msrb.mxu1 %v4132_v61  ;;  %v4084_v63 = vor.u32 %v4946_v48, %v4081_v60  ;;  %v3937_v14 = vld [vmem:[%s7691_s3 + $0x458] sm:$0xf0]  ;;  %v4974_v44 = vld [vmem:[%s7691_s3 + $0x64c] sm:$0xf] }
 0x140   :  { %v1997_v19 = vadd.f32 %v1996_v7, %v1979_v5  ;;  %2385 = vmatpush.bf16.msrb.mxu3 %v3828_v9  ;;  %v4982_v5 = vld [vmem:[%s7691_s3 + $0x68c] sm:$0xf]  ;;  %v3780_v9 = vor.u32 %v4870_v0, %v3777_v4  ;;  %v3940_v43 = vor.u32 %v4910_v18, %v3937_v14  ;;  %v4401_v28 = vld [vmem:[%s7691_s3 + $0x7f8] sm:$0xf0] }
 0x141   :  { %2299 = vmatmul.bf16.vlgmr.msrb.gmra.mxu2 %v5986_v59  ;;  %v1963_v20 = vpop.f32.mrf.mxu3  ;;  %v4228_v16 = vor.u32 %v4982_v5, %v4225_v10  ;;  %v3921_v36 = vld [vmem:[%s7691_s3 + $0x438] sm:$0xf0]  ;;  %v4902_v51 = vld [vmem:[%s7691_s3 + $0x40c] sm:$0xf]  ;;  %v4463_v10 = vld [vmem:[%s7694_s5 + $0x70] sm:$0xf] }
 0x142   :  { %2435 = vmatpush.bf16.msrb.mxu2 %v4276_v15  ;;  %v1964_v29 = vadd.f32 %v1963_v20, %v6759_v13  ;;  %v4950_v13 = vld [vmem:[%s7691_s3 + $0x58c] sm:$0xf]  ;;  %v4385_v42 = vld [vmem:[%s7691_s3 + $0x7d8] sm:$0xf0] }
 0x143   :  { %2401 = vmatpush.bf16.msrb.mxu0 %v3988_v38  ;;  %2419 = vmatpush.bf16.msrb.mxu1 %v4116_v6  ;;  %v4942_v38 = vld [vmem:[%s7691_s3 + $0x54c] sm:$0xf]  ;;  %v3905_v52 = vld [vmem:[%s7691_s3 + $0x418] sm:$0xf0] }
 0x144   :  { %v2012_v31 = vpop.f32.mrf.mxu2  ;;  %2386 = vmatpush.bf16.msrb.mxu3 %v3812_v32  ;;  %v4209_v32 = vld [vmem:[%s7691_s3 + $0x678] sm:$0xf0]  ;;  %v3908_v48 = vor.u32 %v4902_v51, %v3905_v52  ;;  %v4970_v0 = vld [vmem:[%s7691_s3 + $0x62c] sm:$0xf]  ;;  %v4439_v51 = vld [vmem:[%s7694_s5 + $0x40] sm:$0xf] }
 0x145   :  { %v6863_v34 = vadd.f32 %v2012_v31, %v1995_v37  ;;  %v4097_v37 = vld [vmem:[%s7691_s3 + $0x598] sm:$0xf0]  ;;  %v1981_v41 = vpop.f32.mrf.mxu0  ;;  %v4404_v31 = vor.u32 %v5026_v27, %v4401_v28  ;;  %v4212_v54 = vor.u32 %v4978_v25, %v4209_v32  ;;  %v4455_v28 = vld [vmem:[%s7694_s5 + $0x60] sm:$0xf]  ;;  %v5042_v25 = vld [vmem:[%s7694_s5 + $0x64] sm:$0xf0] }
 0x146   :  { %2436 = vmatpush.bf16.msrb.mxu2 %v4260_v35  ;;  %v4100_v62 = vor.u32 %v4950_v13, %v4097_v37  ;;  %v1982_v46 = vadd.f32 %v1981_v41, %v1964_v29  ;;  %v1999_v47 = vpop.f32.mrf.mxu1  ;;  %v4906_v35 = vld [vmem:[%s7691_s3 + $0x42c] sm:$0xf]  ;;  %v4456_v32 = vor.u32 %v5042_v25, %v4455_v28  ;;  %v5038_v52 = vld [vmem:[%s7694_s5 + $0x44] sm:$0xf0] }
 0x147   :  { %2402 = vmatpush.bf16.msrb.mxu0 %v3972_v40  ;;  %v3924_v13 = vor.u32 %v4906_v35, %v3921_v36  ;;  %v4049_v40 = vld [vmem:[%s7691_s3 + $0x538] sm:$0xf0] }
 0x148   :  { %2420 = vmatpush.bf16.msrb.mxu1 %v4100_v62  ;;  %v2000_v58 = vadd.f32 %v1999_v47, %v1982_v46  ;;  %2268 = vmatmul.bf16.gmra.mxu0 %v6045_v33  ;;  %v4052_v41 = vor.u32 %v4938_v39, %v4049_v40  ;;  %v5022_v62 = vld [vmem:[%s7691_s3 + $0x7cc] sm:$0xf]  ;;  %v4337_v35 = vld [vmem:[%s7691_s3 + $0x778] sm:$0xf0]  ;;  %v4447_v40 = vld [vmem:[%s7694_s5 + $0x50] sm:$0xf] }
 0x149   :  { %2387 = vmatpush.bf16.msrb.mxu3 %v3796_v22  ;;  %2286 = vmatmul.bf16.gmra.mxu1 %v6056_v3  ;;  %v1965_v61 = vpop.f32.mrf.mxu3  ;;  %v4388_v47 = vor.u32 %v5022_v62, %v4385_v42  ;;  %v4193_v22 = vld [vmem:[%s7691_s3 + $0x658] sm:$0xf0]  ;;  %v5060_v42 = vld [vmem:[%s7694_s5 + $0xf4] sm:$0xf0] }
 0x14a   :  { %2437 = vmatpush.bf16.msrb.mxu2 %v4244_v11  ;;  %v4196_v11 = vor.u32 %v4974_v44, %v4193_v22  ;;  %v5018_v61 = vld [vmem:[%s7691_s3 + $0x7ac] sm:$0xf] }
 0x14b   :  { %2403 = vmatpush.bf16.msrb.mxu0 %v3956_v24 }
 0x14c   :  { %v2014_v7 = vpop.f32.mrf.mxu2  ;;  %2421 = vmatpush.bf16.msrb.mxu1 %v4084_v63  ;;  %v4369_v63 = vld [vmem:[%s7691_s3 + $0x7b8] sm:$0xf0] }
 0x14d   :  { %v6915_v15 = vadd.f32 %v2014_v7, %v1997_v19  ;;  %2388 = vmatpush.bf16.msrb.mxu3 %v3780_v9  ;;  %v4065_v19 = vld [vmem:[%s7691_s3 + $0x558] sm:$0xf0]  ;;  %v1983_v20 = vpop.f32.mrf.mxu0  ;;  %v4372_v5 = vor.u32 %v5018_v61, %v4369_v63  ;;  %v5002_v61 = vld [vmem:[%s7691_s3 + $0x72c] sm:$0xf] }
 0x14e   :  { %2438 = vmatpush.bf16.msrb.mxu2 %v4228_v16  ;;  %v4068_v6 = vor.u32 %v4942_v38, %v4065_v19  ;;  %v2001_v29 = vpop.f32.mrf.mxu1  ;;  %2317 = vmatmul.bf16.vlgmr.msra.gmra.mxu3 %v6100_v8  ;;  %v4177_v7 = vld [vmem:[%s7691_s3 + $0x638] sm:$0xf0]  ;;  %v5044_v16 = vld [vmem:[%s7694_s5 + $0x74] sm:$0xf0]  ;;  %v5014_v38 = vld [vmem:[%s7691_s3 + $0x78c] sm:$0xf] }
 0x14f   :  { %2404 = vmatpush.bf16.msrb.mxu0 %v3940_v43  ;;  %v4180_v9 = vor.u32 %v4970_v0, %v4177_v7  ;;  %v4464_v18 = vor.u32 %v5044_v16, %v4463_v10  ;;  %v4353_v43 = vld [vmem:[%s7691_s3 + $0x798] sm:$0xf0]  ;;  %v4966_v19 = vld [vmem:[%s7691_s3 + $0x60c] sm:$0xf]  ;;  %v4431_v7 = vld [vmem:[%s7694_s5 + $0x30] sm:$0xf] }
 0x150   :  { %2422 = vmatpush.bf16.msrb.mxu1 %v4068_v6  ;;  %v4356_v6 = vor.u32 %v5014_v38, %v4353_v43  ;;  %v4305_v63 = vld [vmem:[%s7691_s3 + $0x738] sm:$0xf0]  ;;  %v4511_v10 = vld [vmem:[%s7694_s5 + $0xd0] sm:$0xf]  ;;  %v4998_v43 = vld [vmem:[%s7691_s3 + $0x70c] sm:$0xf] }
 0x151   :  { %2304 = vmatmul.bf16.gmra.mxu2 %v6089_v1  ;;  %2453 = vmatpush.bf16.msra.mxu3 %v4404_v31  ;;  %v2030_v37 = vpop.f32.mrf.mxu3 }
 0x152   :  { %2439 = vmatpush.bf16.msrb.mxu2 %v4212_v54  ;;  %v2031_v46 = vadd.f32 %v2030_v37, %v6863_v34  ;;  %v4934_v34 = vld [vmem:[%s7691_s3 + $0x50c] sm:$0xf]  ;;  %v5040_v37 = vld [vmem:[%s7694_s5 + $0x54] sm:$0xf0] }
 0x153   :  { %2405 = vmatpush.bf16.msrb.mxu0 %v3924_v13  ;;  %v5010_v54 = vld [vmem:[%s7691_s3 + $0x76c] sm:$0xf]  ;;  %v4448_v62 = vor.u32 %v5040_v37, %v4447_v40  ;;  %v4407_v37 = vld [vmem:[%s7694_s5] sm:$0xf] }
 0x154   :  { %v2017_v45 = vpop.f32.mrf.mxu2  ;;  %2423 = vmatpush.bf16.msrb.mxu1 %v4052_v41  ;;  %v2471_v29 = vmax.f32 %v2031_v46, 0.0  ;;  %v4340_v13 = vor.u32 %v5010_v54, %v4337_v35  ;;  %v4527_v41 = vld [vmem:[%s7694_s5 + $0xf0] sm:$0xf]  ;;  %v4321_v46 = vld [vmem:[%s7691_s3 + $0x758] sm:$0xf0] }
 0x155   :  { %v6968_v49 = vadd.f32 %v2017_v45, %v2000_v58  ;;  %2454 = vmatpush.bf16.msra.mxu3 %v4388_v47  ;;  %v4033_v58 = vld [vmem:[%s7691_s3 + $0x518] sm:$0xf0]  ;;  %v6982_v24 = vpop.f32.mrf.mxu0  ;;  %v5006_v45 = vld [vmem:[%s7691_s3 + $0x74c] sm:$0xf]  ;;  %v4495_v54 = vld [vmem:[%s7694_s5 + $0xb0] sm:$0xf] }
 0x156   :  { %2440 = vmatpush.bf16.msrb.mxu2 %v4196_v11  ;;  %v4036_v60 = vor.u32 %v4934_v34, %v4033_v58  ;;  %v6993_v4 = vpop.f32.mrf.mxu1  ;;  %v4324_v11 = vor.u32 %v5006_v45, %v4321_v46  ;;  %v4519_v34 = vld [vmem:[%s7694_s5 + $0xe0] sm:$0xf] }
 0x157   :  { %2406 = vmatpush.bf16.msrb.mxu0 %v3908_v48  ;;  %v5058_v48 = vld [vmem:[%s7694_s5 + $0xe4] sm:$0xf0] }
 0x158   :  { %2424 = vmatpush.bf16.msrb.mxu1 %v4036_v60  ;;  %2335 = vmatmul.bf16.vlgmr.msra.gmra.mxu0 %v5686_v50  ;;  %v4520_v60 = vor.u32 %v5058_v48, %v4519_v34 }
 0x159   :  { %2455 = vmatpush.bf16.msra.mxu3 %v4372_v5  ;;  %2353 = vmatmul.bf16.vlgmr.msra.gmra.mxu1 %v5694_v55  ;;  %v2032_v14 = vpop.f32.mrf.mxu3  ;;  %v4161_v55 = vld [vmem:[%s7691_s3 + $0x618] sm:$0xf0]  ;;  %v4308_v5 = vor.u32 %v5002_v61, %v4305_v63  ;;  %v4471_v63 = vld [vmem:[%s7694_s5 + $0x80] sm:$0xf] }
 0x15a   :  { %2441 = vmatpush.bf16.msrb.mxu2 %v4180_v9  ;;  %v2033_v50 = vadd.f32 %v2032_v14, %v6915_v15  ;;  %v4164_v27 = vor.u32 %v4966_v19, %v4161_v55  ;;  %v5036_v9 = vld [vmem:[%s7694_s5 + $0x34] sm:$0xf0]  ;;  %v4289_v19 = vld [vmem:[%s7691_s3 + $0x718] sm:$0xf0] }
 0x15b   :  { %2881 = vmatpush.bf16.msra.mxu0 %v4464_v18  ;;  %v4432_v16 = vor.u32 %v5036_v9, %v4431_v7  ;;  %v5056_v18 = vld [vmem:[%s7694_s5 + $0xd4] sm:$0xf0] }
 0x15c   :  { %v2019_v20 = vpop.f32.mrf.mxu2  ;;  %v2475_v31 = vmax.f32 %v2033_v50, 0.0  ;;  %v4512_v38 = vor.u32 %v5056_v18, %v4511_v10  ;;  %v4423_v50 = vld [vmem:[%s7694_s5 + $0x20] sm:$0xf]  ;;  %v5039_v18 = vld [vmem:[%s7694_s5 + $0x54] sm:$0xf] }
 0x15d   :  { %2456 = vmatpush.bf16.msra.mxu3 %v4356_v6  ;;  %v7025_v15 = vpop.f32.mrf.mxu0  ;;  %v4503_v6 = vld [vmem:[%s7694_s5 + $0xc0] sm:$0xf] }
 0x15e   :  { %2442 = vmatpush.bf16.msrb.mxu2 %v4164_v27  ;;  %v7033_v36 = vpack.c.bf16 %v2475_v31, %v2471_v29  ;;  %v7035_v39 = vpop.f32.mrf.mxu1  ;;  %2322 = vmatmul.bf16.gmra.mxu3 %v6188_v2  ;;  %v5054_v27 = vld [vmem:[%s7694_s5 + $0xc4] sm:$0xf0]  ;;  %v4415_v31 = vld [vmem:[%s7694_s5 + $0x10] sm:$0xf] }
 0x15f   :  { %2882 = vmatpush.bf16.msra.mxu0 %v4456_v32  ;;  %v4504_v25 = vor.u32 %v5054_v27, %v4503_v6  ;;  %v5032_v32 = vld [vmem:[%s7694_s5 + $0x14] sm:$0xf0]  ;;  %v4441_v6 = vld [vmem:[%s7694_s5 + $0x48] sm:$0xf0] }
 0x160   :  { %v4416_v35 = vor.u32 %v5032_v32, %v4415_v31  ;;  %v5035_v32 = vld [vmem:[%s7694_s5 + $0x34] sm:$0xf] }
 0x161   :  { %2371 = vmatmul.bf16.vlgmr.msra.gmra.mxu2 %v5740_v23  ;;  %2457 = vmatpush.bf16.msra.mxu3 %v4340_v13  ;;  %v2035_v44 = vpop.f32.mrf.mxu3  ;;  %v4528_v23 = vor.u32 %v5060_v42, %v4527_v41  ;;  %v5030_v41 = vld [vmem:[%s7694_s5 + $0x4] sm:$0xf0] }
 0x162   :  { %v7058_v47 = vadd.f32 %v2035_v44, %v6968_v49  ;;  %v4440_v49 = vor.u32 %v5038_v52, %v4439_v51  ;;  %v4408_v42 = vor.u32 %v5030_v41, %v4407_v37  ;;  %v5050_v44 = vld [vmem:[%s7694_s5 + $0xa4] sm:$0xf0]  ;;  %v5048_v51 = vld [vmem:[%s7694_s5 + $0x94] sm:$0xf0]  ;;  %v5043_v52 = vld [vmem:[%s7694_s5 + $0x74] sm:$0xf] }
 0x163   :  { %2883 = vmatpush.bf16.msra.mxu0 %v4448_v62  ;;  %2899 = vmatpush.bf16.msra.mxu1 %v4528_v23  ;;  %v4487_v62 = vld [vmem:[%s7694_s5 + $0xa0] sm:$0xf] }
 0x164   :  { %v7060_v22 = vpop.f32.mrf.mxu2  ;;  %v4488_v45 = vor.u32 %v5050_v44, %v4487_v62 }
 0x165   :  { %2458 = vmatpush.bf16.msra.mxu3 %v4324_v11  ;;  %v7074_v58 = vpop.f32.mrf.mxu0  ;;  %v4479_v11 = vld [vmem:[%s7694_s5 + $0x90] sm:$0xf] }
 0x166   :  { %v7082_v0 = vpop.f32.mrf.mxu1  ;;  %v4480_v34 = vor.u32 %v5048_v51, %v4479_v11 }
 0x167   :  { %2884 = vmatpush.bf16.msra.mxu0 %v4440_v49  ;;  %2900 = vmatpush.bf16.msra.mxu1 %v4520_v60  ;;  %v4465_v49 = vld [vmem:[%s7694_s5 + $0x78] sm:$0xf0] }
 0x168   :  { %2340 = vmatmul.bf16.gmra.mxu0 %v5800_v56  ;;  %v4292_v56 = vor.u32 %v4998_v43, %v4289_v19  ;;  %v4468_v60 = vor.u32 %v5043_v52, %v4465_v49 }
 0x169   :  { %2459 = vmatpush.bf16.msra.mxu3 %v4308_v5  ;;  %2358 = vmatmul.bf16.gmra.mxu1 %v5802_v57  ;;  %v2037_v14 = vpop.f32.mrf.mxu3  ;;  %v5034_v57 = vld [vmem:[%s7694_s5 + $0x24] sm:$0xf0]  ;;  %v5041_v5 = vld [vmem:[%s7694_s5 + $0x64] sm:$0xf] }
 0x16a   :  { %v4424_v55 = vor.u32 %v5034_v57, %v4423_v50  ;;  %v4449_v14 = vld [vmem:[%s7694_s5 + $0x58] sm:$0xf0]  ;;  %v5037_v57 = vld [vmem:[%s7694_s5 + $0x44] sm:$0xf] }
 0x16b   :  { %2885 = vmatpush.bf16.msra.mxu0 %v4432_v16  ;;  %2901 = vmatpush.bf16.msra.mxu1 %v4512_v38  ;;  %v5059_v38 = vld [vmem:[%s7694_s5 + $0xf4] sm:$0xf]  ;;  %v4452_v43 = vor.u32 %v5039_v18, %v4449_v14 }
 0x16c   :  { %v7104_v20 = vpop.f32.mrf.mxu2 }
 0x16d   :  { %2460 = vmatpush.bf16.msra.mxu3 %v4292_v56  ;;  %v2055_v28 = vpop.f32.mrf.mxu0  ;;  %v608_v56 = vperm.slane %v6518_v21, 1  ;;  %v4521_v21 = vld [vmem:[%s7694_s5 + $0xe8] sm:$0xf0] }
 0x16e   :  { %v2073_v29 = vpop.f32.mrf.mxu1  ;;  %2389 = vmatmul.bf16.vlgmr.msrb.gmra.mxu3 %v5860_v30  ;;  %v5052_v30 = vld [vmem:[%s7694_s5 + $0xb4] sm:$0xf0]  ;;  %v4444_v28 = vor.u32 %v5037_v57, %v4441_v6 }
 0x16f   :  { %2886 = vmatpush.bf16.msra.mxu0 %v4424_v55  ;;  %2902 = vmatpush.bf16.msra.mxu1 %v4504_v25  ;;  %v5057_v55 = vld [vmem:[%s7694_s5 + $0xe4] sm:$0xf]  ;;  %v2049_v29 = vadd.f32 %v6982_v24, %v608_v56  ;;  %v4513_v24 = vld [vmem:[%s7694_s5 + $0xd8] sm:$0xf0] }
 0x170   :  { %v4524_v25 = vor.u32 %v5057_v55, %v4521_v21 }
 0x171   :  { %2376 = vmatmul.bf16.gmra.mxu2 %v5849_v26  ;;  %v7132_v13 = vpop.f32.mrf.mxu3  ;;  %v4496_v26 = vor.u32 %v5052_v30, %v4495_v54  ;;  %v4433_v54 = vld [vmem:[%s7694_s5 + $0x38] sm:$0xf0]  ;;  %v2051_v30 = vadd.f32 %v7025_v15, %v608_v56  ;;  %v2067_v62 = vadd.f32 %v6993_v4, %v2049_v29  ;;  %v5033_v15 = vld [vmem:[%s7694_s5 + $0x24] sm:$0xf]  ;;  %v4505_v4 = vld [vmem:[%s7694_s5 + $0xc8] sm:$0xf0] }
 0x172   :  { %v4436_v37 = vor.u32 %v5035_v32, %v4433_v54  ;;  %v5045_v29 = vld [vmem:[%s7694_s5 + $0x84] sm:$0xf] }
 0x173   :  { %2887 = vmatpush.bf16.msra.mxu0 %v4416_v35  ;;  %2903 = vmatpush.bf16.msra.mxu1 %v4496_v26  ;;  %v5055_v35 = vld [vmem:[%s7694_s5 + $0xd4] sm:$0xf]  ;;  %v2069_v44 = vadd.f32 %v7035_v39, %v2051_v30 }
 0x174   :  { %v7134_v40 = vpop.f32.mrf.mxu2  ;;  %v4516_v41 = vor.u32 %v5055_v35, %v4513_v24  ;;  %v5031_v39 = vld [vmem:[%s7694_s5 + $0x14] sm:$0xf] }
 0x175   :  { %v7148_v23 = vpop.f32.mrf.mxu0 }
 0x176   :  { %v7150_v46 = vpop.f32.mrf.mxu1 }
 0x177   :  { %2888 = vmatpush.bf16.msra.mxu0 %v4408_v42  ;;  %2904 = vmatpush.bf16.msra.mxu1 %v4488_v45  ;;  %v2085_v45 = vadd.f32 %v7060_v22, %v2067_v62  ;;  %v4417_v22 = vld [vmem:[%s7694_s5 + $0x18] sm:$0xf0] }
 0x178   :  { %2407 = vmatmul.bf16.vlgmr.msrb.gmra.mxu0 %v5920_v12  ;;  %v5046_v12 = vld [vmem:[%s7694_s5 + $0x84] sm:$0xf0] }
 0x179   :  { %2425 = vmatmul.bf16.vlgmr.msrb.gmra.mxu1 %v5940_v17  ;;  %v7166_v48 = vpop.f32.mrf.mxu3  ;;  %v4472_v7 = vor.u32 %v5046_v12, %v4471_v63  ;;  %v4457_v17 = vld [vmem:[%s7694_s5 + $0x68] sm:$0xf0]  ;;  %v2103_v49 = vadd.f32 %v7132_v13, %v2085_v45  ;;  %v4420_v63 = vor.u32 %v5031_v39, %v4417_v22  ;;  %v4567_v22 = vld [vmem:[%s7694_s5 + $0x140] sm:$0xf] }
 0x17a   :  { %v4460_v10 = vor.u32 %v5041_v5, %v4457_v17  ;;  %v5029_v17 = vld [vmem:[%s7694_s5 + $0x4] sm:$0xf] }
 0x17b   :  { %2905 = vmatpush.bf16.msra.mxu1 %v4480_v34  ;;  %2953 = vmatpush.bf16.msrb.mxu0 %v4468_v60  ;;  %v2087_v34 = vadd.f32 %v7104_v20, %v2069_v44  ;;  %v5051_v20 = vld [vmem:[%s7694_s5 + $0xb4] sm:$0xf]  ;;  %v2121_v13 = vadd.f32 %v7148_v23, %v2103_v49  ;;  %v4409_v23 = vld [vmem:[%s7694_s5 + $0x8] sm:$0xf0] }
 0x17c   :  { %v2091_v61 = vpop.f32.mrf.mxu2 }
 0x17d   :  { %v7180_v9 = vpop.f32.mrf.mxu0  ;;  %v2105_v61 = vadd.f32 %v7166_v48, %v2087_v34  ;;  %v5049_v48 = vld [vmem:[%s7694_s5 + $0xa4] sm:$0xf]  ;;  %v2139_v18 = vadd.f32 %v7150_v46, %v2121_v13  ;;  %v4481_v46 = vld [vmem:[%s7694_s5 + $0x98] sm:$0xf0] }
 0x17e   :  { %v7182_v16 = vpop.f32.mrf.mxu1  ;;  %2394 = vmatmul.bf16.gmra.mxu3 %v5984_v53  ;;  %v4529_v53 = vld [vmem:[%s7694_s5 + $0xf8] sm:$0xf0] }
 0x17f   :  { %2906 = vmatpush.bf16.msra.mxu1 %v4472_v7  ;;  %2954 = vmatpush.bf16.msrb.mxu0 %v4460_v10  ;;  %v4532_v19 = vor.u32 %v5059_v38, %v4529_v53  ;;  %v2123_v5 = vadd.f32 %v7180_v9, %v2105_v61  ;;  %v2054_v10 = vadd.f32 %v7074_v58, %v608_v56  ;;  %v4489_v9 = vld [vmem:[%s7694_s5 + $0xa8] sm:$0xf0]  ;;  %v5047_v58 = vld [vmem:[%s7694_s5 + $0x94] sm:$0xf] }
 0x180   :  { %v4412_v38 = vor.u32 %v5029_v17, %v4409_v23  ;;  %v4551_v23 = vld [vmem:[%s7694_s5 + $0x120] sm:$0xf] }
 0x181   :  { %2443 = vmatmul.bf16.vlgmr.msrb.gmra.mxu2 %v5986_v59  ;;  %v7198_v59 = vpop.f32.mrf.mxu3  ;;  %v2141_v53 = vadd.f32 %v7182_v16, %v2123_v5  ;;  %v2072_v56 = vadd.f32 %v7082_v0, %v2054_v10  ;;  %v4484_v16 = vor.u32 %v5047_v58, %v4481_v46  ;;  %v4473_v0 = vld [vmem:[%s7694_s5 + $0x88] sm:$0xf0]  ;;  %v4535_v46 = vld [vmem:[%s7694_s5 + $0x100] sm:$0xf] }
 0x182   :  { %v4476_v30 = vor.u32 %v5045_v29, %v4473_v0 }
 0x183   :  { %2971 = vmatpush.bf16.msrb.mxu1 %v4532_v19  ;;  %2955 = vmatpush.bf16.msrb.mxu0 %v4452_v43  ;;  %v4492_v43 = vor.u32 %v5049_v48, %v4489_v9  ;;  %v5066_v48 = vld [vmem:[%s7694_s5 + $0x124] sm:$0xf0] }
 0x184   :  { %v7201_v50 = vpop.f32.mrf.mxu2  ;;  %v4552_v10 = vor.u32 %v5066_v48, %v4551_v23  ;;  %v5063_v23 = vld [vmem:[%s7694_s5 + $0x114] sm:$0xf]  ;;  %v4545_v48 = vld [vmem:[%s7694_s5 + $0x118] sm:$0xf0] }
 0x185   :  { %v7215_v27 = vpop.f32.mrf.mxu0  ;;  %v2157_v19 = vadd.f32 %v7201_v50, %v2139_v18  ;;  %v2090_v50 = vadd.f32 %v7134_v40, %v2072_v56  ;;  %v5062_v56 = vld [vmem:[%s7694_s5 + $0x104] sm:$0xf0] }
 0x186   :  { %v7218_v31 = vpop.f32.mrf.mxu1 }
 0x187   :  { %2972 = vmatpush.bf16.msrb.mxu1 %v4524_v25  ;;  %2956 = vmatpush.bf16.msrb.mxu0 %v4444_v28  ;;  %v2108_v32 = vadd.f32 %v7198_v59, %v2090_v50  ;;  %v5076_v59 = vld [vmem:[%s7694_s5 + $0x174] sm:$0xf0] }
 0x188   :  { %2412 = vmatmul.bf16.gmra.mxu0 %v6045_v33  ;;  %v4425_v33 = vld [vmem:[%s7694_s5 + $0x28] sm:$0xf0] }
 0x189   :  { %2430 = vmatmul.bf16.gmra.mxu1 %v6056_v3  ;;  %v2109_v26 = vpop.f32.mrf.mxu3  ;;  %v5053_v3 = vld [vmem:[%s7694_s5 + $0xc4] sm:$0xf]  ;;  %v4428_v51 = vor.u32 %v5033_v15, %v4425_v33  ;;  %v2126_v40 = vadd.f32 %v7215_v27, %v2108_v32  ;;  %v2479_v27 = vmax.f32 %v7058_v47, 0.0 }
 0x18a   :  { %v4508_v52 = vor.u32 %v5053_v3, %v4505_v4  ;;  %v5074_v3 = vld [vmem:[%s7694_s5 + $0x164] sm:$0xf0]  ;;  %v5073_v32 = vld [vmem:[%s7694_s5 + $0x164] sm:$0xf] }
 0x18b   :  { %2973 = vmatpush.bf16.msrb.mxu1 %v4516_v41  ;;  %2957 = vmatpush.bf16.msrb.mxu0 %v4436_v37  ;;  %v4591_v41 = vld [vmem:[%s7694_s5 + $0x170] sm:$0xf]  ;;  %v2144_v15 = vadd.f32 %v7218_v31, %v2126_v40 }
 0x18c   :  { %v2158_v42 = vpop.f32.mrf.mxu2  ;;  %v4592_v62 = vor.u32 %v5076_v59, %v4591_v41  ;;  %v4575_v31 = vld [vmem:[%s7694_s5 + $0x150] sm:$0xf]  ;;  %v5071_v41 = vld [vmem:[%s7694_s5 + $0x154] sm:$0xf]  ;;  %v4577_v59 = vld [vmem:[%s7694_s5 + $0x158] sm:$0xf0] }
 0x18d   :  { %v2127_v11 = vpop.f32.mrf.mxu0  ;;  %v2159_v6 = vadd.f32 %v2158_v42, %v2141_v53 }
 0x18e   :  { %v2145_v60 = vpop.f32.mrf.mxu1  ;;  %2461 = vmatmul.bf16.vlgmr.msra.gmra.mxu3 %v6100_v8  ;;  %2917 = vmatpush.bf16.msra.mxu2 %v4592_v62  ;;  %v7332_v11 = vpack.c.bf16 %v2479_v27, %v2479_v27 }
 0x18f   :  { %2974 = vmatpush.bf16.msrb.mxu1 %v4508_v52  ;;  %2958 = vmatpush.bf16.msrb.mxu0 %v4428_v51  ;;  %v5072_v52 = vld [vmem:[%s7694_s5 + $0x154] sm:$0xf0] }
 0x190   :  { %v4576_v34 = vor.u32 %v5072_v52, %v4575_v31  ;;  %v5067_v52 = vld [vmem:[%s7694_s5 + $0x134] sm:$0xf] }
 0x191   :  { %2448 = vmatmul.bf16.gmra.mxu2 %v6089_v1  ;;  %v4497_v1 = vld [vmem:[%s7694_s5 + $0xb8] sm:$0xf0]  ;;  %v2174_v8 = vpop.f32.mrf.mxu3 }
 0x192   :  { %v4500_v12 = vor.u32 %v5051_v20, %v4497_v1  ;;  %v2175_v55 = vadd.f32 %v2174_v8, %v2157_v19  ;;  %v5070_v20 = vld [vmem:[%s7694_s5 + $0x144] sm:$0xf0] }
 0x193   :  { %2959 = vmatpush.bf16.msrb.mxu0 %v4420_v63  ;;  %v4568_v13 = vor.u32 %v5070_v20, %v4567_v22  ;;  %v4559_v63 = vld [vmem:[%s7694_s5 + $0x130] sm:$0xf] }
 0x194   :  { %v2161_v7 = vpop.f32.mrf.mxu2  ;;  %2975 = vmatpush.bf16.msrb.mxu1 %v4500_v12  ;;  %v2472_v54 = vmax.f32 %v2175_v55, 0.0  ;;  %v5068_v12 = vld [vmem:[%s7694_s5 + $0x134] sm:$0xf0] }
 0x195   :  { %v7283_v14 = vpop.f32.mrf.mxu0  ;;  %v2162_v44 = vadd.f32 %v2161_v7, %v2144_v15  ;;  %v4560_v5 = vor.u32 %v5068_v12, %v4559_v63 }
 0x196   :  { %v7287_v57 = vpop.f32.mrf.mxu1 }
 0x197   :  { %2960 = vmatpush.bf16.msrb.mxu0 %v4412_v38  ;;  %v4543_v38 = vld [vmem:[%s7694_s5 + $0x110] sm:$0xf] }
 0x198   :  { %2976 = vmatpush.bf16.msrb.mxu1 %v4492_v43  ;;  %2889 = vmatmul.bf16.vlgmr.msra.gmra.mxu0 %v7033_v36  ;;  %v5064_v43 = vld [vmem:[%s7694_s5 + $0x114] sm:$0xf0] }
 0x199   :  { %v2176_v21 = vpop.f32.mrf.mxu3  ;;  %v4544_v53 = vor.u32 %v5064_v43, %v4543_v38 }
 0x19a   :  { %v2177_v25 = vadd.f32 %v2176_v21, %v2159_v6  ;;  %v4536_v6 = vor.u32 %v5062_v56, %v4535_v46  ;;  %v4593_v21 = vld [vmem:[%s7694_s5 + $0x178] sm:$0xf0]  ;;  %v4537_v46 = vld [vmem:[%s7694_s5 + $0x108] sm:$0xf0] }
 0x19c   :  { %v2163_v28 = vpop.f32.mrf.mxu2  ;;  %2977 = vmatpush.bf16.msrb.mxu1 %v4484_v16  ;;  %v2476_v35 = vmax.f32 %v2177_v25, 0.0  ;;  %v7395_v25 = vld [vmem:[%s7693_s4] sm:$0xf] }
 0x19d   :  { %v7305_v24 = vpop.f32.mrf.mxu0  ;;  %v609_v29 = vperm.slane %v7395_v25, 2 }
 0x19e   :  { %v7308_v26 = vpack.c.bf16 %v2476_v35, %v2472_v54  ;;  %v7310_v37 = vpop.f32.mrf.mxu1  ;;  %2466 = vmatmul.bf16.gmra.mxu3 %v6188_v2  ;;  %v4583_v2 = vld [vmem:[%s7694_s5 + $0x160] sm:$0xf]  ;;  %v4585_v54 = vld [vmem:[%s7694_s5 + $0x168] sm:$0xf0] }
 0x19f   :  { %v4584_v45 = vor.u32 %v5074_v3, %v4583_v2  ;;  %v4588_v35 = vor.u32 %v5073_v32, %v4585_v54  ;;  %v2193_v40 = vadd.f32 %v7283_v14, %v609_v29  ;;  %v2195_v62 = vadd.f32 %v7305_v24, %v609_v29  ;;  %v5069_v2 = vld [vmem:[%s7694_s5 + $0x144] sm:$0xf]  ;;  %v4569_v3 = vld [vmem:[%s7694_s5 + $0x148] sm:$0xf0] }
 0x1a0   :  { %2978 = vmatpush.bf16.msrb.mxu1 %v4476_v30 }
 0x1a1   :  { %2907 = vmatmul.bf16.vlgmr.msra.gmra.mxu1 %v7308_v26  ;;  %v2179_v42 = vpop.f32.mrf.mxu3  ;;  %2918 = vmatpush.bf16.msra.mxu2 %v4584_v45  ;;  %v2211_v15 = vadd.f32 %v7287_v57, %v2193_v40  ;;  %v4572_v45 = vor.u32 %v5069_v2, %v4569_v3 }
 0x1a2   :  { %v2180_v47 = vadd.f32 %v2179_v42, %v2162_v44  ;;  %v4580_v42 = vor.u32 %v5071_v41, %v4577_v59  ;;  %v2213_v44 = vadd.f32 %v7310_v37, %v2195_v62 }
 0x1a4   :  { %v7322_v33 = vpop.f32.mrf.mxu2  ;;  %v2480_v60 = vmax.f32 %v2180_v47, 0.0 }
 0x1a5   :  { %v7330_v4 = vpop.f32.mrf.mxu0  ;;  %2919 = vmatpush.bf16.msra.mxu2 %v4576_v34  ;;  %v2229_v24 = vadd.f32 %v7322_v33, %v2211_v15  ;;  %v4561_v34 = vld [vmem:[%s7694_s5 + $0x138] sm:$0xf0] }
 0x1a6   :  { %v7334_v51 = vpop.f32.mrf.mxu1  ;;  %v7351_v1 = vpack.c.bf16 %v2480_v60, %v2480_v60  ;;  %v4564_v37 = vor.u32 %v5067_v52, %v4561_v34  ;;  %v5084_v52 = vld [vmem:[%s7694_s5 + $0x1b4] sm:$0xf0] }
 0x1a8   :  { %2894 = vmatmul.bf16.gmra.mxu0 %v7332_v11 }
 0x1a9   :  { %v2181_v49 = vpop.f32.mrf.mxu3  ;;  %2920 = vmatpush.bf16.msra.mxu2 %v4568_v13  ;;  %v4553_v13 = vld [vmem:[%s7694_s5 + $0x128] sm:$0xf0] }
 0x1ac   :  { %v7343_v39 = vpop.f32.mrf.mxu2 }
 0x1ad   :  { %v2199_v61 = vpop.f32.mrf.mxu0  ;;  %2921 = vmatpush.bf16.msra.mxu2 %v4560_v5  ;;  %v2231_v47 = vadd.f32 %v7343_v39, %v2213_v44  ;;  %v5065_v39 = vld [vmem:[%s7694_s5 + $0x124] sm:$0xf]  ;;  %v4631_v44 = vld [vmem:[%s7694_s5 + $0x1c0] sm:$0xf] }
 0x1ae   :  { %v2217_v8 = vpop.f32.mrf.mxu1  ;;  %v2198_v61 = vadd.f32 %v7330_v4, %v609_v29  ;;  %v4556_v63 = vor.u32 %v5065_v39, %v4553_v13  ;;  %v5092_v29 = vld [vmem:[%s7694_s5 + $0x1f4] sm:$0xf0]  ;;  %v4607_v13 = vld [vmem:[%s7694_s5 + $0x190] sm:$0xf] }
 0x1b0   :  { %v2216_v4 = vadd.f32 %v7334_v51, %v2198_v61  ;;  %v5080_v61 = vld [vmem:[%s7694_s5 + $0x194] sm:$0xf0] }
 0x1b1   :  { %2912 = vmatmul.bf16.gmra.mxu1 %v7351_v1  ;;  %v2246_v7 = vpop.f32.mrf.mxu3  ;;  %2922 = vmatpush.bf16.msra.mxu2 %v4552_v10 }
 0x1b2   :  { %v2247_v31 = vadd.f32 %v2246_v7, %v2229_v24  ;;  %v5086_v24 = vld [vmem:[%s7694_s5 + $0x1c4] sm:$0xf0] }
 0x1b4   :  { %v7360_v17 = vpop.f32.mrf.mxu2 }
 0x1b5   :  { %v2264_v18 = vpop.f32.mrf.mxu0  ;;  %2923 = vmatpush.bf16.msra.mxu2 %v4544_v53  ;;  %v2234_v43 = vadd.f32 %v7360_v17, %v2216_v4 }
 0x1b6   :  { %v7368_v9 = vpop.f32.mrf.mxu1  ;;  %v2265_v49 = vadd.f32 %v2264_v18, %v2247_v31 }
 0x1b8   :  { %2961 = vmatmul.bf16.vlgmr.msrb.gmra.mxu0 %v7033_v36  ;;  %v5075_v36 = vld [vmem:[%s7694_s5 + $0x174] sm:$0xf]  ;;  %v2283_v8 = vadd.f32 %v7368_v9, %v2265_v49  ;;  %v4548_v9 = vor.u32 %v5063_v23, %v4545_v48  ;;  %v5078_v23 = vld [vmem:[%s7694_s5 + $0x184] sm:$0xf0] }
 0x1b9   :  { %v2248_v19 = vpop.f32.mrf.mxu3  ;;  %2924 = vmatpush.bf16.msra.mxu2 %v4536_v6  ;;  %v4596_v50 = vor.u32 %v5075_v36, %v4593_v21 }
 0x1ba   :  { %v2249_v60 = vadd.f32 %v2248_v19, %v2231_v47 }
 0x1bc   :  { %v2235_v58 = vpop.f32.mrf.mxu2 }
 0x1bd   :  { %v2266_v55 = vpop.f32.mrf.mxu0  ;;  %2989 = vmatpush.bf16.msrb.mxu2 %v4596_v50  ;;  %v5061_v58 = vld [vmem:[%s7694_s5 + $0x104] sm:$0xf]  ;;  %v4655_v50 = vld [vmem:[%s7694_s5 + $0x1f0] sm:$0xf] }
 0x1be   :  { %v2284_v16 = vpop.f32.mrf.mxu1  ;;  %v2267_v22 = vadd.f32 %v2266_v55, %v2249_v60  ;;  %v4540_v55 = vor.u32 %v5061_v58, %v4537_v46  ;;  %v5089_v58 = vld [vmem:[%s7694_s5 + $0x1e4] sm:$0xf]  ;;  %v4649_v46 = vld [vmem:[%s7694_s5 + $0x1e8] sm:$0xf0] }
 0x1c1   :  { %2979 = vmatmul.bf16.vlgmr.msrb.gmra.mxu1 %v7308_v26  ;;  %v7390_v28 = vpop.f32.mrf.mxu3  ;;  %2990 = vmatpush.bf16.msrb.mxu2 %v4588_v35  ;;  %v4647_v35 = vld [vmem:[%s7694_s5 + $0x1e0] sm:$0xf] }
 0x1c2   :  { %v2252_v56 = vadd.f32 %v7390_v28, %v2234_v43  ;;  %v4656_v28 = vor.u32 %v5092_v29, %v4655_v50 }
 0x1c4   :  { %v2300_v0 = vpop.f32.mrf.mxu2  ;;  %2935 = vmatpush.bf16.msrb.mxu3 %v4656_v28  ;;  %v5085_v28 = vld [vmem:[%s7694_s5 + $0x1c4] sm:$0xf] }
 0x1c5   :  { %v2269_v30 = vpop.f32.mrf.mxu0  ;;  %2991 = vmatpush.bf16.msrb.mxu2 %v4580_v42  ;;  %v2301_v5 = vadd.f32 %v2300_v0, %v2283_v8  ;;  %v4608_v8 = vor.u32 %v5080_v61, %v4607_v13 }
 0x1c6   :  { %v7405_v26 = vpop.f32.mrf.mxu1  ;;  %v2270_v36 = vadd.f32 %v2269_v30, %v2252_v56  ;;  %v5090_v30 = vld [vmem:[%s7694_s5 + $0x1e4] sm:$0xf0]  ;;  %v4652_v56 = vor.u32 %v5089_v58, %v4649_v46 }
 0x1c7   :  { %v4648_v41 = vor.u32 %v5090_v30, %v4647_v35 }
 0x1c8   :  { %2966 = vmatmul.bf16.gmra.mxu0 %v7332_v11  ;;  %v2288_v32 = vadd.f32 %v7405_v26, %v2270_v36  ;;  %v4639_v26 = vld [vmem:[%s7694_s5 + $0x1d0] sm:$0xf]  ;;  %v4641_v36 = vld [vmem:[%s7694_s5 + $0x1d8] sm:$0xf0] }
 0x1c9   :  { %v2253_v27 = vpop.f32.mrf.mxu3  ;;  %2992 = vmatpush.bf16.msrb.mxu2 %v4572_v45  ;;  %2936 = vmatpush.bf16.msrb.mxu3 %v4648_v41  ;;  %v4632_v45 = vor.u32 %v5086_v24, %v4631_v44 }
 0x1ca   :  { %v5088_v27 = vld [vmem:[%s7694_s5 + $0x1d4] sm:$0xf0] }
 0x1cb   :  { %v4640_v15 = vor.u32 %v5088_v27, %v4639_v26  ;;  %v5083_v27 = vld [vmem:[%s7694_s5 + $0x1b4] sm:$0xf] }
 0x1cc   :  { %v2302_v14 = vpop.f32.mrf.mxu2 }
 0x1cd   :  { %v2271_v11 = vpop.f32.mrf.mxu0  ;;  %2993 = vmatpush.bf16.msrb.mxu2 %v4564_v37  ;;  %2937 = vmatpush.bf16.msrb.mxu3 %v4640_v15  ;;  %v4615_v37 = vld [vmem:[%s7694_s5 + $0x1a0] sm:$0xf] }
 0x1ce   :  { %v2289_v57 = vpop.f32.mrf.mxu1 }
 0x1cf   :  { %v4623_v57 = vld [vmem:[%s7694_s5 + $0x1b0] sm:$0xf] }
 0x1d0   :  { %v4624_v34 = vor.u32 %v5084_v52, %v4623_v57 }
 0x1d1   :  { %2984 = vmatmul.bf16.gmra.mxu1 %v7351_v1  ;;  %v2318_v33 = vpop.f32.mrf.mxu3  ;;  %v2285_v1 = vadd.f32 %v2284_v16, %v2267_v22  ;;  %2994 = vmatpush.bf16.msrb.mxu2 %v4556_v63 }
 0x1d2   :  { %v2319_v18 = vadd.f32 %v2318_v33, %v2301_v5  ;;  %2938 = vmatpush.bf16.msrb.mxu3 %v4632_v45  ;;  %v5082_v33 = vld [vmem:[%s7694_s5 + $0x1a4] sm:$0xf0]  ;;  %v4599_v5 = vld [vmem:[%s7694_s5 + $0x180] sm:$0xf] }
 0x1d3   :  { %v2303_v10 = vadd.f32 %v2302_v14, %v2285_v1  ;;  %v4616_v22 = vor.u32 %v5082_v33, %v4615_v37  ;;  %v4600_v48 = vor.u32 %v5078_v23, %v4599_v5  ;;  %v4609_v37 = vld [vmem:[%s7694_s5 + $0x198] sm:$0xf0] }
 0x1d4   :  { %v2305_v20 = vpop.f32.mrf.mxu2  ;;  %v2473_v51 = vmax.f32 %v2319_v18, 0.0  ;;  %v5091_v18 = vld [vmem:[%s7694_s5 + $0x1f4] sm:$0xf] }
 0x1d5   :  { %v7440_v12 = vpop.f32.mrf.mxu0  ;;  %2995 = vmatpush.bf16.msrb.mxu2 %v4548_v9  ;;  %v2306_v40 = vadd.f32 %v2305_v20, %v2288_v32  ;;  %v4657_v9 = vld [vmem:[%s7694_s5 + $0x1f8] sm:$0xf0] }
 0x1d6   :  { %v7442_v7 = vpop.f32.mrf.mxu1  ;;  %2939 = vmatpush.bf16.msrb.mxu3 %v4624_v34 }
 0x1d9   :  { %v2320_v38 = vpop.f32.mrf.mxu3  ;;  %2996 = vmatpush.bf16.msrb.mxu2 %v4540_v55 }
 0x1da   :  { %v2321_v19 = vadd.f32 %v2320_v38, %v2303_v10  ;;  %2940 = vmatpush.bf16.msrb.mxu3 %v4616_v22  ;;  %v4660_v38 = vor.u32 %v5091_v18, %v4657_v9  ;;  %v4601_v22 = vld [vmem:[%s7694_s5 + $0x188] sm:$0xf0] }
 0x1dc   :  { %v2307_v53 = vpop.f32.mrf.mxu2  ;;  %v2477_v6 = vmax.f32 %v2321_v19, 0.0 }
 0x1dd   :  { %v7459_v16 = vpop.f32.mrf.mxu0  ;;  %v610_v53 = vperm.slane %v7395_v25, 3  ;;  %v5087_v25 = vld [vmem:[%s7694_s5 + $0x1d4] sm:$0xf] }
 0x1de   :  { %v2485_v17 = vpack.c.bf16 %v2477_v6, %v2473_v51  ;;  %v7461_v21 = vpop.f32.mrf.mxu1  ;;  %2941 = vmatpush.bf16.msrb.mxu3 %v4608_v8 }
 0x1df   :  { %v2337_v6 = vadd.f32 %v7440_v12, %v610_v53  ;;  %v2339_v50 = vadd.f32 %v7459_v16, %v610_v53  ;;  %v4633_v12 = vld [vmem:[%s7694_s5 + $0x1c8] sm:$0xf0] }
 0x1e0   :  { %2925 = vmatmul.bf16.vlgmr.msra.gmra.mxu2 %v2485_v17  ;;  %v4636_v35 = vor.u32 %v5085_v28, %v4633_v12 }
 0x1e1   :  { %v2323_v0 = vpop.f32.mrf.mxu3  ;;  %v2357_v30 = vadd.f32 %v7461_v21, %v2339_v50 }
 0x1e2   :  { %v2324_v62 = vadd.f32 %v2323_v0, %v2306_v40  ;;  %2942 = vmatpush.bf16.msrb.mxu3 %v4600_v48  ;;  %v2355_v0 = vadd.f32 %v7442_v7, %v2337_v6  ;;  %v4625_v7 = vld [vmem:[%s7694_s5 + $0x1b8] sm:$0xf0] }
 0x1e3   :  { %v4628_v21 = vor.u32 %v5083_v27, %v4625_v7 }
 0x1e4   :  { %v7470_v54 = vpop.f32.mrf.mxu2  ;;  %v2481_v2 = vmax.f32 %v2324_v62, 0.0 }
 0x1e5   :  { %v7478_v59 = vpop.f32.mrf.mxu0  ;;  %v2373_v40 = vadd.f32 %v7470_v54, %v2355_v0  ;;  %v5081_v54 = vld [vmem:[%s7694_s5 + $0x1a4] sm:$0xf] }
 0x1e6   :  { %v7480_v42 = vpop.f32.mrf.mxu1  ;;  %v7496_v47 = vpack.c.bf16 %v2481_v2, %v2481_v2  ;;  %3007 = vmatpush.bf16.msra.mxu3 %v4660_v38  ;;  %v4617_v2 = vld [vmem:[%s7694_s5 + $0x1a8] sm:$0xf0] }
 0x1e7   :  { %v4620_v45 = vor.u32 %v5081_v54, %v4617_v2 }
 0x1e9   :  { %v2325_v14 = vpop.f32.mrf.mxu3 }
 0x1ea   :  { %3008 = vmatpush.bf16.msra.mxu3 %v4652_v56 }
 0x1ec   :  { %v7488_v3 = vpop.f32.mrf.mxu2 }
 0x1ed   :  { %v2343_v11 = vpop.f32.mrf.mxu0  ;;  %v2375_v16 = vadd.f32 %v7488_v3, %v2357_v30 }
 0x1ee   :  { %v2361_v31 = vpop.f32.mrf.mxu1  ;;  %v2342_v11 = vadd.f32 %v7478_v59, %v610_v53  ;;  %v5077_v59 = vld [vmem:[%s7694_s5 + $0x184] sm:$0xf] }
 0x1ef   :  { %v4604_v23 = vor.u32 %v5077_v59, %v4601_v22  ;;  %v5095_v59 = vld [vmem:[%s7697_s7 + $0x10] sm:$0xff]  ;;  %v5094_v22 = vld [vmem:[%s7697_s7 + $0x8] sm:$0xff] }
 0x1f0   :  { %2930 = vmatmul.bf16.gmra.mxu2 %v7496_v47 }
 0x1f1   :  { %v2390_v49 = vpop.f32.mrf.mxu3 }
 0x1f2   :  { %v2391_v62 = vadd.f32 %v2390_v49, %v2373_v40  ;;  %v5079_v49 = vld [vmem:[%s7694_s5 + $0x194] sm:$0xf] }
 0x1f3   :  { %v4612_v33 = vor.u32 %v5079_v49, %v4609_v37  ;;  %v5096_v49 = vld [vmem:[%s7697_s7 + $0x18] sm:$0xff] }
 0x1f4   :  { %v7505_v60 = vpop.f32.mrf.mxu2 }
 0x1f5   :  { %v2408_v20 = vpop.f32.mrf.mxu0 }
 0x1f6   :  { %v2426_v39 = vpop.f32.mrf.mxu1  ;;  %v2409_v15 = vadd.f32 %v2408_v20, %v2391_v62  ;;  %v2360_v20 = vadd.f32 %v7480_v42, %v2342_v11 }
 0x1f8   :  { %v2427_v31 = vadd.f32 %v2426_v39, %v2409_v15 }
 0x1f9   :  { %v2392_v63 = vpop.f32.mrf.mxu3 }
 0x1fa   :  { %v2393_v14 = vadd.f32 %v2392_v63, %v2375_v16  ;;  %v2378_v63 = vadd.f32 %v7505_v60, %v2360_v20 }
 0x1fc   :  { %v2379_v1 = vpop.f32.mrf.mxu2 }
 0x1fd   :  { %v2410_v4 = vpop.f32.mrf.mxu0 }
 0x1fe   :  { %v2428_v10 = vpop.f32.mrf.mxu1  ;;  %v2411_v44 = vadd.f32 %v2410_v4, %v2393_v14 }
 0x200   :  { %2997 = vmatmul.bf16.vlgmr.msrb.gmra.mxu2 %v2485_v17  ;;  %v4644_v17 = vor.u32 %v5087_v25, %v4641_v36  ;;  %v2429_v52 = vadd.f32 %v2428_v10, %v2411_v44 }
 0x201   :  { %v7531_v43 = vpop.f32.mrf.mxu3 }
 0x202   :  { %3009 = vmatpush.bf16.msra.mxu3 %v4644_v17  ;;  %v2396_v48 = vadd.f32 %v7531_v43, %v2378_v63  ;;  %v5107_v63 = vld [vmem:[%s7697_s7 + $0x70] sm:$0xff] }
 0x204   :  { %v2444_v19 = vpop.f32.mrf.mxu2 }
 0x205   :  { %v7540_v51 = vpop.f32.mrf.mxu0  ;;  %v2445_v34 = vadd.f32 %v2444_v19, %v2427_v31 }
 0x206   :  { %v7543_v55 = vpop.f32.mrf.mxu1  ;;  %3010 = vmatpush.bf16.msra.mxu3 %v4636_v35  ;;  %v2414_v53 = vadd.f32 %v7540_v51, %v2396_v48  ;;  %v5104_v48 = vld [vmem:[%s7697_s7 + $0x58] sm:$0xff] }
 0x208   :  { %v2432_v60 = vadd.f32 %v7543_v55, %v2414_v53 }
 0x209   :  { %v2397_v29 = vpop.f32.mrf.mxu3 }
 0x20a   :  { %3011 = vmatpush.bf16.msra.mxu3 %v4628_v21 }
 0x20c   :  { %v2446_v32 = vpop.f32.mrf.mxu2 }
 0x20d   :  { %v2415_v41 = vpop.f32.mrf.mxu0  ;;  %v2447_v39 = vadd.f32 %v2446_v32, %v2429_v52 }
 0x20e   :  { %v2433_v26 = vpop.f32.mrf.mxu1  ;;  %3012 = vmatpush.bf16.msra.mxu3 %v4620_v45  ;;  %v5100_v45 = vld [vmem:[%s7697_s7 + $0x38] sm:$0xff] }
 0x20f   :  { %3167 = vmatpush.bf16.msra.mxu0 %v5100_v45  ;;  %v5119_v45 = vld [vmem:[%s7696_s8] ss:$0 sm:$0xff] }
 0x210   :  { %3002 = vmatmul.bf16.gmra.mxu2 %v7496_v47  ;;  %v2555_v47 = vld [vmem:[%s7695_s6] sm:$0x3] }
 0x211   :  { %v2462_v3 = vpop.f32.mrf.mxu3  ;;  %v2557_v61 = vperm.slane %v2555_v47, 0  ;;  %v2558_v30 = vperm.slane %v2555_v47, 1  ;;  %v5099_v47 = vld [vmem:[%s7697_s7 + $0x30] sm:$0xff] }
 0x212   :  { %v2463_v13 = vadd.f32 %v2462_v3, %v2445_v34  ;;  %3013 = vmatpush.bf16.msra.mxu3 %v4612_v33  ;;  %v5097_v34 = vld [vmem:[%s7697_s7 + $0x20] sm:$0xff] }
 0x213   :  { %3168 = vmatpush.bf16.msra.mxu0 %v5099_v47 }
 0x214   :  { %v2449_v24 = vpop.f32.mrf.mxu2  ;;  %v2474_v4 = vmax.f32 %v2463_v13, 0.0  ;;  %v5108_v13 = vld [vmem:[%s7697_s7 + $0x78] sm:$0xff] }
 0x215   :  { %v2890_v57 = vpop.f32.mrf.mxu0  ;;  %v2450_v46 = vadd.f32 %v2449_v24, %v2432_v60  ;;  %3185 = vmatpush.bf16.msra.mxu1 %v5108_v13  ;;  %v5101_v60 = vld [vmem:[%s7697_s7 + $0x40] sm:$0xff] }
 0x216   :  { %v2891_v10 = vadd.f32 %v2890_v57, %v2557_v61  ;;  %3014 = vmatpush.bf16.msra.mxu3 %v4604_v23  ;;  %v5098_v57 = vld [vmem:[%s7697_s7 + $0x28] sm:$0xff]  ;;  %v5105_v23 = vld [vmem:[%s7697_s7 + $0x60] sm:$0xff] }
 0x217   :  { %3169 = vmatpush.bf16.msra.mxu0 %v5098_v57 }
 0x219   :  { %v2464_v8 = vpop.f32.mrf.mxu3  ;;  %3186 = vmatpush.bf16.msra.mxu1 %v5107_v63 }
 0x21a   :  { %v2465_v5 = vadd.f32 %v2464_v8, %v2447_v39  ;;  %v5093_v39 = vld [vmem:[%s7697_s7] sm:$0xff] }
 0x21b   :  { %3170 = vmatpush.bf16.msra.mxu0 %v5097_v34 }
 0x21c   :  { %v2451_v1 = vpop.f32.mrf.mxu2  ;;  %v2478_v18 = vmax.f32 %v2465_v5, 0.0 }
 0x21d   :  { %v2892_v9 = vpop.f32.mrf.mxu0  ;;  %v5106_v1 = vld [vmem:[%s7697_s7 + $0x68] sm:$0xff] }
 0x21e   :  { %v2908_v38 = vpop.f32.mrf.mxu1  ;;  %v2486_v42 = vpack.c.bf16 %v2478_v18, %v2474_v4  ;;  %v2893_v56 = vadd.f32 %v2892_v9, %v2557_v61  ;;  %3187 = vmatpush.bf16.msra.mxu1 %v5106_v1  ;;  %v5102_v18 = vld [vmem:[%s7697_s7 + $0x48] sm:$0xff] }
 0x21f   :  { %v2909_v19 = vadd.f32 %v2908_v38, %v2891_v10  ;;  %3171 = vmatpush.bf16.msra.mxu0 %v5096_v49  ;;  %v5103_v10 = vld [vmem:[%s7697_s7 + $0x50] sm:$0xff] }
 0x220   :  { %2943 = vmatmul.bf16.vlgmr.msrb.gmra.mxu3 %v2486_v42 }
 0x221   :  { %v2467_v58 = vpop.f32.mrf.mxu3 }
 0x222   :  { %v2468_v36 = vadd.f32 %v2467_v58, %v2450_v46  ;;  %3188 = vmatpush.bf16.msra.mxu1 %v5105_v23 }
 0x223   :  { %3172 = vmatpush.bf16.msra.mxu0 %v5095_v59 }
 0x224   :  { %v2482_v50 = vmax.f32 %v2468_v36, 0.0 }
 0x225   :  { %v2895_v6 = vpop.f32.mrf.mxu0 }
 0x226   :  { %v2910_v25 = vpop.f32.mrf.mxu1  ;;  %v2896_v29 = vadd.f32 %v2895_v6, %v2557_v61  ;;  %v2490_v51 = vpack.c.bf16 %v2482_v50, %v2482_v50  ;;  %3189 = vmatpush.bf16.msra.mxu1 %v5104_v48 }
 0x227   :  { %v7596_v43 = vadd.f32 %v2910_v25, %v2893_v56  ;;  %3173 = vmatpush.bf16.msra.mxu0 %v5094_v22 }
 0x229   :  { %v2469_v17 = vpop.f32.mrf.mxu3 }
 0x22a   :  { %3190 = vmatpush.bf16.msra.mxu1 %v5103_v10 }
 0x22b   :  { %3174 = vmatpush.bf16.msra.mxu0 %v5093_v39 }
 0x22d   :  { %v2897_v28 = vpop.f32.mrf.mxu0 }
 0x22e   :  { %v2913_v12 = vpop.f32.mrf.mxu1  ;;  %3191 = vmatpush.bf16.msra.mxu1 %v5102_v18 }
 0x22f   :  { %v2914_v0 = vadd.f32 %v2913_v12, %v2896_v29 }
 0x230   :  { %2948 = vmatmul.bf16.gmra.mxu3 %v2490_v51 }
 0x232   :  { %3192 = vmatpush.bf16.msra.mxu1 %v5101_v60 }
 0x235   :  { %v2962_v35 = vpop.f32.mrf.mxu0 }
 0x236   :  { %v2915_v32 = vpop.f32.mrf.mxu1  ;;  %v2963_v40 = vadd.f32 %v2962_v35, %v2558_v30 }
 0x23d   :  { %v2964_v55 = vpop.f32.mrf.mxu0 }
 0x23e   :  { %v2980_v41 = vpop.f32.mrf.mxu1  ;;  %v2965_v62 = vadd.f32 %v2964_v55, %v2558_v30 }
 0x23f   :  { %v2981_v16 = vadd.f32 %v2980_v41, %v2963_v40 }
 0x240   :  { %3015 = vmatmul.bf16.vlgmr.msra.gmra.mxu3 %v2486_v42 }
 0x245   :  { %v2967_v26 = vpop.f32.mrf.mxu0 }
 0x246   :  { %v2982_v27 = vpop.f32.mrf.mxu1  ;;  %v2968_v15 = vadd.f32 %v2967_v26, %v2558_v30  ;;  %v5114_v26 = vld [vmem:[%s7699_s9 + $0x28] sm:$0xff] }
 0x247   :  { %v7598_v7 = vadd.f32 %v2982_v27, %v2965_v62  ;;  %v5115_v62 = vld [vmem:[%s7699_s9 + $0x30] sm:$0xff]  ;;  %v5113_v27 = vld [vmem:[%s7699_s9 + $0x20] sm:$0xff] }
 0x24d   :  { %v2969_v14 = vpop.f32.mrf.mxu0 }
 0x24e   :  { %v2985_v21 = vpop.f32.mrf.mxu1  ;;  %v5111_v14 = vld [vmem:[%s7699_s9 + $0x10] sm:$0xff] }
 0x24f   :  { %v2986_v54 = vadd.f32 %v2985_v21, %v2968_v15  ;;  %v5110_v21 = vld [vmem:[%s7699_s9 + $0x8] sm:$0xff] }
 0x250   :  { %3020 = vmatmul.bf16.gmra.mxu3 %v2490_v51 }
 0x256   :  { %v2987_v2 = vpop.f32.mrf.mxu1 }
 0x257   :  { %v5109_v2 = vld [vmem:[%s7699_s9] sm:$0xff] }
 0x263   :  { %v2926_v3 = vpop.f32.mrf.mxu2 }
 0x264   :  { %v2927_v44 = vadd.f32 %v2926_v3, %v2909_v19 }
 0x26b   :  { %v2928_v24 = vpop.f32.mrf.mxu2 }
 0x26c   :  { %v2929_v9 = vadd.f32 %v2928_v24, %v7596_v43 }
 0x273   :  { %v2931_v11 = vpop.f32.mrf.mxu2 }
 0x274   :  { %v2932_v31 = vadd.f32 %v2931_v11, %v2914_v0 }
 0x27b   :  { %v2933_v52 = vpop.f32.mrf.mxu2 }
 0x283   :  { %v2998_v37 = vpop.f32.mrf.mxu2 }
 0x284   :  { %v2999_v33 = vadd.f32 %v2998_v37, %v2981_v16  ;;  %v5116_v16 = vld [vmem:[%s7699_s9 + $0x38] sm:$0xff] }
 0x285   :  { %3276 = vmatpush.bf16.msra.mxu2 %v5116_v16 }
 0x289   :  { %3277 = vmatpush.bf16.msra.mxu2 %v5115_v62 }
 0x28b   :  { %v3000_v20 = vpop.f32.mrf.mxu2 }
 0x28c   :  { %v3001_v50 = vadd.f32 %v3000_v20, %v7598_v7  ;;  %v5112_v7 = vld [vmem:[%s7699_s9 + $0x18] sm:$0xff] }
 0x28d   :  { %3278 = vmatpush.bf16.msra.mxu2 %v5114_v26 }
 0x291   :  { %3279 = vmatpush.bf16.msra.mxu2 %v5113_v27 }
 0x293   :  { %v3003_v61 = vpop.f32.mrf.mxu2 }
 0x294   :  { %v3004_v8 = vadd.f32 %v3003_v61, %v2986_v54  ;;  %v5120_v61 = vld [vmem:[%s7698_s10] ss:$0 sm:$0xff] }
 0x295   :  { %3280 = vmatpush.bf16.msra.mxu2 %v5112_v7 }
 0x299   :  { %3281 = vmatpush.bf16.msra.mxu2 %v5111_v14 }
 0x29b   :  { %v3005_v5 = vpop.f32.mrf.mxu2 }
 0x29d   :  { %3282 = vmatpush.bf16.msra.mxu2 %v5110_v21 }
 0x2a1   :  { %3283 = vmatpush.bf16.msra.mxu2 %v5109_v2 }
 0x2a3   :  { %v2944_v4 = vpop.f32.mrf.mxu3 }
 0x2a4   :  { %v2945_v38 = vadd.f32 %v2944_v4, %v2927_v44 }
 0x2a6   :  { %v3025_v19 = vmax.f32 %v2945_v38, 0.0 }
 0x2ab   :  { %v2946_v53 = vpop.f32.mrf.mxu3 }
 0x2ac   :  { %v2947_v42 = vadd.f32 %v2946_v53, %v2929_v9 }
 0x2ae   :  { %v3027_v58 = vmax.f32 %v2947_v42, 0.0 }
 0x2b0   :  { %v3031_v46 = vpack.c.bf16 %v3027_v58, %v3025_v19 }
 0x2b2   :  { %3175 = vmatmul.bf16.vlgmr.msra.gmra.mxu0 %v3031_v46 }
 0x2b3   :  { %v2949_v56 = vpop.f32.mrf.mxu3 }
 0x2b4   :  { %v2950_v6 = vadd.f32 %v2949_v56, %v2932_v31 }
 0x2b6   :  { %v3029_v36 = vmax.f32 %v2950_v6, 0.0 }
 0x2b8   :  { %v3033_v17 = vpack.c.bf16 %v3029_v36, %v3029_v36 }
 0x2bb   :  { %v2951_v25 = vpop.f32.mrf.mxu3 }
 0x2c2   :  { %3180 = vmatmul.bf16.gmra.mxu0 %v3033_v17 }
 0x2c3   :  { %v3016_v43 = vpop.f32.mrf.mxu3 }
 0x2c4   :  { %v3017_v29 = vadd.f32 %v3016_v43, %v2999_v33 }
 0x2c6   :  { %v3026_v51 = vmax.f32 %v3017_v29, 0.0 }
 0x2cb   :  { %v3018_v28 = vpop.f32.mrf.mxu3 }
 0x2cc   :  { %v3019_v12 = vadd.f32 %v3018_v28, %v3001_v50 }
 0x2ce   :  { %v3028_v0 = vmax.f32 %v3019_v12, 0.0 }
 0x2d0   :  { %v3032_v32 = vpack.c.bf16 %v3028_v0, %v3026_v51 }
 0x2d2   :  { %3193 = vmatmul.bf16.vlgmr.msra.gmra.mxu1 %v3032_v32 }
 0x2d3   :  { %v3021_v35 = vpop.f32.mrf.mxu3 }
 0x2d4   :  { %v3022_v30 = vadd.f32 %v3021_v35, %v3004_v8 }
 0x2d6   :  { %v3030_v55 = vmax.f32 %v3022_v30, 0.0 }
 0x2d8   :  { %v3034_v41 = vpack.c.bf16 %v3030_v55, %v3030_v55 }
 0x2db   :  { %v3023_v40 = vpop.f32.mrf.mxu3 }
 0x2e2   :  { %3198 = vmatmul.bf16.gmra.mxu1 %v3034_v41 }
 0x32f   :  { %v3176_v15 = vpop.f32.mrf.mxu0 }
 0x330   :  { %v3177_v11 = vadd.f32 %v5119_v45, %v3176_v15 }
 0x337   :  { %v3178_v54 = vpop.f32.mrf.mxu0 }
 0x338   :  { %v3179_v31 = vadd.f32 %v5119_v45, %v3178_v54 }
 0x33f   :  { %v3181_v3 = vpop.f32.mrf.mxu0 }
 0x340   :  { %v3182_v59 = vadd.f32 %v5119_v45, %v3181_v3 }
 0x347   :  { %v3183_v44 = vpop.f32.mrf.mxu0 }
 0x34f   :  { %v3194_v24 = vpop.f32.mrf.mxu1 }
 0x350   :  { %v3195_v47 = vadd.f32 %v3194_v24, %v3177_v11 }
 0x352   :  { %v3203_v34 = vmax.f32 %v3195_v47, 0.0 }
 0x357   :  { %v3196_v57 = vpop.f32.mrf.mxu1 }
 0x358   :  { %v3197_v52 = vadd.f32 %v3196_v57, %v3179_v31 }
 0x35a   :  { %v3204_v49 = vmax.f32 %v3197_v52, 0.0 }
 0x35c   :  { %v3206_v37 = vpack.c.bf16 %v3204_v49, %v3203_v34 }
 0x35e   :  { %3284 = vmatmul.bf16.vlgmr.msra.gmra.mxu2 %v3206_v37 }
 0x35f   :  { %v3199_v33 = vpop.f32.mrf.mxu1 }
 0x360   :  { %v3200_v22 = vadd.f32 %v3199_v33, %v3182_v59 }
 0x362   :  { %v3205_v39 = vmax.f32 %v3200_v22, 0.0 }
 0x364   :  { %v3207_v13 = vpack.c.bf16 %v3205_v39, %v3205_v39 }
 0x367   :  { %v3201_v20 = vpop.f32.mrf.mxu1 }
 0x36e   :  { %3289 = vmatmul.bf16.gmra.mxu2 %v3207_v13 }
 0x3e1   :  { %v3285_v8 = vpop.f32.mrf.mxu2 }
 0x3e2   :  { %v3286_v63 = vadd.f32 %v5120_v61, %v3285_v8 }
 0x3e4   :  { %3294 = vst [vmem:[%s7700_s11] sm:$0xff] %v3286_v63 }
 0x3e9   :  { %v3287_v1 = vpop.f32.mrf.mxu2 }
 0x3ea   :  { %v3288_v5 = vadd.f32 %v5120_v61, %v3287_v1 }
 0x3ec   :  { %3295 = vst [vmem:[%s7700_s11 + $0x8] sm:$0xff] %v3288_v5 }
 0x3f1   :  { %v3290_v23 = vpop.f32.mrf.mxu2 }
 0x3f2   :  { %v3291_v48 = vadd.f32 %v5120_v61, %v3290_v23 }
 0x3f4   :  { %3296 = vst [vmem:[%s7700_s11 + $0x10] sm:$0xff] %v3291_v48 }
 0x3f9   :  { %v3292_v4 = vpop.f32.mrf.mxu2 }

</bundles_post_ra>
